<compile_context>
chip_gen: v6e
topology: v6e:2x2x1
jax: 0.10.0
libtpu: 0.0.40
codegen_flags: <defaults>
</compile_context>

<pallas_src>
import functools

import jax
import jax.numpy as jnp
from jax import lax
from jax.experimental import pallas as pl
from jax.experimental.pallas import tpu as pltpu


# ----------------------------------------------------------------------------
# Pallas kernel: fused upsample2x + pad + conv3x3 + BN(eval) + PReLU
# ----------------------------------------------------------------------------
def _psp_conv_bn_prelu_kernel(xf_ref, kup_ref, w_ref, scale_ref, bias_ref,
                              alpha_ref, o_ref, *, ty, w2, w2p):
    """One (image, output-row-tile) step.

    xf_ref:    (1, H*W, Cin)          bf16  NHWC-flat input image
    kup_ref:   (1, (ty+2)*w2p, H*W)   bf16  fused upsample*pad*tile operator
    w_ref:     (Cout, 9*Cin)          bf16  conv taps, col = (dy*3+dx)*Cin + ci
    scale_ref: (Cout, 1)              f32   gamma / sqrt(running_var + eps)
    bias_ref:  (Cout, 1)              f32   beta + scale*(conv_b - running_mean)
    alpha_ref: (1, 1) in SMEM         f32   PReLU negative slope
    o_ref:     (1, Cout, ty*w2)       f32   NCHW-flat output tile
    """
    cin = xf_ref.shape[2]
    cout = o_ref.shape[1]

    # --- fused bilinear 2x upsample + zero pad: one MXU matmul --------------
    # up2[p*w2p + xq, ci] = zero-padded, 2x-upsampled activation at padded row
    # (tile_row0 + p), padded column xq, channel ci.
    up2 = jnp.dot(kup_ref[0], xf_ref[0],
                  preferred_element_type=jnp.float32)       # ((ty+2)*w2p, Cin)
    up3 = up2.reshape(ty + 2, w2p, cin)                      # (ty+2, w2p, Cin)

    # --- im2col: 9 shifted views -> one (ty*w2, 9*Cin) patch matrix ---------
    pieces = []
    for dy in range(3):
        for dx in range(3):
            pieces.append(
                up3[dy:dy + ty, dx:dx + w2, :].reshape(ty * w2, cin))
    patches = jnp.concatenate(pieces, axis=1).astype(jnp.bfloat16)

    # --- single K=9*Cin conv matmul, lane-dense (Cout, ty*w2) output --------
    acc = lax.dot_general(w_ref[...], patches,
                          dimension_numbers=(((1,), (1,)), ((), ())),
                          preferred_element_type=jnp.float32)

    # --- folded BatchNorm (eval) + PReLU epilogue ---------------------------
    y = acc * scale_ref[...] + bias_ref[...]
    alpha = alpha_ref[0, 0]
    y = jnp.where(y > 0, y, alpha * y)
    o_ref[...] = y.reshape(1, cout, ty * w2)


# ----------------------------------------------------------------------------
# Glue: 1-D bilinear 2x upsample matrix (PyTorch align_corners=False semantics)
# ----------------------------------------------------------------------------
def _bilinear_matrix(n):
    """(2n, n) matrix M with (M @ v) = bilinear-2x-upsample of v."""
    out = 2 * n
    src = (jnp.arange(out, dtype=jnp.float32) + 0.5) * (n / out) - 0.5
    src = jnp.maximum(src, 0.0)                 # PyTorch clamps negative src
    i0 = jnp.minimum(jnp.floor(src).astype(jnp.int32), n - 1)
    i1 = jnp.minimum(i0 + 1, n - 1)
    frac = src - i0.astype(jnp.float32)
    cols = jnp.arange(n, dtype=jnp.int32)[None, :]
    oh0 = (cols == i0[:, None]).astype(jnp.float32)
    oh1 = (cols == i1[:, None]).astype(jnp.float32)
    return oh0 * (1.0 - frac)[:, None] + oh1 * frac[:, None]


# ----------------------------------------------------------------------------
# Parameter construction (deterministic, synthetic)
# ----------------------------------------------------------------------------
def init_psp_upsample_params(key, in_channels, out_channels):
    ks = jax.random.split(key, 6)
    conv_w = 0.1 * jax.random.normal(
        ks[0], (out_channels, in_channels, 3, 3), jnp.float32)  # OIHW
    conv_b = 0.1 * jax.random.normal(ks[1], (out_channels,), jnp.float32)
    bn_gamma = 1.0 + 0.1 * jax.random.normal(ks[2], (out_channels,),
                                             jnp.float32)
    bn_beta = 0.1 * jax.random.normal(ks[3], (out_channels,), jnp.float32)
    bn_mean = 0.1 * jax.random.normal(ks[4], (out_channels,), jnp.float32)
    bn_var = jnp.abs(jax.random.normal(ks[5], (out_channels,),
                                       jnp.float32)) + 0.5
    prelu_alpha = jnp.float32(0.25)             # nn.PReLU() default
    return dict(conv_w=conv_w, conv_b=conv_b, bn_gamma=bn_gamma,
                bn_beta=bn_beta, bn_mean=bn_mean, bn_var=bn_var,
                prelu_alpha=prelu_alpha, eps=1e-5)


# ----------------------------------------------------------------------------
# Wrapper (NCHW in / NCHW out, like the PyTorch module)
# ----------------------------------------------------------------------------
def psp_upsample_forward(x_nchw, params):
    n, cin, h, w = x_nchw.shape
    cout = params["conv_w"].shape[0]
    h2, w2 = 2 * h, 2 * w

    # Output-row tiling (spatial grid axis). Keep the output tile lane-dense
    # (ty*w2 a multiple of 128) and the operator sublane-aligned.
    ty = h2
    if h2 % 16 == 0 and h2 > 16 and (16 * w2) % 128 == 0:
        ty = 16
    n_ty = h2 // ty
    w2p = ((w2 + 2 + 7) // 8) * 8               # padded-upsampled width, 8-aligned

    # --- fused (upsample x zero-pad x row-tile) operators, built once -------
    uh = _bilinear_matrix(h)                                    # (h2, h)
    uw = _bilinear_matrix(w)                                    # (w2, w)
    ap = jnp.pad(uh, ((1, 1), (0, 0)))                          # (h2+2, h)
    bpp = jnp.zeros((w2p, w), jnp.float32).at[1:w2 + 1].set(uw)  # (w2p, w)
    ktiles = []
    for t in range(n_ty):
        apt = ap[t * ty:t * ty + ty + 2, :]                     # (ty+2, h)
        kt = jnp.einsum("ph,xw->pxhw", apt, bpp)
        ktiles.append(kt.reshape((ty + 2) * w2p, h * w))
    kups = jnp.stack(ktiles, axis=0).astype(jnp.bfloat16)       # exact in bf16

    # --- small 1x-sized input relayout to NHWC-flat (cheap, done in XLA) ----
    xf = jnp.transpose(x_nchw, (0, 2, 3, 1)).reshape(n, h * w, cin)
    xf = xf.astype(jnp.bfloat16)

    # --- fold conv bias + BatchNorm(eval) into per-channel scale / bias -----
    scale = params["bn_gamma"] / jnp.sqrt(params["bn_var"] + params["eps"])
    bias = params["bn_beta"] + scale * (params["conv_b"] - params["bn_mean"])
    scale = scale.reshape(cout, 1).astype(jnp.float32)
    bias = bias.reshape(cout, 1).astype(jnp.float32)
    alpha = jnp.asarray(params["prelu_alpha"], jnp.float32).reshape(1, 1)

    # conv weight OIHW -> (Cout, 9*Cin), column order (dy, dx, ci)
    wmat = jnp.transpose(params["conv_w"], (0, 2, 3, 1))
    wmat = wmat.reshape(cout, 9 * cin).astype(jnp.bfloat16)

    kernel = functools.partial(_psp_conv_bn_prelu_kernel,
                               ty=ty, w2=w2, w2p=w2p)

    out_flat = pl.pallas_call(
        kernel,
        out_shape=jax.ShapeDtypeStruct((n, cout, h2 * w2), jnp.float32),
        grid=(n, n_ty),
        in_specs=[
            pl.BlockSpec((1, h * w, cin), lambda b, t: (b, 0, 0)),
            pl.BlockSpec((1, (ty + 2) * w2p, h * w), lambda b, t: (t, 0, 0)),
            pl.BlockSpec((cout, 9 * cin), lambda b, t: (0, 0)),
            pl.BlockSpec((cout, 1), lambda b, t: (0, 0)),
            pl.BlockSpec((cout, 1), lambda b, t: (0, 0)),
            pl.BlockSpec(memory_space=pltpu.MemorySpace.SMEM),
        ],
        out_specs=pl.BlockSpec((1, cout, ty * w2), lambda b, t: (b, 0, t)),
        compiler_params=pltpu.CompilerParams(
            dimension_semantics=("parallel", "parallel"),
            vmem_limit_bytes=64 * 1024 * 1024),
    )(xf, kups, wmat, scale, bias, alpha)

    # NCHW output: free reshape, no HBM transpose of the 4x tensor.
    return out_flat.reshape(n, cout, h2, w2)


# ----------------------------------------------------------------------------
# Pure-JAX f32 reference (correctness check of the fused Pallas path)
# ----------------------------------------------------------------------------
def _bilinear_upsample_2x_nchw(x):
    n, c, h, w = x.shape
    uh = _bilinear_matrix(h)
    uw = _bilinear_matrix(w)
    y = jnp.einsum("ph,nchw->ncpw", uh, x)
    return jnp.einsum("qw,ncpw->ncpq", uw, y)


def _reference_forward(x_nchw, params):
    x_up = _bilinear_upsample_2x_nchw(x_nchw.astype(jnp.float32))
    conv = lax.conv_general_dilated(
        x_up, params["conv_w"], window_strides=(1, 1), padding="SAME",
        dimension_numbers=("NCHW", "OIHW", "NCHW"))
    conv = conv + params["conv_b"][None, :, None, None]
    scale = params["bn_gamma"] / jnp.sqrt(params["bn_var"] + params["eps"])
    y = (conv - params["bn_mean"][None, :, None, None]) * \
        scale[None, :, None, None] + params["bn_beta"][None, :, None, None]
    return jnp.where(y > 0, y, params["prelu_alpha"] * y)


if __name__ == "__main__":
    key = jax.random.PRNGKey(0)
    k_x, k_p = jax.random.split(key)

    N, C_IN, H, W = 2, 4, 16, 16
    C_OUT = 8

    x = jax.random.normal(k_x, (N, C_IN, H, W), jnp.float32)
    params = init_psp_upsample_params(k_p, C_IN, C_OUT)

    fwd = jax.jit(psp_upsample_forward)
    out = jax.block_until_ready(fwd(x, params))

    assert out.shape == (N, C_OUT, 2 * H, 2 * W), out.shape

    ref = _reference_forward(x, params)
    # Kernel uses bf16 MXU operands (f32 accumulation); allow bf16 roundoff.
    assert jnp.allclose(out, ref, atol=7e-2, rtol=7e-2), (
        float(jnp.max(jnp.abs(out - ref))))

    print("KERNEL_OK")
</pallas_src>

<mosaic_0001>
module attributes {stable_mosaic.version = 11 : i64} {
  func.func @_psp_conv_bn_prelu_kernel(%arg0: i32, %arg1: i32, %arg2: memref<1x256x4xbf16, #tpu.memory_space<vmem>>, %arg3: memref<1x720x256xbf16, #tpu.memory_space<vmem>>, %arg4: memref<8x36xbf16, #tpu.memory_space<vmem>>, %arg5: memref<8x1xf32, #tpu.memory_space<vmem>>, %arg6: memref<8x1xf32, #tpu.memory_space<vmem>>, %arg7: memref<1x1xf32, #tpu.memory_space<smem>>, %arg8: memref<1x8x512xf32, #tpu.memory_space<vmem>>) attributes {dimension_semantics = [#tpu.dimension_semantics<parallel>, #tpu.dimension_semantics<parallel>], iteration_bounds = array<i64: 2, 2>, scalar_prefetch = 0 : i64, scratch_operands = 0 : i64, tpu.core_type = #tpu.core_type<tc>, window_params = [{transform_indices = @transform_0, window_bounds = array<i64: 1, 256, 4>}, {transform_indices = @transform_1, window_bounds = array<i64: 1, 720, 256>}, {pipeline_mode = #tpu.pipeline_mode<synchronous>, transform_indices = @transform_2, window_bounds = array<i64: 8, 36>}, {pipeline_mode = #tpu.pipeline_mode<synchronous>, transform_indices = @transform_3, window_bounds = array<i64: 8, 1>}, {pipeline_mode = #tpu.pipeline_mode<synchronous>, transform_indices = @transform_4, window_bounds = array<i64: 8, 1>}, {transform_indices = @transform_5, window_bounds = array<i64: 1, 1>}, {transform_indices = @transform_6, window_bounds = array<i64: 1, 8, 512>}]} {
    %c0 = arith.constant 0 : index
    %c0_0 = arith.constant 0 : index
    %c0_1 = arith.constant 0 : index
    %0 = vector.load %arg3[%c0, %c0_0, %c0_1] : memref<1x720x256xbf16, #tpu.memory_space<vmem>>, vector<1x720x256xbf16>
    %1 = vector.shape_cast %0 : vector<1x720x256xbf16> to vector<720x256xbf16>
    %c0_2 = arith.constant 0 : index
    %c0_3 = arith.constant 0 : index
    %c0_4 = arith.constant 0 : index
    %2 = vector.load %arg2[%c0_2, %c0_3, %c0_4] : memref<1x256x4xbf16, #tpu.memory_space<vmem>>, vector<1x256x4xbf16>
    %3 = vector.shape_cast %2 : vector<1x256x4xbf16> to vector<256x4xbf16>
    %cst = arith.constant dense<0.000000e+00> : vector<720x4xf32>
    %4 = tpu.matmul %1, %3, %cst {dimension_numbers = #tpu.dot_dimension_numbers<[1], [0], [0], [1], [0, 0, 1, 1], [], []>} : vector<720x256xbf16>, vector<256x4xbf16>, vector<720x4xf32> -> vector<720x4xf32>
    %5 = vector.shape_cast %4 : vector<720x4xf32> to vector<18x40x4xf32>
    %6 = vector.extract_strided_slice %5 {offsets = [0, 0, 0], sizes = [16, 32, 4], strides = [1, 1, 1]} : vector<18x40x4xf32> to vector<16x32x4xf32>
    %7 = vector.shape_cast %6 : vector<16x32x4xf32> to vector<512x4xf32>
    %8 = vector.extract_strided_slice %5 {offsets = [0, 1, 0], sizes = [16, 32, 4], strides = [1, 1, 1]} : vector<18x40x4xf32> to vector<16x32x4xf32>
    %9 = vector.shape_cast %8 : vector<16x32x4xf32> to vector<512x4xf32>
    %10 = vector.extract_strided_slice %5 {offsets = [0, 2, 0], sizes = [16, 32, 4], strides = [1, 1, 1]} : vector<18x40x4xf32> to vector<16x32x4xf32>
    %11 = vector.shape_cast %10 : vector<16x32x4xf32> to vector<512x4xf32>
    %12 = vector.extract_strided_slice %5 {offsets = [1, 0, 0], sizes = [16, 32, 4], strides = [1, 1, 1]} : vector<18x40x4xf32> to vector<16x32x4xf32>
    %13 = vector.shape_cast %12 : vector<16x32x4xf32> to vector<512x4xf32>
    %14 = vector.extract_strided_slice %5 {offsets = [1, 1, 0], sizes = [16, 32, 4], strides = [1, 1, 1]} : vector<18x40x4xf32> to vector<16x32x4xf32>
    %15 = vector.shape_cast %14 : vector<16x32x4xf32> to vector<512x4xf32>
    %16 = vector.extract_strided_slice %5 {offsets = [1, 2, 0], sizes = [16, 32, 4], strides = [1, 1, 1]} : vector<18x40x4xf32> to vector<16x32x4xf32>
    %17 = vector.shape_cast %16 : vector<16x32x4xf32> to vector<512x4xf32>
    %18 = vector.extract_strided_slice %5 {offsets = [2, 0, 0], sizes = [16, 32, 4], strides = [1, 1, 1]} : vector<18x40x4xf32> to vector<16x32x4xf32>
    %19 = vector.shape_cast %18 : vector<16x32x4xf32> to vector<512x4xf32>
    %20 = vector.extract_strided_slice %5 {offsets = [2, 1, 0], sizes = [16, 32, 4], strides = [1, 1, 1]} : vector<18x40x4xf32> to vector<16x32x4xf32>
    %21 = vector.shape_cast %20 : vector<16x32x4xf32> to vector<512x4xf32>
    %22 = vector.extract_strided_slice %5 {offsets = [2, 2, 0], sizes = [16, 32, 4], strides = [1, 1, 1]} : vector<18x40x4xf32> to vector<16x32x4xf32>
    %23 = vector.shape_cast %22 : vector<16x32x4xf32> to vector<512x4xf32>
    %24 = tpu.concatenate %7, %9, %11, %13, %15, %17, %19, %21, %23 in 1 : vector<512x4xf32>, vector<512x4xf32>, vector<512x4xf32>, vector<512x4xf32>, vector<512x4xf32>, vector<512x4xf32>, vector<512x4xf32>, vector<512x4xf32>, vector<512x4xf32> -> vector<512x36xf32>
    %25 = arith.truncf %24 : vector<512x36xf32> to vector<512x36xbf16>
    %c0_5 = arith.constant 0 : index
    %c0_6 = arith.constant 0 : index
    %26 = vector.load %arg4[%c0_5, %c0_6] : memref<8x36xbf16, #tpu.memory_space<vmem>>, vector<8x36xbf16>
    %cst_7 = arith.constant dense<0.000000e+00> : vector<8x512xf32>
    %27 = tpu.matmul %26, %25, %cst_7 {dimension_numbers = #tpu.dot_dimension_numbers<[1], [1], [0], [0], [0, 0, 1, 0], [], []>} : vector<8x36xbf16>, vector<512x36xbf16>, vector<8x512xf32> -> vector<8x512xf32>
    %c0_8 = arith.constant 0 : index
    %c0_9 = arith.constant 0 : index
    %28 = vector.load %arg5[%c0_8, %c0_9] : memref<8x1xf32, #tpu.memory_space<vmem>>, vector<8x1xf32>
    %29 = vector.broadcast %28 : vector<8x1xf32> to vector<8x512xf32>
    %30 = arith.mulf %27, %29 : vector<8x512xf32>
    %c0_10 = arith.constant 0 : index
    %c0_11 = arith.constant 0 : index
    %31 = vector.load %arg6[%c0_10, %c0_11] : memref<8x1xf32, #tpu.memory_space<vmem>>, vector<8x1xf32>
    %32 = vector.broadcast %31 : vector<8x1xf32> to vector<8x512xf32>
    %33 = arith.addf %30, %32 : vector<8x512xf32>
    %c0_12 = arith.constant 0 : index
    %c0_13 = arith.constant 0 : index
    %34 = memref.load %arg7[%c0_12, %c0_13] : memref<1x1xf32, #tpu.memory_space<smem>>
    %cst_14 = arith.constant 0.000000e+00 : f32
    %35 = vector.broadcast %cst_14 : f32 to vector<8x512xf32>
    %36 = arith.cmpf ogt, %33, %35 : vector<8x512xf32>
    %37 = vector.broadcast %34 : f32 to vector<8x512xf32>
    %38 = arith.mulf %37, %33 : vector<8x512xf32>
    %39 = arith.select %36, %33, %38 : vector<8x512xi1>, vector<8x512xf32>
    %40 = vector.shape_cast %39 : vector<8x512xf32> to vector<1x8x512xf32>
    %c0_15 = arith.constant 0 : index
    %c0_16 = arith.constant 0 : index
    %c0_17 = arith.constant 0 : index
    %41 = vector.load %arg8[%c0_15, %c0_16, %c0_17] : memref<1x8x512xf32, #tpu.memory_space<vmem>>, vector<1x8x512xf32>
    tpu.vector_store %arg8[%c0_15, %c0_16, %c0_17], %40 {strides = array<i32>} : memref<1x8x512xf32, #tpu.memory_space<vmem>>, vector<1x8x512xf32>,
    return
  }
  func.func @transform_0(%arg0: i32, %arg1: i32) -> (i32, i32, i32) {
    %c0_i32 = arith.constant 0 : i32
    %c0_i32_0 = arith.constant 0 : i32
    %c0_i32_1 = arith.constant 0 : i32
    return %arg0, %c0_i32, %c0_i32_0 : i32, i32, i32
  }
  func.func @transform_1(%arg0: i32, %arg1: i32) -> (i32, i32, i32) {
    %c0_i32 = arith.constant 0 : i32
    %c0_i32_0 = arith.constant 0 : i32
    %c0_i32_1 = arith.constant 0 : i32
    return %arg1, %c0_i32, %c0_i32_0 : i32, i32, i32
  }
  func.func @transform_2(%arg0: i32, %arg1: i32) -> (i32, i32) {
    %c0_i32 = arith.constant 0 : i32
    %c0_i32_0 = arith.constant 0 : i32
    %c0_i32_1 = arith.constant 0 : i32
    return %c0_i32, %c0_i32_0 : i32, i32
  }
  func.func @transform_3(%arg0: i32, %arg1: i32) -> (i32, i32) {
    %c0_i32 = arith.constant 0 : i32
    %c0_i32_0 = arith.constant 0 : i32
    %c0_i32_1 = arith.constant 0 : i32
    return %c0_i32, %c0_i32_0 : i32, i32
  }
  func.func @transform_4(%arg0: i32, %arg1: i32) -> (i32, i32) {
    %c0_i32 = arith.constant 0 : i32
    %c0_i32_0 = arith.constant 0 : i32
    %c0_i32_1 = arith.constant 0 : i32
    return %c0_i32, %c0_i32_0 : i32, i32
  }
  func.func @transform_5(%arg0: i32, %arg1: i32) -> (i32, i32) {
    %c0_i32 = arith.constant 0 : i32
    %c0_i32_0 = arith.constant 0 : i32
    %c0_i32_1 = arith.constant 0 : i32
    return %c0_i32, %c0_i32_0 : i32, i32
  }
  func.func @transform_6(%arg0: i32, %arg1: i32) -> (i32, i32, i32) {
    %c0_i32 = arith.constant 0 : i32
    %c0_i32_0 = arith.constant 0 : i32
    return %arg0, %c0_i32, %arg1 : i32, i32, i32
  }
}

</mosaic_0001>

<bundles_post_ra>
// kernel: psp_upsample_forward.1
= control target key start
LH: loop header
LB: loop body
LE: loop exit
PB: predicated region body
PF: predicated region fallthrough
CT: control target
= control target key end

     0   :  { %s5956_s23 = smov 0   ;;  %s5958_s24 = smov 0   ;;  %s9287_s0 = inlined_call_operand.vmem [shape: bf16[2,256,4], index: 0, kind: input, shape index: {}]   ;;  %s9288_s1 = inlined_call_operand.vmem [shape: bf16[2,720,256], index: 1, kind: input, shape index: {}]   ;;  %s9289_s2 = inlined_call_operand.vmem [shape: bf16[8,36], index: 2, kind: input, shape index: {}]   ;;  %s9290_s3 = inlined_call_operand.vmem [shape: f32[8,1], index: 3, kind: input, shape index: {}]   ;;  %s9291_s4 = inlined_call_operand.vmem [shape: f32[8,1], index: 4, kind: input, shape index: {}]   ;;  %s9292_s5 = inlined_call_operand.<no memory space> [shape: f32[1,1], index: 5, kind: input, shape index: {}]   ;;  %s9293_s6 = inlined_call_operand.vmem [shape: f32[2,8,1024], index: 6, kind: output, shape index: {}]  }
   0x1   :  { %11 = sst [smem:[#allocation2]] %s9292_s5  ;;  %s5960_s25 = smov 0  }
   0x2   :  { %s5962_s26 = smov 0   ;;  %s5964_s27 = smov 0  }
   0x3 LB: > { %s26_s5 = sadd.s32 1, %s5899_s25  ;;  %s29_s28 = sadd.s32 1, %s5903_s26  ;;  %s5907_s27 = sphi %s5964_s27, %s17_s27   ;;  %s5903_s26 = sphi %s5962_s26, %s10141_s26   ;;  %s5899_s25 = sphi %s5960_s25, %s10140_s25   ;;  %s5895_s24 = sphi %s5958_s24, %s10139_s24   ;;  %s5891_s23 = sphi %s5956_s23, %s10138_s23  }
   0x4   : > { %p27_p0 = scmp.ge.s32.totalorder %s26_s5, 2  ;;  %p4183_p1 = scmp.ge.s32.totalorder %s5907_s27, 1 }
   0x5   : > { %p237_p2 = scmp.lt.s32.totalorder %s5907_s27, 5 }
   0x6   : > { %s10143_s5 = smov (%p27_p0, %s26_s5), 0  ;;  %s10145_s28 = smov (!%p27_p0, %s29_s28), %s5903_s26 }
   0x7   : > { %p238_p3 = pnand %p4183_p1, %p237_p2  ;;  %p31_p4 = scmp.ge.s32.totalorder %s10145_s28, 2 }
   0x9   : > { %s10147_s28 = smov (%p31_p4, %s10145_s28), 0  ;;  %241 = sbr.rel (%p238_p3) target bundleno = 1140 (0x474), region = 44 }
   0xe   : > { %p276_p5 = scmp.lt.s32.totalorder %s5895_s24, 1  ;;  %v5909_v0 = vmov 0   ;;  %p281_p6 = scmp.lt.s32.totalorder %s5891_s23, 1  ;;  %vm1438_vm0 = vcmask 1046528   ;;  %vm1583_vm1 = vcmask 1045504   ;;  %vm3310_vm2 = vcmask 31744  }
   0xf   : > { %965 = vmatprep.subr.bf16.mxu0 %v5909_v0  ;;  %4337 = vmatprep.subr.bf16.mxu1 %v5909_v0  ;;  %s5910_s14 = smov 12   ;;  %s5911_s15 = smov 4   ;;  %vm3375_vm3 = vcmask 64512   ;;  %vm3440_vm4 = vcmask 97280   ;;  %vm3505_vm5 = vcmask 130048   ;;  %vm3570_vm6 = vcmask 162816  }
  0x10   : > { %s10149_s24 = smov (!%p276_p5, %s5895_s24), 1  ;;  %5715 = vset.pattern.permute.xlu0 %v5909_v0  ;;  %5716 = vset.pattern.permute.xlu1 %v5909_v0  ;;  %s5912_s16 = smov 8   ;;  %vm3635_vm7 = vcmask 195584   ;;  %vm3700_vm8 = vcmask 228352   ;;  %vm3765_vm9 = vcmask 261120   ;;  %vm3863_vm10 = vcmask 293888  }
  0x11   : > { %s4300_s29 = sshll.u32 %s10149_s24, 7  ;;  %s5913_s17 = smov 16  }
  0x12   : > { %s5998_s8 = scalar_lea.vmem %s9287_s0, %s4300_s29  ;;  %s5914_s18 = smov 20  }
  0x13   : > { %v5717_v1 = vld [vmem:[%s5998_s8 + $0x38] sm:$0xff]   ;;  %v5718_v2 = vld [vmem:[%s5998_s8 + $0x30] sm:$0xff]   ;;  %v5719_v3 = vld [vmem:[%s5998_s8 + $0x28] sm:$0xff]   ;;  %s282_s9 = scalar_select %p281_p6, %s5891_s23, 1 }
  0x14   : > { %966 = vmatpush1.bf16.msra.mxu0 %v5717_v1  ;;  %4353 = vmatpush1.bf16.msra.mxu1 %v5717_v1  ;;  %v5720_v4 = vld [vmem:[%s5998_s8 + $0x20] sm:$0xff]   ;;  %v5721_v5 = vld [vmem:[%s5998_s8 + $0x18] sm:$0xff]   ;;  %v5722_v7 = vld [vmem:[%s5998_s8 + $0x10] sm:$0xff]   ;;  %s5915_s19 = smov 24   ;;  %s5916_s20 = smov 28  }
  0x15   : > { %967 = vmatprep.subr.bf16.mxu0 %v5909_v0  ;;  %4338 = vmatprep.subr.bf16.mxu1 %v5909_v0  ;;  %s4385_s10 = smul.u32 720, %s282_s9  ;;  %v5723_v9 = vld [vmem:[%s5998_s8 + $0x8] sm:$0xff]   ;;  %v5724_v10 = vld [vmem:[%s5998_s8] sm:$0xff]   ;;  %v5725_v11 = vld [vmem:[%s5998_s8 + $0x78] sm:$0xff]   ;;  %s5917_s21 = smov 32  }
  0x16   : > { %v5726_v12 = vld [vmem:[%s5998_s8 + $0x70] sm:$0xff]   ;;  %v5727_v13 = vld [vmem:[%s5998_s8 + $0x68] sm:$0xff]   ;;  %v5728_v14 = vld [vmem:[%s5998_s8 + $0x60] sm:$0xff]   ;;  %s4187_s12 = sshll.u32 %s5891_s23, 2 }
  0x17   : > { %s6016_s13 = scalar_lea.vmem %s9288_s1, %s4385_s10  ;;  %v5729_v15 = vld [vmem:[%s5998_s8 + $0x58] sm:$0xff]   ;;  %v5730_v16 = vld [vmem:[%s5998_s8 + $0x50] sm:$0xff]   ;;  %v5731_v17 = vld [vmem:[%s5998_s8 + $0x48] sm:$0xff]   ;;  %p289_p7 = scmp.lt.s32.totalorder %s4187_s12, 7 }
  0x18   : > { %968 = vmatpush1.bf16.msra.mxu0 %v5718_v2  ;;  %4354 = vmatpush1.bf16.msra.mxu1 %v5718_v2  ;;  %v5735_v6 = vld [vmem:[%s6016_s13 + $0x4] ss:$8 sps:$4 sm:$0xff]   ;;  %v5738_v8 = vld [vmem:[%s6016_s13 + $0x1b4] ss:$8 sps:$4 sm:$0xff]   ;;  %v5733_v19 = vld [vmem:[%s6016_s13] ss:$8 sps:$4 sm:$0xff]  }
  0x19   : > { %969 = vmatprep.subr.bf16.mxu0 %v5909_v0  ;;  %4339 = vmatprep.subr.bf16.mxu1 %v5909_v0  ;;  %v5732_v18 = vld [vmem:[%s5998_s8 + $0x40] sm:$0xff]   ;;  %v5736_v20 = vld [vmem:[%s6016_s13 + $0x1b0] ss:$8 sps:$4 sm:$0xff]   ;;  %v5739_v21 = vld [vmem:[%s6016_s13 + $0x14] ss:$8 sps:$4 sm:$0xff]   ;;  %s10151_s12 = smov (!%p289_p7, %s4187_s12), 7 }
  0x1a   : > { %997 = vmatprep.mubr.bf16.mxu0 %v5735_v6  ;;  %1213 = vmatprep.mubr.bf16.mxu1 %v5738_v8  ;;  %v5741_v22 = vld [vmem:[%s6016_s13 + $0x1c4] ss:$8 sps:$4 sm:$0xff]   ;;  %v5743_v23 = vld [vmem:[%s6016_s13 + $0x10] ss:$8 sps:$4 sm:$0xff]   ;;  %v5744_v24 = vld [vmem:[%s6016_s13 + $0x1c0] ss:$8 sps:$4 sm:$0xff]  }
  0x1b   : > { %v5745_v25 = vld [vmem:[%s6016_s13 + $0x24] ss:$8 sps:$4 sm:$0xff]   ;;  %v5747_v26 = vld [vmem:[%s6016_s13 + $0x1d4] ss:$8 sps:$4 sm:$0xff]   ;;  %v5749_v27 = vld [vmem:[%s6016_s13 + $0x20] ss:$8 sps:$4 sm:$0xff]  }
  0x1c   : > { %970 = vmatpush1.bf16.msra.mxu0 %v5719_v3  ;;  %4355 = vmatpush1.bf16.msra.mxu1 %v5719_v3  ;;  %v5750_v28 = vld [vmem:[%s6016_s13 + $0x1d0] ss:$8 sps:$4 sm:$0xff]   ;;  %v5751_v29 = vld [vmem:[%s6016_s13 + $0x34] ss:$8 sps:$4 sm:$0xff]   ;;  %v5754_v30 = vld [vmem:[%s6016_s13 + $0x1e4] ss:$8 sps:$4 sm:$0xff]  }
  0x1d   : > { %971 = vmatprep.subr.bf16.mxu0 %v5909_v0  ;;  %4340 = vmatprep.subr.bf16.mxu1 %v5909_v0  ;;  %v5753_v31 = vld [vmem:[%s6016_s13 + $0x30] ss:$8 sps:$4 sm:$0xff]   ;;  %v5756_v32 = vld [vmem:[%s6016_s13 + $0x1e0] ss:$8 sps:$4 sm:$0xff]   ;;  %v5757_v33 = vld [vmem:[%s6016_s13 + $0x44] ss:$8 sps:$4 sm:$0xff]  }
  0x1e   : > { %v5760_v34 = vld [vmem:[%s6016_s13 + $0x1f4] ss:$8 sps:$4 sm:$0xff]   ;;  %v5759_v35 = vld [vmem:[%s6016_s13 + $0x40] ss:$8 sps:$4 sm:$0xff]   ;;  %v5762_v36 = vld [vmem:[%s6016_s13 + $0x1f0] ss:$8 sps:$4 sm:$0xff]  }
  0x1f   : > { %v5763_v37 = vld [vmem:[%s6016_s13 + $0x54] ss:$8 sps:$4 sm:$0xff]   ;;  %v5766_v38 = vld [vmem:[%s6016_s13 + $0x204] ss:$8 sps:$4 sm:$0xff]   ;;  %v5765_v39 = vld [vmem:[%s6016_s13 + $0x50] ss:$8 sps:$4 sm:$0xff]  }
  0x20   : > { %972 = vmatpush1.bf16.msra.mxu0 %v5720_v4  ;;  %4356 = vmatpush1.bf16.msra.mxu1 %v5720_v4  ;;  %v5768_v40 = vld [vmem:[%s6016_s13 + $0x200] ss:$8 sps:$4 sm:$0xff]   ;;  %v5769_v41 = vld [vmem:[%s6016_s13 + $0x64] ss:$8 sps:$4 sm:$0xff]   ;;  %v5775_v42 = vld [vmem:[%s6016_s13 + $0x214] ss:$8 sps:$4 sm:$0xff]  }
  0x21   : > { %973 = vmatprep.subr.bf16.mxu0 %v5909_v0  ;;  %4341 = vmatprep.subr.bf16.mxu1 %v5909_v0  ;;  %v5771_v43 = vld [vmem:[%s6016_s13 + $0x60] ss:$8 sps:$4 sm:$0xff]   ;;  %v5777_v44 = vld [vmem:[%s6016_s13 + $0x210] ss:$8 sps:$4 sm:$0xff]   ;;  %v5772_v45 = vld [vmem:[%s6016_s13 + $0x74] ss:$8 sps:$4 sm:$0xff]  }
  0x22   : > { %v5784_v46 = vld [vmem:[%s6016_s13 + $0x224] ss:$8 sps:$4 sm:$0xff]   ;;  %v5774_v47 = vld [vmem:[%s6016_s13 + $0x70] ss:$8 sps:$4 sm:$0xff]   ;;  %v5786_v48 = vld [vmem:[%s6016_s13 + $0x220] ss:$8 sps:$4 sm:$0xff]  }
  0x23   : > { %v5778_v49 = vld [vmem:[%s6016_s13 + $0x84] ss:$8 sps:$4 sm:$0xff]   ;;  %v5799_v50 = vld [vmem:[%s6016_s13 + $0x234] ss:$8 sps:$4 sm:$0xff]   ;;  %v5780_v51 = vld [vmem:[%s6016_s13 + $0x80] ss:$8 sps:$4 sm:$0xff]  }
  0x24   : > { %974 = vmatpush1.bf16.msra.mxu0 %v5721_v5  ;;  %4357 = vmatpush1.bf16.msra.mxu1 %v5721_v5  ;;  %v5801_v52 = vld [vmem:[%s6016_s13 + $0x230] ss:$8 sps:$4 sm:$0xff]   ;;  %v5781_v53 = vld [vmem:[%s6016_s13 + $0x94] ss:$8 sps:$4 sm:$0xff]   ;;  %v5805_v54 = vld [vmem:[%s6016_s13 + $0x244] ss:$8 sps:$4 sm:$0xff]  }
  0x25   : > { %975 = vmatprep.subr.bf16.mxu0 %v5909_v0  ;;  %4342 = vmatprep.subr.bf16.mxu1 %v5909_v0  ;;  %v5783_v55 = vld [vmem:[%s6016_s13 + $0x90] ss:$8 sps:$4 sm:$0xff]   ;;  %v5807_v56 = vld [vmem:[%s6016_s13 + $0x240] ss:$8 sps:$4 sm:$0xff]   ;;  %v5787_v57 = vld [vmem:[%s6016_s13 + $0xa4] ss:$8 sps:$4 sm:$0xff]  }
  0x26   : > { %v5811_v58 = vld [vmem:[%s6016_s13 + $0x254] ss:$8 sps:$4 sm:$0xff]   ;;  %v5789_v59 = vld [vmem:[%s6016_s13 + $0xa0] ss:$8 sps:$4 sm:$0xff]   ;;  %v5813_v60 = vld [vmem:[%s6016_s13 + $0x250] ss:$8 sps:$4 sm:$0xff]  }
  0x27   : > { %v5790_v61 = vld [vmem:[%s6016_s13 + $0xb4] ss:$8 sps:$4 sm:$0xff]   ;;  %v5820_v62 = vld [vmem:[%s6016_s13 + $0x264] ss:$8 sps:$4 sm:$0xff]   ;;  %v5792_v63 = vld [vmem:[%s6016_s13 + $0xb0] ss:$8 sps:$4 sm:$0xff]  }
  0x28   : > { %976 = vmatpush1.bf16.msra.mxu0 %v5722_v7  ;;  %4358 = vmatpush1.bf16.msra.mxu1 %v5722_v7  ;;  %v5793_v1 = vld [vmem:[%s6016_s13 + $0xc4] ss:$8 sps:$4 sm:$0xff]   ;;  %v5829_v2 = vld [vmem:[%s6016_s13 + $0x274] ss:$8 sps:$4 sm:$0xff]   ;;  %v5795_v3 = vld [vmem:[%s6016_s13 + $0xc0] ss:$8 sps:$4 sm:$0xff]  }
  0x29   : > { %977 = vmatprep.subr.bf16.mxu0 %v5909_v0  ;;  %4343 = vmatprep.subr.bf16.mxu1 %v5909_v0  ;;  %v5831_v4 = vld [vmem:[%s6016_s13 + $0x270] ss:$8 sps:$4 sm:$0xff]   ;;  %v5796_v5 = vld [vmem:[%s6016_s13 + $0xd4] ss:$8 sps:$4 sm:$0xff]   ;;  %v5844_v6 = vld [vmem:[%s6016_s13 + $0x284] ss:$8 sps:$4 sm:$0xff]  }
  0x2a   : > { %v5798_v7 = vld [vmem:[%s6016_s13 + $0xd0] ss:$8 sps:$4 sm:$0xff]   ;;  %v5846_v8 = vld [vmem:[%s6016_s13 + $0x280] ss:$8 sps:$4 sm:$0xff]  }
  0x2c   : > { %978 = vmatpush1.bf16.msra.mxu0 %v5723_v9  ;;  %4359 = vmatpush1.bf16.msra.mxu1 %v5723_v9  ;;  %v5802_v9 = vld [vmem:[%s6016_s13 + $0xe4] ss:$8 sps:$4 sm:$0xff]  }
  0x2d   : > { %979 = vmatprep.subr.bf16.mxu0 %v5909_v0  ;;  %4344 = vmatprep.subr.bf16.mxu1 %v5909_v0 }
  0x30   : > { %980 = vmatpush1.bf16.msra.mxu0 %v5724_v10  ;;  %4360 = vmatpush1.bf16.msra.mxu1 %v5724_v10  ;;  %v5850_v10 = vld [vmem:[%s6016_s13 + $0x294] ss:$8 sps:$4 sm:$0xff]  }
  0x31   : > { %981 = vmatprep.subr.bf16.mxu0 %v5909_v0  ;;  %4345 = vmatprep.subr.bf16.mxu1 %v5909_v0 }
  0x34   : > { %982 = vmatpush2.bf16.msra.mxu0 %v5725_v11  ;;  %4361 = vmatpush2.bf16.msra.mxu1 %v5725_v11  ;;  %v5804_v11 = vld [vmem:[%s6016_s13 + $0xe0] ss:$8 sps:$4 sm:$0xff]  }
  0x35   : > { %983 = vmatprep.subr.bf16.mxu0 %v5909_v0  ;;  %4346 = vmatprep.subr.bf16.mxu1 %v5909_v0 }
  0x38   : > { %984 = vmatpush2.bf16.msra.mxu0 %v5726_v12  ;;  %4362 = vmatpush2.bf16.msra.mxu1 %v5726_v12  ;;  %v5852_v12 = vld [vmem:[%s6016_s13 + $0x290] ss:$8 sps:$4 sm:$0xff]  }
  0x39   : > { %985 = vmatprep.subr.bf16.mxu0 %v5909_v0  ;;  %4347 = vmatprep.subr.bf16.mxu1 %v5909_v0 }
  0x3c   : > { %986 = vmatpush2.bf16.msra.mxu0 %v5727_v13  ;;  %4363 = vmatpush2.bf16.msra.mxu1 %v5727_v13  ;;  %v5808_v13 = vld [vmem:[%s6016_s13 + $0xf4] ss:$8 sps:$4 sm:$0xff]  }
  0x3d   : > { %987 = vmatprep.subr.bf16.mxu0 %v5909_v0  ;;  %4348 = vmatprep.subr.bf16.mxu1 %v5909_v0 }
  0x40   : > { %988 = vmatpush2.bf16.msra.mxu0 %v5728_v14  ;;  %4364 = vmatpush2.bf16.msra.mxu1 %v5728_v14  ;;  %v5856_v14 = vld [vmem:[%s6016_s13 + $0x2a4] ss:$8 sps:$4 sm:$0xff]  }
  0x41   : > { %989 = vmatprep.subr.bf16.mxu0 %v5909_v0  ;;  %4349 = vmatprep.subr.bf16.mxu1 %v5909_v0 }
  0x44   : > { %990 = vmatpush2.bf16.msra.mxu0 %v5729_v15  ;;  %4365 = vmatpush2.bf16.msra.mxu1 %v5729_v15  ;;  %v5810_v15 = vld [vmem:[%s6016_s13 + $0xf0] ss:$8 sps:$4 sm:$0xff]  }
  0x45   : > { %991 = vmatprep.subr.bf16.mxu0 %v5909_v0  ;;  %4350 = vmatprep.subr.bf16.mxu1 %v5909_v0 }
  0x48   : > { %992 = vmatpush2.bf16.msra.mxu0 %v5730_v16  ;;  %4366 = vmatpush2.bf16.msra.mxu1 %v5730_v16  ;;  %v5858_v16 = vld [vmem:[%s6016_s13 + $0x2a0] ss:$8 sps:$4 sm:$0xff]  }
  0x49   : > { %993 = vmatprep.subr.bf16.mxu0 %v5909_v0  ;;  %4351 = vmatprep.subr.bf16.mxu1 %v5909_v0 }
  0x4c   : > { %994 = vmatpush2.bf16.msra.mxu0 %v5731_v17  ;;  %4367 = vmatpush2.bf16.msra.mxu1 %v5731_v17  ;;  %v5814_v17 = vld [vmem:[%s6016_s13 + $0x104] ss:$8 sps:$4 sm:$0xff]  }
  0x4d   : > { %995 = vmatprep.subr.bf16.mxu0 %v5909_v0  ;;  %4352 = vmatprep.subr.bf16.mxu1 %v5909_v0  ;;  %v5822_v0 = vld [vmem:[%s6016_s13 + $0x260] ss:$8 sps:$4 sm:$0xff]  }
  0x50   : > { %996 = vmatpush2.bf16.msra.mxu0 %v5732_v18  ;;  %4368 = vmatpush2.bf16.msra.mxu1 %v5732_v18  ;;  %v5862_v18 = vld [vmem:[%s6016_s13 + $0x2b4] ss:$8 sps:$4 sm:$0xff]  }
  0x53   : > { %998 = vmatmul.mubr.bf16.vlgmr.msra.gmra.mxu0 %v5733_v19  ;;  %1214 = vmatmul.mubr.bf16.vlgmr.msra.gmra.mxu1 %v5736_v20  ;;  %v5816_v19 = vld [vmem:[%s6016_s13 + $0x100] ss:$8 sps:$4 sm:$0xff]   ;;  %v5864_v20 = vld [vmem:[%s6016_s13 + $0x2b0] ss:$8 sps:$4 sm:$0xff]  }
  0x54   : > { %1005 = vmatprep.mubr.bf16.mxu0 %v5739_v21  ;;  %1221 = vmatprep.mubr.bf16.mxu1 %v5741_v22  ;;  %v5817_v21 = vld [vmem:[%s6016_s13 + $0x114] ss:$8 sps:$4 sm:$0xff]   ;;  %v5819_v22 = vld [vmem:[%s6016_s13 + $0x110] ss:$8 sps:$4 sm:$0xff]  }
  0x5b   : > { %1006 = vmatmul.mubr.bf16.gmra.mxu0 %v5743_v23  ;;  %1222 = vmatmul.mubr.bf16.gmra.mxu1 %v5744_v24  ;;  %v5823_v23 = vld [vmem:[%s6016_s13 + $0x124] ss:$8 sps:$4 sm:$0xff]   ;;  %v5825_v24 = vld [vmem:[%s6016_s13 + $0x120] ss:$8 sps:$4 sm:$0xff]  }
  0x5c   : > { %1013 = vmatprep.mubr.bf16.mxu0 %v5745_v25  ;;  %1229 = vmatprep.mubr.bf16.mxu1 %v5747_v26  ;;  %v5826_v25 = vld [vmem:[%s6016_s13 + $0x134] ss:$8 sps:$4 sm:$0xff]   ;;  %v5828_v26 = vld [vmem:[%s6016_s13 + $0x130] ss:$8 sps:$4 sm:$0xff]  }
  0x63   : > { %1014 = vmatmul.mubr.bf16.gmra.mxu0 %v5749_v27  ;;  %1230 = vmatmul.mubr.bf16.gmra.mxu1 %v5750_v28  ;;  %v5832_v27 = vld [vmem:[%s6016_s13 + $0x144] ss:$8 sps:$4 sm:$0xff]   ;;  %v5834_v28 = vld [vmem:[%s6016_s13 + $0x140] ss:$8 sps:$4 sm:$0xff]  }
  0x64   : > { %1021 = vmatprep.mubr.bf16.mxu0 %v5751_v29  ;;  %1237 = vmatprep.mubr.bf16.mxu1 %v5754_v30  ;;  %v5835_v29 = vld [vmem:[%s6016_s13 + $0x154] ss:$8 sps:$4 sm:$0xff]   ;;  %v5837_v30 = vld [vmem:[%s6016_s13 + $0x150] ss:$8 sps:$4 sm:$0xff]  }
  0x6b   : > { %1022 = vmatmul.mubr.bf16.gmra.mxu0 %v5753_v31  ;;  %1238 = vmatmul.mubr.bf16.gmra.mxu1 %v5756_v32  ;;  %v5838_v31 = vld [vmem:[%s6016_s13 + $0x164] ss:$8 sps:$4 sm:$0xff]   ;;  %v5840_v32 = vld [vmem:[%s6016_s13 + $0x160] ss:$8 sps:$4 sm:$0xff]  }
  0x6c   : > { %1029 = vmatprep.mubr.bf16.mxu0 %v5757_v33  ;;  %1245 = vmatprep.mubr.bf16.mxu1 %v5760_v34  ;;  %v5841_v33 = vld [vmem:[%s6016_s13 + $0x174] ss:$8 sps:$4 sm:$0xff]   ;;  %v5843_v34 = vld [vmem:[%s6016_s13 + $0x170] ss:$8 sps:$4 sm:$0xff]  }
  0x73   : > { %1030 = vmatmul.mubr.bf16.gmra.mxu0 %v5759_v35  ;;  %1246 = vmatmul.mubr.bf16.gmra.mxu1 %v5762_v36  ;;  %v5847_v35 = vld [vmem:[%s6016_s13 + $0x184] ss:$8 sps:$4 sm:$0xff]   ;;  %v5849_v36 = vld [vmem:[%s6016_s13 + $0x180] ss:$8 sps:$4 sm:$0xff]  }
  0x74   : > { %1037 = vmatprep.mubr.bf16.mxu0 %v5763_v37  ;;  %1253 = vmatprep.mubr.bf16.mxu1 %v5766_v38  ;;  %v5853_v37 = vld [vmem:[%s6016_s13 + $0x194] ss:$8 sps:$4 sm:$0xff]  }
  0x7b   : > { %1038 = vmatmul.mubr.bf16.gmra.mxu0 %v5765_v39  ;;  %1254 = vmatmul.mubr.bf16.gmra.mxu1 %v5768_v40 }
  0x7c   : > { %1045 = vmatprep.mubr.bf16.mxu0 %v5769_v41  ;;  %1261 = vmatprep.mubr.bf16.mxu1 %v5775_v42 }
  0x83   : > { %1046 = vmatmul.mubr.bf16.gmra.mxu0 %v5771_v43  ;;  %1262 = vmatmul.mubr.bf16.gmra.mxu1 %v5777_v44  ;;  %v5855_v44 = vld [vmem:[%s6016_s13 + $0x190] ss:$8 sps:$4 sm:$0xff]  }
  0x84   : > { %1053 = vmatprep.mubr.bf16.mxu0 %v5772_v45  ;;  %1269 = vmatprep.mubr.bf16.mxu1 %v5784_v46  ;;  %v5859_v45 = vld [vmem:[%s6016_s13 + $0x1a4] ss:$8 sps:$4 sm:$0xff]  }
  0x8b   : > { %1054 = vmatmul.mubr.bf16.gmra.mxu0 %v5774_v47  ;;  %1270 = vmatmul.mubr.bf16.gmra.mxu1 %v5786_v48 }
  0x8c   : > { %1061 = vmatprep.mubr.bf16.mxu0 %v5778_v49  ;;  %1277 = vmatprep.mubr.bf16.mxu1 %v5799_v50 }
  0x93   : > { %1062 = vmatmul.mubr.bf16.gmra.mxu0 %v5780_v51  ;;  %1278 = vmatmul.mubr.bf16.gmra.mxu1 %v5801_v52 }
  0x94   : > { %1069 = vmatprep.mubr.bf16.mxu0 %v5781_v53  ;;  %1285 = vmatprep.mubr.bf16.mxu1 %v5805_v54 }
  0x9b   : > { %1070 = vmatmul.mubr.bf16.gmra.mxu0 %v5783_v55  ;;  %1286 = vmatmul.mubr.bf16.gmra.mxu1 %v5807_v56 }
  0x9c   : > { %1077 = vmatprep.mubr.bf16.mxu0 %v5787_v57  ;;  %1293 = vmatprep.mubr.bf16.mxu1 %v5811_v58 }
  0xa3   : > { %1078 = vmatmul.mubr.bf16.gmra.mxu0 %v5789_v59  ;;  %1294 = vmatmul.mubr.bf16.gmra.mxu1 %v5813_v60 }
  0xa4   : > { %1085 = vmatprep.mubr.bf16.mxu0 %v5790_v61  ;;  %1301 = vmatprep.mubr.bf16.mxu1 %v5820_v62  ;;  %v5861_v62 = vld [vmem:[%s6016_s13 + $0x1a0] ss:$8 sps:$4 sm:$0xff]  }
  0xab   : > { %1086 = vmatmul.mubr.bf16.gmra.mxu0 %v5792_v63  ;;  %1302 = vmatmul.mubr.bf16.gmra.mxu1 %v5822_v0 }
  0xac   : > { %1093 = vmatprep.mubr.bf16.mxu0 %v5793_v1  ;;  %1309 = vmatprep.mubr.bf16.mxu1 %v5829_v2 }
  0xb3   : > { %1094 = vmatmul.mubr.bf16.gmra.mxu0 %v5795_v3  ;;  %1310 = vmatmul.mubr.bf16.gmra.mxu1 %v5831_v4 }
  0xb4   : > { %1101 = vmatprep.mubr.bf16.mxu0 %v5796_v5  ;;  %1317 = vmatprep.mubr.bf16.mxu1 %v5844_v6 }
  0xbb   : > { %1102 = vmatmul.mubr.bf16.gmra.mxu0 %v5798_v7  ;;  %1318 = vmatmul.mubr.bf16.gmra.mxu1 %v5846_v8 }
  0xbc   : > { %1109 = vmatprep.mubr.bf16.mxu0 %v5802_v9  ;;  %1325 = vmatprep.mubr.bf16.mxu1 %v5850_v10 }
  0xc3   : > { %1110 = vmatmul.mubr.bf16.gmra.mxu0 %v5804_v11  ;;  %1326 = vmatmul.mubr.bf16.gmra.mxu1 %v5852_v12 }
  0xc4   : > { %1117 = vmatprep.mubr.bf16.mxu0 %v5808_v13  ;;  %1333 = vmatprep.mubr.bf16.mxu1 %v5856_v14 }
  0xcb   : > { %1118 = vmatmul.mubr.bf16.gmra.mxu0 %v5810_v15  ;;  %1334 = vmatmul.mubr.bf16.gmra.mxu1 %v5858_v16 }
  0xcc   : > { %1125 = vmatprep.mubr.bf16.mxu0 %v5814_v17  ;;  %1341 = vmatprep.mubr.bf16.mxu1 %v5862_v18 }
  0xd3   : > { %1126 = vmatmul.mubr.bf16.gmra.mxu0 %v5816_v19  ;;  %1342 = vmatmul.mubr.bf16.gmra.mxu1 %v5864_v20 }
  0xd4   : > { %1133 = vmatprep.mubr.bf16.mxu0 %v5817_v21 }
  0xdb   : > { %1134 = vmatmul.mubr.bf16.gmra.mxu0 %v5819_v22 }
  0xdc   : > { %1141 = vmatprep.mubr.bf16.mxu0 %v5823_v23 }
  0xe3   : > { %1142 = vmatmul.mubr.bf16.gmra.mxu0 %v5825_v24 }
  0xe4   : > { %1149 = vmatprep.mubr.bf16.mxu0 %v5826_v25 }
  0xeb   : > { %1150 = vmatmul.mubr.bf16.gmra.mxu0 %v5828_v26 }
  0xec   : > { %1157 = vmatprep.mubr.bf16.mxu0 %v5832_v27 }
  0xf3   : > { %1158 = vmatmul.mubr.bf16.gmra.mxu0 %v5834_v28 }
  0xf4   : > { %1165 = vmatprep.mubr.bf16.mxu0 %v5835_v29 }
  0xfb   : > { %1166 = vmatmul.mubr.bf16.gmra.mxu0 %v5837_v30 }
  0xfc   : > { %1173 = vmatprep.mubr.bf16.mxu0 %v5838_v31 }
 0x103   : > { %1174 = vmatmul.mubr.bf16.gmra.mxu0 %v5840_v32 }
 0x104   : > { %1181 = vmatprep.mubr.bf16.mxu0 %v5841_v33 }
 0x10b   : > { %1182 = vmatmul.mubr.bf16.gmra.mxu0 %v5843_v34 }
 0x10c   : > { %1189 = vmatprep.mubr.bf16.mxu0 %v5847_v35 }
 0x113   : > { %v6138_v38 = vpop.f32.mrf.mxu0  ;;  %1190 = vmatmul.mubr.bf16.gmra.mxu0 %v5849_v36  ;;  %v6140_v39 = vpop.f32.mrf.mxu1 }
 0x114   : > { %9545 = vst [vmem:[#allocation3_spill] sm:$0xff] %v6138_v38  ;;  %9546 = vst [vmem:[#allocation4_spill] sm:$0xff] %v6140_v39  ;;  %1197 = vmatprep.mubr.bf16.mxu0 %v5853_v37  ;;  %v1439_v51 = vrot.slane %v6138_v38, 1  ;;  %v1584_v3 = vrot.slane %v6138_v38, 2 }
 0x115   : > { %v1001_v40 = vpop.f32.mrf.mxu0  ;;  %v1217_v41 = vpop.f32.mrf.mxu1 }
 0x117   : > { %v6142_v42 = vpop.f32.mrf.mxu0  ;;  %v6144_v43 = vpop.f32.mrf.mxu1 }
 0x118   : > { %9547 = vst [vmem:[#allocation5_spill] sm:$0xff] %v6142_v42  ;;  %9548 = vst [vmem:[#allocation6_spill] sm:$0xff] %v6144_v43  ;;  %v1440_v48 = vrot.slane %v6142_v42, 1  ;;  %v1585_v63 = vrot.slane %v6142_v42, 2  ;;  %v1538_v4 = vrot.slane %v6144_v43, 1  ;;  %v1683_v11 = vrot.slane %v6144_v43, 2 }
 0x119   : > { %v1004_v46 = vpop.f32.mrf.mxu0  ;;  %v1220_v47 = vpop.f32.mrf.mxu1 }
 0x11a   : > { %v1441_v57 = vsel %vm1438_vm0, %v1439_v51, %v1440_v48  ;;  %v1586_v15 = vsel %vm1583_vm1, %v1584_v3, %v1585_v63 }
 0x11b   : > { %v6149_v49 = vpop.f32.mrf.mxu0  ;;  %1198 = vmatmul.mubr.bf16.gmra.mxu0 %v5855_v44  ;;  %v6151_v50 = vpop.f32.mrf.mxu1 }
 0x11c   : > { %9549 = vst [vmem:[#allocation7_spill] sm:$0xff] %v6149_v49  ;;  %9550 = vst [vmem:[#allocation8_spill] sm:$0xff] %v6151_v50  ;;  %v1442_v52 = vrot.slane %v6149_v49, 1  ;;  %1205 = vmatprep.mubr.bf16.mxu0 %v5859_v45  ;;  %v6157_v55 = vpack.i.bf16 %v6151_v50, %v6144_v43  ;;  %v1587_v56 = vrot.slane %v6149_v49, 2  ;;  %v1539_v0 = vrot.slane %v6151_v50, 1 }
 0x11d   : > { %v1009_v53 = vpop.f32.mrf.mxu0  ;;  %v1225_v54 = vpop.f32.mrf.mxu1  ;;  %v1684_v7 = vrot.slane %v6151_v50, 2 }
 0x11e   : > { %9551 = vst [vmem:[#allocation9_spill] sm:$0xff] %v6157_v55  ;;  %v1443_v58 = vsel %vm1438_vm0, %v1440_v48, %v1442_v52  ;;  %4436 = vrot.lane.b32.xlu0 %v6157_v55, %s5910_s14  ;;  %v1588_v9 = vsel %vm1583_vm1, %v1585_v63, %v1587_v56  ;;  %v1540_v16 = vsel %vm1438_vm0, %v1538_v4, %v1539_v0 }
 0x11f   : > { %v6166_v59 = vpop.f32.mrf.mxu0  ;;  %v6168_v60 = vpop.f32.mrf.mxu1  ;;  %v4440_v61 = vpack.i.bf16 %v1443_v58, %v1441_v57  ;;  %v4445_v21 = vpack.i.bf16 %v1588_v9, %v1586_v15  ;;  %v1685_v26 = vsel %vm1583_vm1, %v1683_v11, %v1684_v7 }
 0x120   : > { %9552 = vst [vmem:[#allocation10_spill] sm:$0xff] %v6166_v59  ;;  %9553 = vst [vmem:[#allocation11_spill] sm:$0xff] %v6168_v60  ;;  %v1541_v1 = vrot.slane %v6168_v60, 1  ;;  %v1686_v2 = vrot.slane %v6168_v60, 2  ;;  %v1589_v8 = vrot.slane %v6166_v59, 2  ;;  %v1444_v63 = vrot.slane %v6166_v59, 1 }
 0x121   : > { %v1012_v5 = vpop.f32.mrf.mxu0  ;;  %v1228_v6 = vpop.f32.mrf.mxu1 }
 0x122   : > { %v1542_v10 = vsel %vm1438_vm0, %v1539_v0, %v1541_v1  ;;  %4441 = vrot.lane.b32.xlu0 %v4440_v61, %s5911_s15  ;;  %v1687_v17 = vsel %vm1583_vm1, %v1684_v7, %v1686_v2  ;;  %v1590_v24 = vsel %vm1583_vm1, %v1587_v56, %v1589_v8 }
 0x123   : > { %v1015_v12 = vpop.f32.mrf.mxu0  ;;  %1206 = vmatmul.mubr.bf16.gmra.mxu0 %v5861_v62  ;;  %v6183_v13 = vpop.f32.mrf.mxu1  ;;  %v6192_v22 = vpack.i.bf16 %v1542_v10, %v1540_v16  ;;  %v6203_v30 = vpack.i.bf16 %v1687_v17, %v1685_v26  ;;  %v1445_v16 = vsel %vm1438_vm0, %v1442_v52, %v1444_v63 }
 0x124   : > { %9554 = vst [vmem:[#allocation12_spill] sm:$0xff] %v6183_v13  ;;  %v1591_v14 = vrot.slane %v1015_v12, 2  ;;  %v6190_v20 = vpack.i.bf16 %v6183_v13, %v6168_v60  ;;  %v1543_v23 = vrot.slane %v6183_v13, 1  ;;  %v1688_v31 = vrot.slane %v6183_v13, 2 }
 0x125   : > { %v1017_v18 = vpop.f32.mrf.mxu0  ;;  %v1233_v19 = vpop.f32.mrf.mxu1  ;;  %9556 = vst [vmem:[#allocation14_spill] sm:$0xff] %v6192_v22  ;;  %9558 = vst [vmem:[#allocation16_spill] sm:$0xff] %v6203_v30  ;;  %v1446_v56 = vrot.slane %v1015_v12, 1 }
 0x126   : > { %9555 = vst [vmem:[#allocation13_spill] sm:$0xff] %v6190_v20  ;;  %v1592_v25 = vsel %vm1583_vm1, %v1589_v8, %v1591_v14  ;;  %4471 = vrot.lane.b32.xlu1 %v6190_v20, %s5910_s14  ;;  %4446 = vrot.lane.b32.xlu0 %v4445_v21, %s5912_s16  ;;  %v1544_v36 = vsel %vm1438_vm0, %v1541_v1, %v1543_v23 }
 0x127   : > { %v6201_v27 = vpop.f32.mrf.mxu0  ;;  %v1234_v28 = vpop.f32.mrf.mxu1  ;;  %v4480_v29 = vpack.i.bf16 %v1592_v25, %v1590_v24  ;;  %v1689_v46 = vsel %vm1583_vm1, %v1686_v2, %v1688_v31  ;;  %v1447_v7 = vsel %vm1438_vm0, %v1444_v63, %v1446_v56 }
 0x128   : > { %9557 = vst [vmem:[#allocation15_spill] sm:$0xff] %v6201_v27  ;;  %v1545_v32 = vrot.slane %v1234_v28, 1  ;;  %v1690_v33 = vrot.slane %v1234_v28, 2  ;;  %v1448_v17 = vrot.slane %v6201_v27, 1  ;;  %v4475_v19 = vpack.i.bf16 %v1447_v7, %v1445_v16 }
 0x129   : > { %v1020_v34 = vpop.f32.mrf.mxu0  ;;  %v1236_v35 = vpop.f32.mrf.mxu1 }
 0x12a   : > { %v1546_v37 = vsel %vm1438_vm0, %v1543_v23, %v1545_v32  ;;  %v1691_v40 = vsel %vm1583_vm1, %v1688_v31, %v1690_v33  ;;  %4451 = vrot.lane.b32.xlu0 %v6192_v22, %s5911_s15  ;;  %4481 = vrot.lane.b32.xlu1 %v4480_v29, %s5912_s16 }
 0x12b   : > { %v6212_v41 = vpop.f32.mrf.mxu0  ;;  %v6214_v44 = vpack.i.bf16 %v1546_v37, %v1544_v36  ;;  %v6216_v45 = vpop.f32.mrf.mxu1  ;;  %v6219_v51 = vpack.i.bf16 %v1691_v40, %v1689_v46 }
 0x12c   : > { %9559 = vst [vmem:[#allocation17_spill] sm:$0xff] %v6212_v41  ;;  %9561 = vst [vmem:[#allocation19_spill] sm:$0xff] %v6216_v45  ;;  %v1547_v61 = vrot.slane %v6216_v45, 1  ;;  %v1692_v4 = vrot.slane %v6216_v45, 2  ;;  %v1449_v15 = vrot.slane %v6212_v41, 1  ;;  %v4505_v36 = vpack.i.bf16 %v6212_v41, %v6201_v27 }
 0x12d   : > { %9560 = vst [vmem:[#allocation18_spill] sm:$0xff] %v6214_v44  ;;  %v1025_v47 = vpop.f32.mrf.mxu0  ;;  %v1241_v48 = vpop.f32.mrf.mxu1  ;;  %9562 = vst [vmem:[#allocation20_spill] sm:$0xff] %v6219_v51  ;;  %v1594_v63 = vrot.slane %v6212_v41, 2 }
 0x12e   : > { %4456 = vrot.lane.b32.xlu0 %v6203_v30, %s5912_s16  ;;  %4486 = vrot.lane.b32.xlu1 %v6214_v44, %s5911_s15  ;;  %v1450_v32 = vsel %vm1438_vm0, %v1448_v17, %v1449_v15 }
 0x12f   : > { %v6225_v53 = vpop.f32.mrf.mxu0  ;;  %v6227_v54 = vpop.f32.mrf.mxu1 }
 0x130   : > { %9563 = vst [vmem:[#allocation21_spill] sm:$0xff] %v6225_v53  ;;  %9564 = vst [vmem:[#allocation22_spill] sm:$0xff] %v6227_v54  ;;  %v1548_v62 = vrot.slane %v6227_v54, 1  ;;  %v1451_v3 = vrot.slane %v6225_v53, 1  ;;  %v1693_v8 = vrot.slane %v6227_v54, 2  ;;  %v1596_v47 = vrot.slane %v6225_v53, 2 }
 0x131   : > { %v1028_v57 = vpop.f32.mrf.mxu0  ;;  %v1244_v58 = vpop.f32.mrf.mxu1 }
 0x132   : > { %4461 = vrot.lane.b32.xlu0 %v6192_v22, %s5913_s17  ;;  %4491 = vrot.lane.b32.xlu1 %v6219_v51, %s5912_s16  ;;  %v1549_v10 = vsel %vm1438_vm0, %v1547_v61, %v1548_v62  ;;  %v1452_v25 = vsel %vm1438_vm0, %v1449_v15, %v1451_v3  ;;  %v1694_v26 = vsel %vm1583_vm1, %v1692_v4, %v1693_v8  ;;  %v1593_v4 = vrot.slane %v6201_v27, 2 }
 0x133   : > { %v6236_v0 = vpop.f32.mrf.mxu0  ;;  %v6238_v1 = vpop.f32.mrf.mxu1  ;;  %v4515_v37 = vpack.i.bf16 %v1452_v25, %v1450_v32 }
 0x134   : > { %9565 = vst [vmem:[#allocation23_spill] sm:$0xff] %v6236_v0  ;;  %9566 = vst [vmem:[#allocation24_spill] sm:$0xff] %v6238_v1  ;;  %v1550_v2 = vrot.slane %v6238_v1, 1  ;;  %v1695_v9 = vrot.slane %v6238_v1, 2  ;;  %v1453_v17 = vrot.slane %v6236_v0, 1  ;;  %v1598_v32 = vrot.slane %v6236_v0, 2 }
 0x135   : > { %v1033_v5 = vpop.f32.mrf.mxu0  ;;  %v1249_v6 = vpop.f32.mrf.mxu1 }
 0x136   : > { %v1551_v11 = vsel %vm1438_vm0, %v1548_v62, %v1550_v2  ;;  %4466 = vrot.lane.b32.xlu0 %v6203_v30, %s5914_s18  ;;  %4496 = vrot.lane.b32.xlu1 %v6214_v44, %s5913_s17  ;;  %v1696_v28 = vsel %vm1583_vm1, %v1693_v8, %v1695_v9  ;;  %v4535_v6 = vpack.i.bf16 %v6236_v0, %v6225_v53 }
 0x137   : > { %v6252_v12 = vpop.f32.mrf.mxu0  ;;  %v6254_v14 = vpop.f32.mrf.mxu1  ;;  %v6261_v23 = vpack.i.bf16 %v1551_v11, %v1549_v10  ;;  %v6278_v46 = vpack.i.bf16 %v1696_v28, %v1694_v26  ;;  %v1597_v10 = vsel %vm1583_vm1, %v1594_v63, %v1596_v47 }
 0x138   : > { %9567 = vst [vmem:[#allocation25_spill] sm:$0xff] %v6254_v14  ;;  %v1552_v24 = vrot.slane %v6254_v14, 1  ;;  %v1697_v29 = vrot.slane %v6254_v14, 2  ;;  %v1455_v8 = vrot.slane %v6252_v12, 1  ;;  %v1600_v26 = vrot.slane %v6252_v12, 2 }
 0x139   : > { %v1036_v18 = vpop.f32.mrf.mxu0  ;;  %v1252_v21 = vpop.f32.mrf.mxu1  ;;  %9568 = vst [vmem:[#allocation26_spill] sm:$0xff] %v6261_v23  ;;  %9570 = vst [vmem:[#allocation28_spill] sm:$0xff] %v6278_v46 }
 0x13a   : > { %4501 = vrot.lane.b32.xlu1 %v6219_v51, %s5914_s18  ;;  %4476 = vrot.lane.b32.xlu0 %v4475_v19, %s5911_s15  ;;  %v1553_v48 = vsel %vm1438_vm0, %v1550_v2, %v1552_v24  ;;  %v1698_v61 = vsel %vm1583_vm1, %v1695_v9, %v1697_v29  ;;  %v6295_v2 = vpack.i.bf16 %v6227_v54, %v6216_v45  ;;  %v5867_v45 = vld [vmem:[%s6016_s13 + $0x2c0] ss:$8 sps:$4 sm:$0xff]  }
 0x13b   : > { %v6272_v52 = vpop.f32.mrf.mxu0  ;;  %v1255_v31 = vpop.f32.mrf.mxu1  ;;  %v1595_v18 = vsel %vm1583_vm1, %v1593_v4, %v1594_v63  ;;  %v1456_v28 = vsel %vm1438_vm0, %v1453_v17, %v1455_v8 }
 0x13c   : > { %9569 = vst [vmem:[#allocation27_spill] sm:$0xff] %v6272_v52  ;;  %v1554_v33 = vrot.slane %v1255_v31, 1  ;;  %v1699_v34 = vrot.slane %v1255_v31, 2  ;;  %9573 = vst [vmem:[#allocation31_spill] sm:$0xff] %v6295_v2  ;;  %v4520_v21 = vpack.i.bf16 %v1597_v10, %v1595_v18 }
 0x13d   : > { %v1041_v35 = vpop.f32.mrf.mxu0  ;;  %v1257_v40 = vpop.f32.mrf.mxu1 }
 0x13e   : > { %4506 = vrot.lane.b32.xlu0 %v4505_v36, %s5910_s14  ;;  %4516 = vrot.lane.b32.xlu1 %v4515_v37, %s5911_s15  ;;  %v1555_v58 = vsel %vm1438_vm0, %v1552_v24, %v1554_v33  ;;  %v1700_v62 = vsel %vm1583_vm1, %v1697_v29, %v1699_v34  ;;  %v6316_v24 = vpack.i.bf16 %v6254_v14, %v6238_v1 }
 0x13f   : > { %v6284_v56 = vpop.f32.mrf.mxu0  ;;  %v6286_v57 = vpop.f32.mrf.mxu1  ;;  %v6301_v9 = vpack.i.bf16 %v1555_v58, %v1553_v48  ;;  %v6303_v11 = vpack.i.bf16 %v1700_v62, %v1698_v61  ;;  %v1454_v33 = vsel %vm1438_vm0, %v1451_v3, %v1453_v17  ;;  %v1601_v40 = vsel %vm1583_vm1, %v1598_v32, %v1600_v26 }
 0x140   : > { %9571 = vst [vmem:[#allocation29_spill] sm:$0xff] %v6284_v56  ;;  %9572 = vst [vmem:[#allocation30_spill] sm:$0xff] %v6286_v57  ;;  %v4565_v35 = vpack.i.bf16 %v1456_v28, %v1454_v33  ;;  %v1556_v36 = vrot.slane %v6286_v57, 1  ;;  %v1701_v62 = vrot.slane %v6286_v57, 2 }
 0x141   : > { %v1044_v5 = vpop.f32.mrf.mxu0  ;;  %v1260_v7 = vpop.f32.mrf.mxu1  ;;  %9574 = vst [vmem:[#allocation32_spill] sm:$0xff] %v6301_v9  ;;  %9575 = vst [vmem:[#allocation33_spill] sm:$0xff] %v6303_v11 }
 0x142   : > { %4511 = vrot.lane.b32.xlu0 %v6295_v2, %s5910_s14  ;;  %4536 = vrot.lane.b32.xlu1 %v4535_v6, %s5910_s14  ;;  %9578 = vst [vmem:[#allocation36_spill] sm:$0xff] %v6316_v24  ;;  %v1599_v5 = vsel %vm1583_vm1, %v1596_v47, %v1598_v32 }
 0x143   : > { %v6308_v15 = vpop.f32.mrf.mxu0  ;;  %v6310_v16 = vpop.f32.mrf.mxu1  ;;  %v4570_v7 = vpack.i.bf16 %v1601_v40, %v1599_v5 }
 0x144   : > { %9576 = vst [vmem:[#allocation34_spill] sm:$0xff] %v6308_v15  ;;  %9577 = vst [vmem:[#allocation35_spill] sm:$0xff] %v6310_v16  ;;  %v1557_v48 = vrot.slane %v6310_v16, 1  ;;  %v1702_v3 = vrot.slane %v6310_v16, 2 }
 0x145   : > { %v1049_v19 = vpop.f32.mrf.mxu0  ;;  %v1265_v25 = vpop.f32.mrf.mxu1 }
 0x146   : > { %4521 = vrot.lane.b32.xlu0 %v4520_v21, %s5912_s16  ;;  %4561 = vrot.lane.b32.xlu1 %v6316_v24, %s5910_s14  ;;  %v1703_v47 = vsel %vm1583_vm1, %v1701_v62, %v1702_v3  ;;  %v1460_v24 = vrot.slane %v6308_v15, 1 }
 0x147   : > { %v6323_v29 = vpop.f32.mrf.mxu0  ;;  %v6325_v31 = vpop.f32.mrf.mxu1 }
 0x148   : > { %9579 = vst [vmem:[#allocation37_spill] sm:$0xff] %v6323_v29  ;;  %9580 = vst [vmem:[#allocation38_spill] sm:$0xff] %v6325_v31  ;;  %v1559_v58 = vrot.slane %v6325_v31, 1  ;;  %v1704_v63 = vrot.slane %v6325_v31, 2 }
 0x149   : > { %v1052_v34 = vpop.f32.mrf.mxu0  ;;  %v1268_v12 = vpop.f32.mrf.mxu1 }
 0x14a   : > { %4526 = vrot.lane.b32.xlu0 %v4515_v37, %s5913_s17  ;;  %4566 = vrot.lane.b32.xlu1 %v4565_v35, %s5911_s15  ;;  %v1558_v37 = vsel %vm1438_vm0, %v1556_v36, %v1557_v48  ;;  %v1560_v17 = vsel %vm1438_vm0, %v1557_v48, %v1559_v58  ;;  %v1705_v26 = vsel %vm1583_vm1, %v1702_v3, %v1704_v63 }
 0x14b   : > { %v6337_v61 = vpop.f32.mrf.mxu0  ;;  %v6342_v4 = vpop.f32.mrf.mxu1  ;;  %v6355_v12 = vpack.i.bf16 %v1560_v17, %v1558_v37  ;;  %v6359_v40 = vpack.i.bf16 %v1705_v26, %v1703_v47 }
 0x14c   : > { %9581 = vst [vmem:[#allocation39_spill] sm:$0xff] %v6342_v4  ;;  %v1561_v10 = vrot.slane %v6342_v4, 1  ;;  %v1706_v19 = vrot.slane %v6342_v4, 2 }
 0x14d   : > { %v1057_v6 = vpop.f32.mrf.mxu0  ;;  %v1273_v8 = vpop.f32.mrf.mxu1  ;;  %9583 = vst [vmem:[#allocation41_spill] sm:$0xff] %v6355_v12  ;;  %9584 = vst [vmem:[#allocation42_spill] sm:$0xff] %v6359_v40 }
 0x14e   : > { %4531 = vrot.lane.b32.xlu0 %v4520_v21, %s5914_s18  ;;  %4571 = vrot.lane.b32.xlu1 %v4570_v7, %s5912_s16  ;;  %v1562_v36 = vsel %vm1438_vm0, %v1559_v58, %v1561_v10  ;;  %v1707_v3 = vsel %vm1583_vm1, %v1704_v63, %v1706_v19 }
 0x14f   : > { %v6350_v18 = vpop.f32.mrf.mxu0  ;;  %v1274_v25 = vpop.f32.mrf.mxu1 }
 0x150   : > { %9582 = vst [vmem:[#allocation40_spill] sm:$0xff] %v6350_v18  ;;  %v1563_v28 = vrot.slane %v1274_v25, 1  ;;  %v1708_v32 = vrot.slane %v1274_v25, 2 }
 0x151   : > { %v1060_v33 = vpop.f32.mrf.mxu0  ;;  %v1276_v34 = vpop.f32.mrf.mxu1 }
 0x152   : > { %v1564_v21 = vsel %vm1438_vm0, %v1561_v10, %v1563_v28  ;;  %4541 = vrot.lane.b32.xlu0 %v6261_v23, %s5911_s15  ;;  %4576 = vrot.lane.b32.xlu1 %v4565_v35, %s5913_s17  ;;  %v1709_v5 = vsel %vm1583_vm1, %v1706_v19, %v1708_v32 }
 0x153   : > { %v6364_v48 = vpop.f32.mrf.mxu0  ;;  %v6366_v62 = vpop.f32.mrf.mxu1  ;;  %v6370_v58 = vpack.i.bf16 %v1564_v21, %v1562_v36  ;;  %v6372_v10 = vpack.i.bf16 %v1709_v5, %v1707_v3  ;;  %v4605_v3 = vpack.i.bf16 %v6284_v56, %v6272_v52 }
 0x154   : > { %9585 = vst [vmem:[#allocation43_spill] sm:$0xff] %v6364_v48  ;;  %9586 = vst [vmem:[#allocation44_spill] sm:$0xff] %v6366_v62  ;;  %v1565_v28 = vrot.slane %v6366_v62, 1  ;;  %v1710_v34 = vrot.slane %v6366_v62, 2 }
 0x155   : > { %v1065_v6 = vpop.f32.mrf.mxu0  ;;  %v1281_v8 = vpop.f32.mrf.mxu1  ;;  %9587 = vst [vmem:[#allocation45_spill] sm:$0xff] %v6370_v58  ;;  %9588 = vst [vmem:[#allocation46_spill] sm:$0xff] %v6372_v10 }
 0x156   : > { %4546 = vrot.lane.b32.xlu0 %v6278_v46, %s5912_s16  ;;  %4581 = vrot.lane.b32.xlu1 %v4570_v7, %s5914_s18 }
 0x157   : > { %v6377_v35 = vpop.f32.mrf.mxu0  ;;  %v6379_v37 = vpop.f32.mrf.mxu1 }
 0x158   : > { %9589 = vst [vmem:[#allocation47_spill] sm:$0xff] %v6377_v35  ;;  %9590 = vst [vmem:[#allocation48_spill] sm:$0xff] %v6379_v37  ;;  %v1566_v32 = vrot.slane %v6379_v37, 1  ;;  %v1711_v6 = vrot.slane %v6379_v37, 2  ;;  %v9594_v30 = vrot.slane %v6377_v35, 1  ;;  %v9595_v55 = vrot.slane %v6377_v35, 2 }
 0x159   : > { %v1068_v17 = vpop.f32.mrf.mxu0  ;;  %v1284_v25 = vpop.f32.mrf.mxu1 }
 0x15a   : > { %4551 = vrot.lane.b32.xlu0 %v6261_v23, %s5913_s17  ;;  %4586 = vrot.lane.b32.xlu1 %v6301_v9, %s5911_s15  ;;  %v5865_v25 = vld [vmem:[%s6016_s13 + $0x2c4] ss:$8 sps:$4 sm:$0xff]   ;;  %v1567_v44 = vsel %vm1438_vm0, %v1565_v28, %v1566_v32  ;;  %s4065_s13 = sld [smem:[#allocation2]] }
 0x15b   : > { %v6385_v63 = vpop.f32.mrf.mxu0  ;;  %v6387_v19 = vpop.f32.mrf.mxu1  ;;  %1349 = vmatprep.mubr.bf16.mxu1 %v5865_v25  ;;  %v1712_v25 = vsel %vm1583_vm1, %v1710_v34, %v1711_v6 }
 0x15c   : > { %9591 = vst [vmem:[#allocation49_spill] sm:$0xff] %v6385_v63  ;;  %9592 = vst [vmem:[#allocation50_spill] sm:$0xff] %v6387_v19  ;;  %v1471_v47 = vrot.slane %v6385_v63, 1  ;;  %v1616_v7 = vrot.slane %v6385_v63, 2  ;;  %v1568_v36 = vrot.slane %v6387_v19, 1  ;;  %v1713_v8 = vrot.slane %v6387_v19, 2  ;;  %1350 = vmatmul.mubr.bf16.gmra.mxu1 %v5867_v45 }
 0x15d   : > { %v1073_v26 = vpop.f32.mrf.mxu0  ;;  %v1289_v33 = vpop.f32.mrf.mxu1 }
 0x15e   : > { %4556 = vrot.lane.b32.xlu0 %v6278_v46, %s5914_s18  ;;  %4591 = vrot.lane.b32.xlu1 %v6303_v11, %s5912_s16  ;;  %v1472_v22 = vsel %vm1438_vm0, %v9594_v30, %v1471_v47  ;;  %v1617_v51 = vsel %vm1583_vm1, %v9595_v55, %v1616_v7  ;;  %v1569_v46 = vsel %vm1438_vm0, %v1566_v32, %v1568_v36 }
 0x15f   : > { %v1074_v5 = vpop.f32.mrf.mxu0  ;;  %v6403_v17 = vpop.f32.mrf.mxu1 }
 0x160   : > { %9593 = vst [vmem:[#allocation51_spill] sm:$0xff] %v6403_v17  ;;  %v1473_v26 = vrot.slane %v1074_v5, 1  ;;  %v1618_v33 = vrot.slane %v1074_v5, 2  ;;  %v1570_v20 = vrot.slane %v6403_v17, 1  ;;  %v1715_v30 = vrot.slane %v6403_v17, 2 }
 0x161   : > { %v1076_v21 = vpop.f32.mrf.mxu0  ;;  %v1292_v54 = vpop.f32.mrf.mxu1 }
 0x162   : > { %v1474_v5 = vsel %vm1438_vm0, %v1471_v47, %v1473_v26  ;;  %v1619_v21 = vsel %vm1583_vm1, %v1616_v7, %v1618_v33  ;;  %v1457_v54 = vrot.slane %v6272_v52, 1  ;;  %4596 = vrot.lane.b32.xlu1 %v6301_v9, %s5913_s17  ;;  %4606 = vrot.lane.b32.xlu0 %v4605_v3, %s5910_s14  ;;  %v1714_v47 = vsel %vm1583_vm1, %v1711_v6, %v1713_v8 }
 0x163   : > { %v6424_v55 = vpop.f32.mrf.mxu0  ;;  %v1295_v28 = vpop.f32.mrf.mxu1  ;;  %v1458_v7 = vrot.slane %v6284_v56, 1  ;;  %v6430_v23 = vpack.i.bf16 %v1474_v5, %v1472_v22  ;;  %v6432_v2 = vpack.i.bf16 %v1619_v21, %v1617_v51  ;;  %v6434_v9 = vpack.i.bf16 %v1569_v46, %v1567_v44 }
 0x164   : > { %9596 = vst [vmem:[#allocation52_spill] sm:$0xff] %v6424_v55  ;;  %v1572_v32 = vrot.slane %v1295_v28, 1  ;;  %v1717_v45 = vrot.slane %v1295_v28, 2  ;;  %v1571_v1 = vsel %vm1438_vm0, %v1568_v36, %v1570_v20  ;;  %v6439_v14 = vpack.i.bf16 %v1714_v47, %v1712_v25 }
 0x165   : > { %v1081_v26 = vpop.f32.mrf.mxu0  ;;  %v1297_v33 = vpop.f32.mrf.mxu1  ;;  %9597 = vst [vmem:[#allocation53_spill] sm:$0xff] %v6434_v9  ;;  %v1716_v44 = vsel %vm1583_vm1, %v1713_v8, %v1715_v30  ;;  %v1602_v36 = vrot.slane %v6272_v52, 2  ;;  %v1459_v6 = vsel %vm1438_vm0, %v1457_v54, %v1458_v7  ;;  %v1605_v5 = vrot.slane %v6308_v15, 2 }
 0x166   : > { %v1573_v34 = vsel %vm1438_vm0, %v1570_v20, %v1572_v32  ;;  %9598 = vst [vmem:[#allocation54_spill] sm:$0xff] %v6439_v14  ;;  %4601 = vrot.lane.b32.xlu1 %v6303_v11, %s5914_s18  ;;  %4611 = vrot.lane.b32.xlu0 %v4605_v3, %s5915_s19  ;;  %v1718_v46 = vsel %vm1583_vm1, %v1715_v30, %v1717_v45  ;;  %v1603_v20 = vrot.slane %v6284_v56, 2  ;;  %v1462_v30 = vrot.slane %v6323_v29, 1 }
 0x167   : > { %v6444_v22 = vpop.f32.mrf.mxu0  ;;  %v6446_v51 = vpop.f32.mrf.mxu1  ;;  %v6456_v3 = vpack.i.bf16 %v6310_v16, %v6286_v57  ;;  %v6460_v28 = vpack.i.bf16 %v6323_v29, %v6308_v15  ;;  %v6462_v25 = vpack.i.bf16 %v1573_v34, %v1571_v1  ;;  %v1464_v47 = vrot.slane %v6337_v61, 1 }
 0x168   : > { %9599 = vst [vmem:[#allocation55_spill] sm:$0xff] %v6444_v22  ;;  %9600 = vst [vmem:[#allocation56_spill] sm:$0xff] %v6446_v51  ;;  %v1461_v54 = vsel %vm1438_vm0, %v1458_v7, %v1460_v24  ;;  %v6467_v32 = vpack.i.bf16 %v1718_v46, %v1716_v44  ;;  %v6481_v34 = vpack.i.bf16 %v6342_v4, %v6325_v31 }
 0x169   : > { %v1084_v21 = vpop.f32.mrf.mxu0  ;;  %9601 = vst [vmem:[#allocation57_spill] sm:$0xff] %v6456_v3  ;;  %v1300_v8 = vpop.f32.mrf.mxu1  ;;  %9602 = vst [vmem:[#allocation58_spill] sm:$0xff] %v6462_v25  ;;  %v6477_v33 = vpack.i.bf16 %v1461_v54, %v1459_v6  ;;  %v1604_v7 = vsel %vm1583_vm1, %v1602_v36, %v1603_v20  ;;  %v1606_v44 = vsel %vm1583_vm1, %v1603_v20, %v1605_v5 }
 0x16a   : > { %9603 = vst [vmem:[#allocation59_spill] sm:$0xff] %v6467_v32  ;;  %4616 = vrot.lane.b32.xlu0 %v6456_v3, %s5910_s14  ;;  %4651 = vrot.lane.b32.xlu1 %v6460_v28, %s5910_s14  ;;  %9606 = vst [vmem:[#allocation62_spill] sm:$0xff] %v6481_v34  ;;  %v1607_v21 = vrot.slane %v6323_v29, 2  ;;  %v1609_v8 = vrot.slane %v6337_v61, 2  ;;  %v1463_v11 = vsel %vm1438_vm0, %v1460_v24, %v1462_v30 }
 0x16b   : > { %v6473_v45 = vpop.f32.mrf.mxu0  ;;  %v6475_v26 = vpop.f32.mrf.mxu1  ;;  %v1465_v57 = vsel %vm1438_vm0, %v1462_v30, %v1464_v47 }
 0x16c   : > { %9604 = vst [vmem:[#allocation60_spill] sm:$0xff] %v6473_v45  ;;  %9605 = vst [vmem:[#allocation61_spill] sm:$0xff] %v6475_v26  ;;  %v6500_v61 = vpack.i.bf16 %v1465_v57, %v1463_v11  ;;  %v1608_v47 = vsel %vm1583_vm1, %v1605_v5, %v1607_v21  ;;  %v9316_v16 = vrot.slane %v6473_v45, 1  ;;  %v9317_v57 = vrot.slane %v6473_v45, 2 }
 0x16d   : > { %v1089_v1 = vpop.f32.mrf.mxu0  ;;  %v1305_v46 = vpop.f32.mrf.mxu1  ;;  %v1574_v5 = vrot.slane %v6446_v51, 1 }
 0x16e   : > { %4621 = vrot.lane.b32.xlu0 %v6477_v33, %s5911_s15  ;;  %4681 = vrot.lane.b32.xlu1 %v6481_v34, %s5910_s14  ;;  %v6498_v1 = vpack.i.bf16 %v1606_v44, %v1604_v7  ;;  %v1610_v46 = vsel %vm1583_vm1, %v1607_v21, %v1609_v8  ;;  %v1575_v21 = vrot.slane %v6475_v26, 1 }
 0x16f   : > { %v6493_v6 = vpop.f32.mrf.mxu0  ;;  %v6495_v36 = vpop.f32.mrf.mxu1  ;;  %v6513_v3 = vpack.i.bf16 %v1610_v46, %v1608_v47 }
 0x170   : > { %9607 = vst [vmem:[#allocation63_spill] sm:$0xff] %v6493_v6  ;;  %9608 = vst [vmem:[#allocation64_spill] sm:$0xff] %v6495_v36  ;;  %v1480_v20 = vrot.slane %v6493_v6, 1  ;;  %v1625_v30 = vrot.slane %v6493_v6, 2  ;;  %v1576_v27 = vsel %vm1438_vm0, %v1574_v5, %v1575_v21 }
 0x171   : > { %v1092_v54 = vpop.f32.mrf.mxu0  ;;  %v1308_v24 = vpop.f32.mrf.mxu1 }
 0x172   : > { %4626 = vrot.lane.b32.xlu0 %v6498_v1, %s5912_s16  ;;  %4686 = vrot.lane.b32.xlu1 %v6500_v61, %s5911_s15  ;;  %v1481_v31 = vsel %vm1438_vm0, %v9316_v16, %v1480_v20  ;;  %v1720_v16 = vrot.slane %v6475_v26, 2 }
 0x173   : > { %v1095_v54 = vpop.f32.mrf.mxu0  ;;  %v6510_v7 = vpop.f32.mrf.mxu1 }
 0x174   : > { %9609 = vst [vmem:[#allocation65_spill] sm:$0xff] %v6510_v7  ;;  %v1482_v11 = vrot.slane %v1095_v54, 1  ;;  %v1627_v44 = vrot.slane %v1095_v54, 2  ;;  %v1579_v4 = vrot.slane %v6510_v7, 1  ;;  %v1626_v54 = vsel %vm1583_vm1, %v9317_v57, %v1625_v30 }
 0x175   : > { %v1097_v24 = vpop.f32.mrf.mxu0  ;;  %v1313_v8 = vpop.f32.mrf.mxu1  ;;  %v1722_v57 = vrot.slane %v6495_v36, 2 }
 0x176   : > { %v1483_v34 = vsel %vm1438_vm0, %v1480_v20, %v1482_v11  ;;  %v1628_v47 = vsel %vm1583_vm1, %v1625_v30, %v1627_v44  ;;  %4631 = vrot.lane.b32.xlu0 %v6477_v33, %s5913_s17  ;;  %4691 = vrot.lane.b32.xlu1 %v6513_v3, %s5912_s16  ;;  %v1719_v24 = vrot.slane %v6446_v51, 2  ;;  %v1577_v8 = vrot.slane %v6495_v36, 1 }
 0x177   : > { %v6530_v46 = vpop.f32.mrf.mxu0  ;;  %v1724_v20 = vrot.slane %v6510_v7, 2  ;;  %v1314_v11 = vpop.f32.mrf.mxu1  ;;  %v6537_v52 = vpack.i.bf16 %v1483_v34, %v1481_v31  ;;  %v6539_v56 = vpack.i.bf16 %v1628_v47, %v1626_v54 }
 0x178   : > { %9610 = vst [vmem:[#allocation66_spill] sm:$0xff] %v6530_v46  ;;  %v1581_v30 = vrot.slane %v1314_v11, 1  ;;  %v1726_v44 = vrot.slane %v1314_v11, 2  ;;  %v1580_v53 = vsel %vm1438_vm0, %v1577_v8, %v1579_v4  ;;  %v1578_v34 = vsel %vm1438_vm0, %v1575_v21, %v1577_v8 }
 0x179   : > { %v1100_v15 = vpop.f32.mrf.mxu0  ;;  %v1316_v29 = vpop.f32.mrf.mxu1  ;;  %v1721_v54 = vsel %vm1583_vm1, %v1719_v24, %v1720_v16  ;;  %v6559_v49 = vpack.i.bf16 %v1578_v34, %v1576_v27 }
 0x17a   : > { %v1582_v0 = vsel %vm1438_vm0, %v1579_v4, %v1581_v30  ;;  %4636 = vrot.lane.b32.xlu0 %v6498_v1, %s5914_s18  ;;  %4696 = vrot.lane.b32.xlu1 %v6500_v61, %s5913_s17  ;;  %v1725_v29 = vsel %vm1583_vm1, %v1722_v57, %v1724_v20  ;;  %v1727_v31 = vsel %vm1583_vm1, %v1724_v20, %v1726_v44 }
 0x17b   : > { %v6548_v41 = vpop.f32.mrf.mxu0  ;;  %v1319_v15 = vpop.f32.mrf.mxu1  ;;  %v1723_v4 = vsel %vm1583_vm1, %v1720_v16, %v1722_v57  ;;  %v6555_v11 = vpack.i.bf16 %v1582_v0, %v1580_v53  ;;  %v6557_v30 = vpack.i.bf16 %v1727_v31, %v1725_v29  ;;  %9614 = vst [vmem:[#allocation70_spill] sm:$0xff] %v6559_v49 }
 0x17c   : > { %9611 = vst [vmem:[#allocation67_spill] sm:$0xff] %v6548_v41  ;;  %v6567_v8 = vpack.i.bf16 %v1723_v4, %v1721_v54  ;;  %v1733_v57 = vrot.slane %v1319_v15, 1  ;;  %v1742_v29 = vrot.slane %v1319_v15, 2 }
 0x17d   : > { %v1105_v5 = vpop.f32.mrf.mxu0  ;;  %v1321_v47 = vpop.f32.mrf.mxu1  ;;  %9612 = vst [vmem:[#allocation68_spill] sm:$0xff] %v6555_v11  ;;  %9613 = vst [vmem:[#allocation69_spill] sm:$0xff] %v6557_v30 }
 0x17e   : > { %4641 = vrot.lane.b32.xlu0 %v6477_v33, %s5916_s20  ;;  %4701 = vrot.lane.b32.xlu1 %v6513_v3, %s5914_s18  ;;  %9616 = vst [vmem:[#allocation72_spill] sm:$0xff] %v6567_v8 }
 0x17f   : > { %v6565_v21 = vpop.f32.mrf.mxu0  ;;  %v1322_v24 = vpop.f32.mrf.mxu1 }
 0x180   : > { %9615 = vst [vmem:[#allocation71_spill] sm:$0xff] %v6565_v21  ;;  %v6569_v16 = vpack.i.bf16 %v1322_v24, %v1319_v15  ;;  %v1734_v20 = vrot.slane %v1322_v24, 1  ;;  %v9329_v27 = vrot.slane %v6565_v21, 1  ;;  %v9333_v44 = vrot.slane %v6565_v21, 2 }
 0x181   : > { %v1108_v53 = vpop.f32.mrf.mxu0  ;;  %v1324_v0 = vpop.f32.mrf.mxu1  ;;  %v1743_v31 = vrot.slane %v1322_v24, 2 }
 0x182   : > { %9617 = vst [vmem:[#allocation73_spill] sm:$0xff] %v6569_v16  ;;  %4646 = vrot.lane.b32.xlu0 %v6498_v1, %s5917_s21  ;;  %4716 = vrot.lane.b32.xlu1 %v6370_v58, %s5911_s15  ;;  %v1735_v15 = vsel %vm1438_vm0, %v1733_v57, %v1734_v20 }
 0x183   : > { %v6577_v33 = vpop.f32.mrf.mxu0  ;;  %v1327_v34 = vpop.f32.mrf.mxu1 }
 0x184   : > { %9618 = vst [vmem:[#allocation74_spill] sm:$0xff] %v6577_v33  ;;  %v1489_v54 = vrot.slane %v6577_v33, 1  ;;  %v1634_v4 = vrot.slane %v6577_v33, 2  ;;  %v1736_v5 = vrot.slane %v1327_v34, 1  ;;  %v1745_v47 = vrot.slane %v1327_v34, 2 }
 0x185   : > { %v1113_v53 = vpop.f32.mrf.mxu0  ;;  %v1329_v0 = vpop.f32.mrf.mxu1 }
 0x186   : > { %v1490_v1 = vsel %vm1438_vm0, %v9329_v27, %v1489_v54  ;;  %v1635_v59 = vsel %vm1583_vm1, %v9333_v44, %v1634_v4  ;;  %4656 = vrot.lane.b32.xlu0 %v6460_v28, %s5915_s19  ;;  %4721 = vrot.lane.b32.xlu1 %v6372_v10, %s5912_s16  ;;  %v1737_v53 = vsel %vm1438_vm0, %v1734_v20, %v1736_v5 }
 0x187   : > { %v1114_v24 = vpop.f32.mrf.mxu0  ;;  %v1330_v60 = vpop.f32.mrf.mxu1  ;;  %v1744_v0 = vsel %vm1583_vm1, %v1742_v29, %v1743_v31  ;;  %v1746_v27 = vsel %vm1583_vm1, %v1743_v31, %v1745_v47  ;;  %v6597_v28 = vpack.i.bf16 %v1737_v53, %v1735_v15 }
 0x188   : > { %v1491_v13 = vrot.slane %v1114_v24, 1  ;;  %v1636_v43 = vrot.slane %v1114_v24, 2  ;;  %v6595_v50 = vpack.i.bf16 %v1330_v60, %v1327_v34  ;;  %v1738_v44 = vrot.slane %v1330_v60, 1 }
 0x189   : > { %v1116_v57 = vpop.f32.mrf.mxu0  ;;  %v1747_v38 = vrot.slane %v1330_v60, 2  ;;  %v1332_v42 = vpop.f32.mrf.mxu1  ;;  %9620 = vst [vmem:[#allocation76_spill] sm:$0xff] %v6597_v28  ;;  %v6599_v39 = vpack.i.bf16 %v1746_v27, %v1744_v0 }
 0x18a   : > { %9619 = vst [vmem:[#allocation75_spill] sm:$0xff] %v6595_v50  ;;  %v1492_v16 = vsel %vm1438_vm0, %v1489_v54, %v1491_v13  ;;  %v1637_v20 = vsel %vm1583_vm1, %v1634_v4, %v1636_v43  ;;  %v1739_v29 = vsel %vm1438_vm0, %v1736_v5, %v1738_v44  ;;  %4661 = vrot.lane.b32.xlu0 %v6355_v12, %s5911_s15 }
 0x18b   : > { %9621 = vst [vmem:[#allocation77_spill] sm:$0xff] %v6599_v39  ;;  %4726 = vrot.lane.b32.xlu1 %v6370_v58, %s5913_s17  ;;  %v6608_v31 = vpop.f32.mrf.mxu0  ;;  %v1335_v60 = vpop.f32.mrf.mxu1  ;;  %v1748_v42 = vsel %vm1583_vm1, %v1745_v47, %v1747_v38  ;;  %v6611_v13 = vpack.i.bf16 %v1492_v16, %v1490_v1  ;;  %v6613_v43 = vpack.i.bf16 %v1637_v20, %v1635_v59 }
 0x18c   : > { %9622 = vst [vmem:[#allocation78_spill] sm:$0xff] %v6608_v31  ;;  %v1749_v34 = vrot.slane %v1335_v60, 2  ;;  %v1740_v27 = vrot.slane %v1335_v60, 1 }
 0x18d   : > { %v1121_v15 = vpop.f32.mrf.mxu0  ;;  %v1337_v24 = vpop.f32.mrf.mxu1 }
 0x18e   : > { %v1750_v54 = vsel %vm1583_vm1, %v1747_v38, %v1749_v34  ;;  %v1741_v4 = vsel %vm1438_vm0, %v1738_v44, %v1740_v27  ;;  %4666 = vrot.lane.b32.xlu0 %v6359_v40, %s5912_s16  ;;  %v6633_v38 = vpack.i.bf16 %v6385_v63, %v6377_v35 }
 0x18f   : > { %4731 = vrot.lane.b32.xlu1 %v6372_v10, %s5914_s18  ;;  %v6621_v5 = vpop.f32.mrf.mxu0  ;;  %v6623_v47 = vpack.i.bf16 %v1750_v54, %v1748_v42  ;;  %v6625_v53 = vpack.i.bf16 %v1741_v4, %v1739_v29  ;;  %v6627_v16 = vpop.f32.mrf.mxu1  ;;  %v1493_v29 = vrot.slane %v6608_v31, 1  ;;  %v6647_v42 = vpack.i.bf16 %v6403_v17, %v6387_v19 }
 0x190   : > { %9623 = vst [vmem:[#allocation79_spill] sm:$0xff] %v6621_v5  ;;  %9626 = vst [vmem:[#allocation82_spill] sm:$0xff] %v6627_v16  ;;  %v6629_v59 = vpop.permute.xlu0 %4436  ;;  %v1756_v57 = vrot.slane %v6627_v16, 1  ;;  %v1765_v20 = vrot.slane %v6627_v16, 2  ;;  %v1494_v60 = vrot.slane %v6621_v5, 1 }
 0x191   : > { %9624 = vst [vmem:[#allocation80_spill] sm:$0xff] %v6623_v47  ;;  %9625 = vst [vmem:[#allocation81_spill] sm:$0xff] %v6625_v53  ;;  %v1124_v1 = vpop.f32.mrf.mxu0  ;;  %v1340_v44 = vpop.f32.mrf.mxu1 }
 0x192   : > { %9627 = vst [vmem:[#allocation83_spill] sm:$0xff] %v6629_v59  ;;  %4671 = vrot.lane.b32.xlu0 %v6355_v12, %s5913_s17  ;;  %9629 = vst [vmem:[#allocation85_spill] sm:$0xff] %v6647_v42 }
 0x193   : > { %4781 = vrot.lane.b32.xlu1 %v6633_v38, %s5910_s14  ;;  %v6639_v0 = vpop.f32.mrf.mxu0  ;;  %v6649_v34 = vpop.f32.mrf.mxu1 }
 0x194   : > { %9628 = vst [vmem:[#allocation84_spill] sm:$0xff] %v6639_v0  ;;  %9630 = vst [vmem:[#allocation86_spill] sm:$0xff] %v6649_v34  ;;  %v6652_v15 = vpop.permute.xlu0 %4441  ;;  %v1757_v4 = vrot.slane %v6649_v34, 1  ;;  %v1766_v1 = vrot.slane %v6649_v34, 2  ;;  %v9637_v34 = vrot.slane %v6639_v0, 1  ;;  %v9350_v12 = vrot.slane %v6639_v0, 2 }
 0x195   : > { %9631 = vst [vmem:[#allocation87_spill] sm:$0xff] %v6652_v15  ;;  %v1129_v24 = vpop.f32.mrf.mxu0  ;;  %v1345_v44 = vpop.f32.mrf.mxu1 }
 0x196   : > { %4676 = vrot.lane.b32.xlu0 %v6359_v40, %s5914_s18  ;;  %v6665_v27 = vsel %vm1438_vm0, %v1756_v57, %v1757_v4  ;;  %v6668_v24 = vsel %vm1583_vm1, %v1765_v20, %v1766_v1  ;;  %v1495_v44 = vsel %vm1438_vm0, %v1493_v29, %v1494_v60  ;;  %v1638_v57 = vrot.slane %v6608_v31, 2 }
 0x197   : > { %4811 = vrot.lane.b32.xlu1 %v6647_v42, %s5910_s14  ;;  %v6662_v19 = vpop.f32.mrf.mxu0  ;;  %9633 = vst [vmem:[#allocation89_spill] sm:$0xff] %v6665_v27  ;;  %9634 = vst [vmem:[#allocation90_spill] sm:$0xff] %v6668_v24  ;;  %v6670_v54 = vpop.f32.mrf.mxu1  ;;  %v1497_v42 = vsel %vm1438_vm0, %v1494_v60, %v9637_v34  ;;  %v1639_v20 = vrot.slane %v6621_v5, 2  ;;  %v1611_v27 = vrot.slane %v6350_v18, 2 }
 0x198   : > { %9632 = vst [vmem:[#allocation88_spill] sm:$0xff] %v6662_v19  ;;  %v6672_v17 = vpop.permute.xlu1 %4471  ;;  %v6674_v16 = vpop.permute.xlu0 %4446  ;;  %v6689_v29 = vpack.i.bf16 %v1497_v42, %v1495_v44  ;;  %v9355_v60 = vrot.slane %v6670_v54, 1 }
 0x199   : > { %9635 = vst [vmem:[#allocation91_spill] sm:$0xff] %v6672_v17  ;;  %9636 = vst [vmem:[#allocation92_spill] sm:$0xff] %v6674_v16  ;;  %v1132_v40 = vpop.f32.mrf.mxu0  ;;  %v1348_v63 = vpop.f32.mrf.mxu1  ;;  %v1640_v42 = vsel %vm1583_vm1, %v1638_v57, %v1639_v20  ;;  %v1642_v44 = vsel %vm1583_vm1, %v1639_v20, %v9350_v12  ;;  %v9646_v12 = vrot.slane %v6670_v54, 2 }
 0x19a   : > { %4706 = vrot.lane.b32.xlu0 %v6500_v61, %s5916_s20  ;;  %v6716_v34 = vpack.i.bf16 %v1642_v44, %v1640_v42  ;;  %v6723_v20 = vsel %vm1438_vm0, %v1757_v4, %v9355_v60  ;;  %v1466_v4 = vrot.slane %v6350_v18, 1  ;;  %v1467_v60 = vrot.slane %v6364_v48, 1 }
 0x19b   : > { %4816 = vrot.lane.b32.xlu1 %v6430_v23, %s5911_s15  ;;  %v6687_v10 = vpop.f32.mrf.mxu0  ;;  %9645 = vst [vmem:[#allocation100_spill] sm:$0xff] %v6723_v20 }
 0x19c   : > { %v6691_v58 = vpop.permute.xlu0 %4451  ;;  %v6693_v40 = vpop.permute.xlu1 %4481  ;;  %9643 = vst [vmem:[#allocation98_spill] sm:$0xff] %v6716_v34  ;;  %v1468_v20 = vsel %vm1438_vm0, %v1466_v4, %v1467_v60 }
 0x19d   : > { %9638 = vst [vmem:[#allocation93_spill] sm:$0xff] %v6691_v58  ;;  %9639 = vst [vmem:[#allocation94_spill] sm:$0xff] %v6693_v40  ;;  %v1137_v63 = vpop.f32.mrf.mxu0 }
 0x19e   : > { %4711 = vrot.lane.b32.xlu0 %v6513_v3, %s5917_s21  ;;  %v4735_v3 = vpack.i.bf16 %v6364_v48, %v6350_v18 }
 0x19f   : > { %4821 = vrot.lane.b32.xlu1 %v6432_v2, %s5912_s16  ;;  %v6699_v61 = vpop.f32.mrf.mxu0 }
 0x1a0   : > { %9640 = vst [vmem:[#allocation95_spill] sm:$0xff] %v6699_v61  ;;  %v6707_v40 = vpop.permute.xlu0 %4456  ;;  %v6709_v63 = vpop.permute.xlu1 %4486 }
 0x1a1   : > { %9641 = vst [vmem:[#allocation96_spill] sm:$0xff] %v6707_v40  ;;  %9642 = vst [vmem:[#allocation97_spill] sm:$0xff] %v6709_v63  ;;  %v1140_v17 = vpop.f32.mrf.mxu0  ;;  %v6728_v63 = vsel %vm1583_vm1, %v1766_v1, %v9646_v12  ;;  %v1647_v40 = vrot.slane %v6699_v61, 2 }
 0x1a2   : > { %4736 = vrot.lane.b32.xlu0 %v4735_v3, %s5910_s14  ;;  %9647 = vst [vmem:[#allocation101_spill] sm:$0xff] %v6728_v63  ;;  %v1502_v17 = vrot.slane %v6699_v61, 1 }
 0x1a3   : > { %4826 = vrot.lane.b32.xlu1 %v6430_v23, %s5913_s17  ;;  %v6718_v57 = vpop.f32.mrf.mxu0 }
 0x1a4   : > { %9644 = vst [vmem:[#allocation99_spill] sm:$0xff] %v6718_v57  ;;  %v1503_v58 = vrot.slane %v6718_v57, 1  ;;  %v1648_v42 = vrot.slane %v6718_v57, 2  ;;  %v6734_v44 = vpop.permute.xlu0 %4461  ;;  %v6736_v59 = vpop.permute.xlu1 %4491 }
 0x1a5   : > { %9648 = vst [vmem:[#allocation102_spill] sm:$0xff] %v6734_v44  ;;  %9649 = vst [vmem:[#allocation103_spill] sm:$0xff] %v6736_v59  ;;  %v1145_v16 = vpop.f32.mrf.mxu0  ;;  %v6749_v44 = vpack.i.bf16 %v6379_v37, %v6366_v62  ;;  %v1612_v62 = vrot.slane %v6364_v48, 2  ;;  %v9654_v59 = vrot.slane %v6377_v35, 1 }
 0x1a6   : > { %4741 = vrot.lane.b32.xlu0 %v4735_v3, %s5915_s19  ;;  %v1504_v39 = vsel %vm1438_vm0, %v1502_v17, %v1503_v58  ;;  %v1649_v12 = vsel %vm1583_vm1, %v1647_v40, %v1648_v42 }
 0x1a7   : > { %4831 = vrot.lane.b32.xlu1 %v6432_v2, %s5914_s18  ;;  %v6745_v1 = vpop.f32.mrf.mxu0  ;;  %9651 = vst [vmem:[#allocation105_spill] sm:$0xff] %v6749_v44  ;;  %v1470_v15 = vsel %vm1438_vm0, %v1467_v60, %v9654_v59  ;;  %v1613_v48 = vsel %vm1583_vm1, %v1611_v27, %v1612_v62 }
 0x1a8   : > { %9650 = vst [vmem:[#allocation104_spill] sm:$0xff] %v6745_v1  ;;  %v9371_v16 = vrot.slane %v6745_v1, 2  ;;  %v6755_v3 = vpop.permute.xlu0 %4466  ;;  %v6757_v34 = vpop.permute.xlu1 %4496  ;;  %v9655_v17 = vrot.slane %v6745_v1, 1 }
 0x1a9   : > { %9652 = vst [vmem:[#allocation106_spill] sm:$0xff] %v6755_v3  ;;  %9653 = vst [vmem:[#allocation107_spill] sm:$0xff] %v6757_v34  ;;  %v1148_v37 = vpop.f32.mrf.mxu0 }
 0x1aa   : > { %4746 = vrot.lane.b32.xlu0 %v6749_v44, %s5910_s14  ;;  %v1506_v40 = vsel %vm1438_vm0, %v1503_v58, %v9655_v17  ;;  %v1651_v37 = vsel %vm1583_vm1, %v1648_v42, %v9371_v16  ;;  %v4750_v44 = vpack.i.bf16 %v1470_v15, %v1468_v20  ;;  %v9658_v58 = vrot.slane %v6377_v35, 2 }
 0x1ab   : > { %4846 = vrot.lane.b32.xlu1 %v6462_v25, %s5911_s15  ;;  %v6777_v24 = vpop.f32.mrf.mxu0  ;;  %v6779_v4 = vpack.i.bf16 %v1506_v40, %v1504_v39  ;;  %v6781_v63 = vpack.i.bf16 %v1651_v37, %v1649_v12 }
 0x1ac   : > { %9656 = vst [vmem:[#allocation108_spill] sm:$0xff] %v6777_v24  ;;  %v6783_v59 = vpop.permute.xlu1 %4501  ;;  %v6785_v60 = vpop.permute.xlu0 %4476  ;;  %v1615_v17 = vsel %vm1583_vm1, %v1612_v62, %v9658_v58 }
 0x1ad   : > { %9657 = vst [vmem:[#allocation109_spill] sm:$0xff] %v6783_v59  ;;  %v1153_v18 = vpop.f32.mrf.mxu0  ;;  %v4755_v40 = vpack.i.bf16 %v1615_v17, %v1613_v48  ;;  %v6820_v17 = vpack.i.bf16 %v6493_v6, %v6473_v45 }
 0x1ae   : > { %4751 = vrot.lane.b32.xlu0 %v4750_v44, %s5911_s15 }
 0x1af   : > { %4851 = vrot.lane.b32.xlu1 %v6467_v32, %s5912_s16  ;;  %v6794_v39 = vpop.f32.mrf.mxu0 }
 0x1b0   : > { %v6796_v42 = vpop.permute.xlu0 %4506  ;;  %v6798_v12 = vpop.permute.xlu1 %4516 }
 0x1b1   : > { %v1156_v15 = vpop.f32.mrf.mxu0 }
 0x1b2   : > { %4756 = vrot.lane.b32.xlu0 %v4755_v40, %s5912_s16 }
 0x1b3   : > { %4856 = vrot.lane.b32.xlu1 %v6462_v25, %s5913_s17  ;;  %v6803_v18 = vpop.f32.mrf.mxu0  ;;  %v6833_v25 = vpack.i.bf16 %v6510_v7, %v6495_v36 }
 0x1b4   : > { %9659 = vst [vmem:[#allocation110_spill] sm:$0xff] %v6803_v18  ;;  %v6805_v62 = vpop.permute.xlu0 %4511  ;;  %v6807_v27 = vpop.permute.xlu1 %4536 }
 0x1b5   : > { %v1161_v20 = vpop.f32.mrf.mxu0  ;;  %9665 = vst [vmem:[#allocation116_spill] sm:$0xff] %v6833_v25 }
 0x1b6   : > { %4761 = vrot.lane.b32.xlu0 %v4750_v44, %s5913_s17 }
 0x1b7   : > { %4861 = vrot.lane.b32.xlu1 %v6467_v32, %s5914_s18  ;;  %v6812_v37 = vpop.f32.mrf.mxu0 }
 0x1b8   : > { %9660 = vst [vmem:[#allocation111_spill] sm:$0xff] %v6812_v37  ;;  %v6814_v48 = vpop.permute.xlu0 %4521  ;;  %v6816_v58 = vpop.permute.xlu1 %4561 }
 0x1b9   : > { %9661 = vst [vmem:[#allocation112_spill] sm:$0xff] %v6814_v48  ;;  %9662 = vst [vmem:[#allocation113_spill] sm:$0xff] %v6816_v58  ;;  %v1164_v15 = vpop.f32.mrf.mxu0 }
 0x1ba   : > { %4766 = vrot.lane.b32.xlu0 %v4755_v40, %s5914_s18 }
 0x1bb   : > { %4911 = vrot.lane.b32.xlu1 %v6820_v17, %s5910_s14  ;;  %v6825_v20 = vpop.f32.mrf.mxu0 }
 0x1bc   : > { %9663 = vst [vmem:[#allocation114_spill] sm:$0xff] %v6825_v20  ;;  %v6827_v16 = vpop.permute.xlu0 %4526  ;;  %v6829_v32 = vpop.permute.xlu1 %4566 }
 0x1bd   : > { %9664 = vst [vmem:[#allocation115_spill] sm:$0xff] %v6829_v32  ;;  %v1169_v35 = vpop.f32.mrf.mxu0 }
 0x1be   : > { %4771 = vrot.lane.b32.xlu0 %v4750_v44, %s5916_s20 }
 0x1bf   : > { %4941 = vrot.lane.b32.xlu1 %v6833_v25, %s5910_s14  ;;  %v6838_v15 = vpop.f32.mrf.mxu0 }
 0x1c0   : > { %9666 = vst [vmem:[#allocation117_spill] sm:$0xff] %v6838_v15  ;;  %v6840_v6 = vpop.permute.xlu0 %4531  ;;  %v6842_v58 = vpop.permute.xlu1 %4571 }
 0x1c1   : > { %9667 = vst [vmem:[#allocation118_spill] sm:$0xff] %v6840_v6  ;;  %9668 = vst [vmem:[#allocation119_spill] sm:$0xff] %v6842_v58  ;;  %v1172_v48 = vpop.f32.mrf.mxu0 }
 0x1c2   : > { %4776 = vrot.lane.b32.xlu0 %v4755_v40, %s5917_s21 }
 0x1c3   : > { %4946 = vrot.lane.b32.xlu1 %v6537_v52, %s5911_s15  ;;  %v6847_v36 = vpop.f32.mrf.mxu0 }
 0x1c4   : > { %v6849_v35 = vpop.permute.xlu0 %4541  ;;  %v6851_v44 = vpop.permute.xlu1 %4576 }
 0x1c5   : > { %9669 = vst [vmem:[#allocation120_spill] sm:$0xff] %v6849_v35  ;;  %9670 = vst [vmem:[#allocation121_spill] sm:$0xff] %v6851_v44  ;;  %v1177_v7 = vpop.f32.mrf.mxu0 }
 0x1c6   : > { %4786 = vrot.lane.b32.xlu0 %v6633_v38, %s5915_s19 }
 0x1c7   : > { %4951 = vrot.lane.b32.xlu1 %v6539_v56, %s5912_s16  ;;  %v6857_v25 = vpop.f32.mrf.mxu0 }
 0x1c8   : > { %9671 = vst [vmem:[#allocation122_spill] sm:$0xff] %v6857_v25  ;;  %v6859_v48 = vpop.permute.xlu0 %4546  ;;  %v6861_v40 = vpop.permute.xlu1 %4581 }
 0x1c9   : > { %9672 = vst [vmem:[#allocation123_spill] sm:$0xff] %v6859_v48  ;;  %9673 = vst [vmem:[#allocation124_spill] sm:$0xff] %v6861_v40  ;;  %v1180_v58 = vpop.f32.mrf.mxu0 }
 0x1ca   : > { %4791 = vrot.lane.b32.xlu0 %v6434_v9, %s5911_s15 }
 0x1cb   : > { %4956 = vrot.lane.b32.xlu1 %v6537_v52, %s5913_s17  ;;  %v6867_v7 = vpop.f32.mrf.mxu0 }
 0x1cc   : > { %9674 = vst [vmem:[#allocation125_spill] sm:$0xff] %v6867_v7  ;;  %v6869_v35 = vpop.permute.xlu0 %4551  ;;  %v6871_v38 = vpop.permute.xlu1 %4586 }
 0x1cd   : > { %9675 = vst [vmem:[#allocation126_spill] sm:$0xff] %v6869_v35  ;;  %9676 = vst [vmem:[#allocation127_spill] sm:$0xff] %v6871_v38  ;;  %v1185_v44 = vpop.f32.mrf.mxu0 }
 0x1ce   : > { %4796 = vrot.lane.b32.xlu0 %v6439_v14, %s5912_s16 }
 0x1cf   : > { %4961 = vrot.lane.b32.xlu1 %v6539_v56, %s5914_s18  ;;  %v6877_v58 = vpop.f32.mrf.mxu0 }
 0x1d0   : > { %9677 = vst [vmem:[#allocation128_spill] sm:$0xff] %v6877_v58  ;;  %v6879_v48 = vpop.permute.xlu0 %4556  ;;  %v6881_v40 = vpop.permute.xlu1 %4591 }
 0x1d1   : > { %9678 = vst [vmem:[#allocation129_spill] sm:$0xff] %v6879_v48  ;;  %9679 = vst [vmem:[#allocation130_spill] sm:$0xff] %v6881_v40  ;;  %v1188_v6 = vpop.f32.mrf.mxu0 }
 0x1d2   : > { %4801 = vrot.lane.b32.xlu0 %v6434_v9, %s5913_s17 }
 0x1d3   : > { %4976 = vrot.lane.b32.xlu1 %v6555_v11, %s5911_s15  ;;  %v6887_v44 = vpop.f32.mrf.mxu0 }
 0x1d4   : > { %9680 = vst [vmem:[#allocation131_spill] sm:$0xff] %v6887_v44  ;;  %v6889_v38 = vpop.permute.xlu1 %4596  ;;  %v6891_v35 = vpop.permute.xlu0 %4606 }
 0x1d5   : > { %9681 = vst [vmem:[#allocation132_spill] sm:$0xff] %v6889_v38  ;;  %9682 = vst [vmem:[#allocation133_spill] sm:$0xff] %v6891_v35  ;;  %v1193_v32 = vpop.f32.mrf.mxu0 }
 0x1d6   : > { %4806 = vrot.lane.b32.xlu0 %v6439_v14, %s5914_s18 }
 0x1d7   : > { %4981 = vrot.lane.b32.xlu1 %v6557_v30, %s5912_s16  ;;  %v6897_v6 = vpop.f32.mrf.mxu0 }
 0x1d8   : > { %v6899_v40 = vpop.permute.xlu1 %4601  ;;  %v6901_v9 = vpop.permute.xlu0 %4611 }
 0x1d9   : > { %9683 = vst [vmem:[#allocation134_spill] sm:$0xff] %v6899_v40  ;;  %9684 = vst [vmem:[#allocation135_spill] sm:$0xff] %v6901_v9  ;;  %v1196_v48 = vpop.f32.mrf.mxu0 }
 0x1da   : > { %4836 = vrot.lane.b32.xlu0 %v6430_v23, %s5916_s20 }
 0x1db   : > { %4986 = vrot.lane.b32.xlu1 %v6555_v11, %s5913_s17  ;;  %v6907_v32 = vpop.f32.mrf.mxu0  ;;  %v4865_v11 = vpack.i.bf16 %v6444_v22, %v6424_v55 }
 0x1dc   : > { %9685 = vst [vmem:[#allocation136_spill] sm:$0xff] %v6907_v32  ;;  %v6909_v35 = vpop.permute.xlu0 %4616  ;;  %v6911_v14 = vpop.permute.xlu1 %4651  ;;  %v1476_v32 = vrot.slane %v6444_v22, 1 }
 0x1dd   : > { %9686 = vst [vmem:[#allocation137_spill] sm:$0xff] %v6909_v35  ;;  %9687 = vst [vmem:[#allocation138_spill] sm:$0xff] %v6911_v14  ;;  %v1201_v38 = vpop.f32.mrf.mxu0  ;;  %v6927_v35 = vpack.i.bf16 %v6577_v33, %v6565_v21 }
 0x1de   : > { %4841 = vrot.lane.b32.xlu0 %v6432_v2, %s5917_s21 }
 0x1df   : > { %4991 = vrot.lane.b32.xlu1 %v6557_v30, %s5914_s18  ;;  %v6917_v48 = vpop.f32.mrf.mxu0 }
 0x1e0   : > { %9688 = vst [vmem:[#allocation139_spill] sm:$0xff] %v6917_v48  ;;  %v6919_v9 = vpop.permute.xlu0 %4621  ;;  %v6921_v23 = vpop.permute.xlu1 %4681 }
 0x1e1   : > { %9689 = vst [vmem:[#allocation140_spill] sm:$0xff] %v6919_v9  ;;  %9690 = vst [vmem:[#allocation141_spill] sm:$0xff] %v6921_v23  ;;  %v1204_v38 = vpop.f32.mrf.mxu0  ;;  %v1475_v23 = vrot.slane %v6424_v55, 1 }
 0x1e2   : > { %4866 = vrot.lane.b32.xlu0 %v4865_v11, %s5910_s14 }
 0x1e3   : > { %5041 = vrot.lane.b32.xlu1 %v6927_v35, %s5910_s14  ;;  %v6932_v2 = vpop.f32.mrf.mxu0 }
 0x1e4   : > { %9691 = vst [vmem:[#allocation142_spill] sm:$0xff] %v6932_v2  ;;  %v6934_v30 = vpop.permute.xlu0 %4626  ;;  %v6936_v48 = vpop.permute.xlu1 %4686  ;;  %v6951_v2 = vpack.i.bf16 %v6475_v26, %v6446_v51 }
 0x1e5   : > { %9692 = vst [vmem:[#allocation143_spill] sm:$0xff] %v6934_v30  ;;  %9693 = vst [vmem:[#allocation144_spill] sm:$0xff] %v6936_v48  ;;  %v1209_v9 = vpop.f32.mrf.mxu0  ;;  %v1620_v48 = vrot.slane %v6424_v55, 2  ;;  %v1621_v30 = vrot.slane %v6444_v22, 2 }
 0x1e6   : > { %4871 = vrot.lane.b32.xlu0 %v4865_v11, %s5915_s19  ;;  %9695 = vst [vmem:[#allocation146_spill] sm:$0xff] %v6951_v2  ;;  %v1477_v9 = vsel %vm1438_vm0, %v1475_v23, %v1476_v32  ;;  %v9696_v11 = vrot.slane %v6473_v45, 1  ;;  %v9697_v23 = vrot.slane %v6473_v45, 2  ;;  %v7008_v45 = vpack.i.bf16 %v6621_v5, %v6608_v31 }
 0x1e7   : > { %5061 = vrot.lane.b32.xlu1 %v6595_v50, %s5910_s14  ;;  %v6943_v38 = vpop.f32.mrf.mxu0  ;;  %v1622_v55 = vsel %vm1583_vm1, %v1620_v48, %v1621_v30  ;;  %v1498_v31 = vrot.slane %v6662_v19, 1  ;;  %v1500_v5 = vrot.slane %v6687_v10, 1 }
 0x1e8   : > { %9694 = vst [vmem:[#allocation145_spill] sm:$0xff] %v6943_v38  ;;  %v6945_v33 = vpop.permute.xlu0 %4631  ;;  %v6947_v14 = vpop.permute.xlu1 %4691  ;;  %v1479_v50 = vsel %vm1438_vm0, %v1476_v32, %v9696_v11  ;;  %v1624_v22 = vsel %vm1583_vm1, %v1621_v30, %v9697_v23 }
 0x1e9   : > { %v1212_v40 = vpop.f32.mrf.mxu0  ;;  %v4880_v26 = vpack.i.bf16 %v1479_v50, %v1477_v9  ;;  %v4885_v11 = vpack.i.bf16 %v1624_v22, %v1622_v55 }
 0x1ea   : > { %4876 = vrot.lane.b32.xlu0 %v6951_v2, %s5910_s14 }
 0x1eb   : > { %5066 = vrot.lane.b32.xlu1 %v6611_v13, %s5911_s15 }
 0x1ec   : > { %v6963_v38 = vpop.permute.xlu0 %4636  ;;  %v6965_v51 = vpop.permute.xlu1 %4696 }
 0x1ee   : > { %4881 = vrot.lane.b32.xlu0 %v4880_v26, %s5911_s15 }
 0x1ef   : > { %5071 = vrot.lane.b32.xlu1 %v6613_v43, %s5912_s16  ;;  %v9844_v59 = vld [vmem:[#allocation145_spill] sm:$0xff] }
 0x1f0   : > { %v6974_v40 = vpop.permute.xlu0 %4641  ;;  %v6976_v32 = vpop.permute.xlu1 %4701 }
 0x1f2   : > { %4886 = vrot.lane.b32.xlu0 %v4885_v11, %s5912_s16 }
 0x1f3   : > { %5076 = vrot.lane.b32.xlu1 %v6611_v13, %s5913_s17 }
 0x1f4   : > { %v6981_v50 = vpop.permute.xlu0 %4646  ;;  %v6983_v48 = vpop.permute.xlu1 %4716 }
 0x1f6   : > { %4891 = vrot.lane.b32.xlu0 %v4880_v26, %s5913_s17 }
 0x1f7   : > { %5081 = vrot.lane.b32.xlu1 %v6613_v43, %s5914_s18 }
 0x1f8   : > { %v6988_v30 = vpop.permute.xlu0 %4656  ;;  %v6990_v9 = vpop.permute.xlu1 %4721 }
 0x1fa   : > { %4896 = vrot.lane.b32.xlu0 %v4885_v11, %s5914_s18 }
 0x1fb   : > { %5096 = vrot.lane.b32.xlu1 %v6625_v53, %s5913_s17 }
 0x1fc   : > { %v6995_v55 = vpop.permute.xlu0 %4661 }
 0x1fd   : > { %9698 = vst [vmem:[#allocation147_spill] sm:$0xff] %v6995_v55  ;;  %v6997_v22 = vpop.permute.xlu1 %4726 }
 0x1fe   : > { %9699 = vst [vmem:[#allocation148_spill] sm:$0xff] %v6997_v22  ;;  %4901 = vrot.lane.b32.xlu0 %v4880_v26, %s5916_s20 }
 0x1ff   : > { %5101 = vrot.lane.b32.xlu1 %v6623_v47, %s5914_s18  ;;  %v1501_v47 = vsel %vm1438_vm0, %v1498_v31, %v1500_v5  ;;  %v9709_v5 = vrot.slane %v6639_v0, 2 }
 0x200   : > { %v7002_v23 = vpop.permute.xlu0 %4666 }
 0x201   : > { %9700 = vst [vmem:[#allocation149_spill] sm:$0xff] %v7002_v23  ;;  %v7004_v2 = vpop.permute.xlu1 %4731 }
 0x202   : > { %9701 = vst [vmem:[#allocation150_spill] sm:$0xff] %v7004_v2  ;;  %4906 = vrot.lane.b32.xlu0 %v4885_v11, %s5917_s21  ;;  %v5140_v11 = vpack.i.bf16 %v6662_v19, %v6639_v0 }
 0x203   : > { %5111 = vrot.lane.b32.xlu1 %v7008_v45, %s5915_s19 }
 0x204   : > { %v7013_v53 = vpop.permute.xlu0 %4671 }
 0x205   : > { %9702 = vst [vmem:[#allocation151_spill] sm:$0xff] %v7013_v53  ;;  %v7015_v22 = vpop.permute.xlu1 %4781 }
 0x206   : > { %9703 = vst [vmem:[#allocation152_spill] sm:$0xff] %v7015_v22  ;;  %4916 = vrot.lane.b32.xlu0 %v6820_v17, %s5915_s19  ;;  %v9708_v22 = vrot.slane %v6639_v0, 1 }
 0x207   : > { %5136 = vrot.lane.b32.xlu1 %v6689_v29, %s5916_s20 }
 0x208   : > { %v7021_v26 = vpop.permute.xlu0 %4676  ;;  %v1499_v23 = vsel %vm1438_vm0, %v9708_v22, %v1498_v31 }
 0x209   : > { %9704 = vst [vmem:[#allocation153_spill] sm:$0xff] %v7021_v26  ;;  %v7023_v2 = vpop.permute.xlu1 %4811  ;;  %v1643_v26 = vrot.slane %v6662_v19, 2 }
 0x20a   : > { %9705 = vst [vmem:[#allocation154_spill] sm:$0xff] %v7023_v2  ;;  %4921 = vrot.lane.b32.xlu0 %v6559_v49, %s5911_s15  ;;  %v1645_v2 = vrot.slane %v6687_v10, 2 }
 0x20b   : > { %5141 = vrot.lane.b32.xlu1 %v5140_v11, %s5910_s14  ;;  %v1644_v10 = vsel %vm1583_vm1, %v9709_v5, %v1643_v26 }
 0x20c   : > { %v7032_v17 = vpop.permute.xlu0 %4706  ;;  %v1646_v19 = vsel %vm1583_vm1, %v1643_v26, %v1645_v2 }
 0x20d   : > { %9706 = vst [vmem:[#allocation155_spill] sm:$0xff] %v7032_v17  ;;  %v7034_v53 = vpop.permute.xlu1 %4816 }
 0x20e   : > { %9707 = vst [vmem:[#allocation156_spill] sm:$0xff] %v7034_v53  ;;  %4926 = vrot.lane.b32.xlu0 %v6567_v8, %s5912_s16  ;;  %v5150_v53 = vpack.i.bf16 %v1501_v47, %v1499_v23 }
 0x20f   : > { %5146 = vrot.lane.b32.xlu1 %v5140_v11, %s5915_s19  ;;  %v5155_v11 = vpack.i.bf16 %v1646_v19, %v1644_v10  ;;  %v4995_v10 = vpack.i.bf16 %v6548_v41, %v6530_v46 }
 0x210   : > { %v7045_v55 = vpop.permute.xlu0 %4711 }
 0x211   : > { %v7047_v17 = vpop.permute.xlu1 %4821 }
 0x212   : > { %4931 = vrot.lane.b32.xlu0 %v6559_v49, %s5913_s17 }
 0x213   : > { %5151 = vrot.lane.b32.xlu1 %v5150_v53, %s5911_s15 }
 0x214   : > { %v7056_v31 = vpop.permute.xlu0 %4736 }
 0x215   : > { %9710 = vst [vmem:[#allocation157_spill] sm:$0xff] %v7056_v31  ;;  %v7058_v22 = vpop.permute.xlu1 %4826 }
 0x216   : > { %9711 = vst [vmem:[#allocation158_spill] sm:$0xff] %v7058_v22  ;;  %4936 = vrot.lane.b32.xlu0 %v6567_v8, %s5914_s18 }
 0x217   : > { %5156 = vrot.lane.b32.xlu1 %v5155_v11, %s5912_s16 }
 0x218   : > { %v7063_v47 = vpop.permute.xlu0 %4741 }
 0x219   : > { %9712 = vst [vmem:[#allocation159_spill] sm:$0xff] %v7063_v47  ;;  %v7065_v2 = vpop.permute.xlu1 %4831  ;;  %v7104_v47 = vpack.i.bf16 %v6718_v57, %v6699_v61  ;;  %v9724_v61 = vrot.slane %v6670_v54, 1 }
 0x21a   : > { %9713 = vst [vmem:[#allocation160_spill] sm:$0xff] %v7065_v2  ;;  %4966 = vrot.lane.b32.xlu0 %v6537_v52, %s5916_s20 }
 0x21b   : > { %5161 = vrot.lane.b32.xlu1 %v5150_v53, %s5913_s17 }
 0x21c   : > { %v7070_v23 = vpop.permute.xlu0 %4746  ;;  %v7083_v8 = vpop.f32.mrf.mxu1 }
 0x21d   : > { %9714 = vst [vmem:[#allocation161_spill] sm:$0xff] %v7070_v23  ;;  %v7072_v26 = vpop.permute.xlu1 %4846  ;;  %v1770_v23 = vrot.slane %v7083_v8, 2 }
 0x21e   : > { %9715 = vst [vmem:[#allocation162_spill] sm:$0xff] %v7072_v26  ;;  %4971 = vrot.lane.b32.xlu0 %v6539_v56, %s5917_s21  ;;  %v1353_v52 = vpop.f32.mrf.mxu1  ;;  %v1484_v56 = vrot.slane %v6530_v46, 1 }
 0x21f   : > { %5166 = vrot.lane.b32.xlu1 %v5155_v11, %s5914_s18 }
 0x220   : > { %v7077_v19 = vpop.permute.xlu0 %4751  ;;  %v1354_v26 = vpop.f32.mrf.mxu1 }
 0x221   : > { %9716 = vst [vmem:[#allocation163_spill] sm:$0xff] %v7077_v19  ;;  %v7079_v5 = vpop.permute.xlu1 %4851  ;;  %v1485_v19 = vrot.slane %v6548_v41, 1  ;;  %v1772_v2 = vrot.slane %v1354_v26, 2  ;;  %v1763_v31 = vrot.slane %v1354_v26, 1 }
 0x222   : > { %9717 = vst [vmem:[#allocation164_spill] sm:$0xff] %v7079_v5  ;;  %4996 = vrot.lane.b32.xlu0 %v4995_v10, %s5910_s14  ;;  %v1761_v5 = vrot.slane %v7083_v8, 1  ;;  %v1356_v52 = vpop.f32.mrf.mxu1 }
 0x223   : > { %5171 = vrot.lane.b32.xlu1 %v5150_v53, %s5916_s20  ;;  %v1629_v53 = vrot.slane %v6530_v46, 2  ;;  %v7112_v22 = vsel %vm1583_vm1, %v1770_v23, %v1772_v2  ;;  %v1630_v46 = vrot.slane %v6548_v41, 2  ;;  %v1486_v52 = vsel %vm1438_vm0, %v1484_v56, %v1485_v19 }
 0x224   : > { %v7087_v49 = vpop.permute.xlu0 %4756  ;;  %v7122_v57 = vsel %vm1438_vm0, %v9724_v61, %v1761_v5  ;;  %v9728_v41 = vrot.slane %v6565_v21, 2  ;;  %v1652_v61 = vrot.slane %v6777_v24, 2 }
 0x225   : > { %9718 = vst [vmem:[#allocation165_spill] sm:$0xff] %v7087_v49  ;;  %v7089_v0 = vpop.permute.xlu1 %4856  ;;  %v1631_v56 = vsel %vm1583_vm1, %v1629_v53, %v1630_v46 }
 0x226   : > { %9719 = vst [vmem:[#allocation166_spill] sm:$0xff] %v7089_v0  ;;  %5001 = vrot.lane.b32.xlu0 %v4995_v10, %s5915_s19  ;;  %v9722_v10 = vrot.slane %v6670_v54, 2 }
 0x227   : > { %5176 = vrot.lane.b32.xlu1 %v5155_v11, %s5917_s21 }
 0x228   : > { %v7098_v49 = vpop.permute.xlu0 %4761  ;;  %v7109_v11 = vsel %vm1583_vm1, %v9722_v10, %v1770_v23  ;;  %v9725_v10 = vld [vmem:[#allocation73_spill] sm:$0xff]  ;;  %v7131_v23 = vsel %vm1438_vm0, %v1761_v5, %v1763_v31 }
 0x229   : > { %9720 = vst [vmem:[#allocation167_spill] sm:$0xff] %v7098_v49  ;;  %v7100_v0 = vpop.permute.xlu1 %4861  ;;  %v9723_v49 = vrot.slane %v6565_v21, 1 }
 0x22a   : > { %9721 = vst [vmem:[#allocation168_spill] sm:$0xff] %v7100_v0  ;;  %5006 = vrot.lane.b32.xlu0 %v9725_v10, %s5910_s14  ;;  %v1633_v10 = vsel %vm1583_vm1, %v1630_v46, %v9728_v41  ;;  %v5220_v41 = vpack.i.bf16 %v6777_v24, %v6745_v1  ;;  %v1507_v46 = vrot.slane %v6777_v24, 1  ;;  %v9736_v24 = vrot.slane %v6745_v1, 2 }
 0x22b   : > { %v1488_v0 = vsel %vm1438_vm0, %v1485_v19, %v9723_v49  ;;  %5186 = vrot.lane.b32.xlu1 %v7104_v47, %s5915_s19  ;;  %v5015_v2 = vpack.i.bf16 %v1633_v10, %v1631_v56 }
 0x22c   : > { %v7133_v26 = vpop.permute.xlu0 %4766  ;;  %v5010_v19 = vpack.i.bf16 %v1488_v0, %v1486_v52  ;;  %v1509_v52 = vrot.slane %v6794_v39, 1 }
 0x22d   : > { %9726 = vst [vmem:[#allocation169_spill] sm:$0xff] %v7133_v26  ;;  %v7135_v49 = vpop.permute.xlu1 %4911 }
 0x22e   : > { %9727 = vst [vmem:[#allocation170_spill] sm:$0xff] %v7135_v49  ;;  %5011 = vrot.lane.b32.xlu0 %v5010_v19, %s5911_s15  ;;  %v1510_v21 = vsel %vm1438_vm0, %v1507_v46, %v1509_v52  ;;  %v1653_v52 = vsel %vm1583_vm1, %v9736_v24, %v1652_v61 }
 0x22f   : > { %5211 = vrot.lane.b32.xlu1 %v6779_v4, %s5916_s20 }
 0x230   : > { %v7146_v31 = vpop.permute.xlu0 %4771 }
 0x231   : > { %v7148_v5 = vpop.permute.xlu1 %4941 }
 0x232   : > { %9729 = vst [vmem:[#allocation171_spill] sm:$0xff] %v7148_v5  ;;  %5016 = vrot.lane.b32.xlu0 %v5015_v2, %s5912_s16  ;;  %v9734_v5 = vrot.slane %v6745_v1, 1  ;;  %v1514_v1 = vrot.slane %v6825_v20, 1 }
 0x233   : > { %5216 = vrot.lane.b32.xlu1 %v6781_v63, %s5917_s21 }
 0x234   : > { %v7153_v0 = vpop.permute.xlu0 %4776  ;;  %v1508_v49 = vsel %vm1438_vm0, %v9734_v5, %v1507_v46 }
 0x235   : > { %9730 = vst [vmem:[#allocation172_spill] sm:$0xff] %v7153_v0  ;;  %v7155_v53 = vpop.permute.xlu1 %4946 }
 0x236   : > { %9731 = vst [vmem:[#allocation173_spill] sm:$0xff] %v7155_v53  ;;  %5021 = vrot.lane.b32.xlu0 %v5010_v19, %s5913_s17  ;;  %v1654_v53 = vrot.slane %v6794_v39, 2 }
 0x237   : > { %5221 = vrot.lane.b32.xlu1 %v5220_v41, %s5910_s14 }
 0x238   : > { %v7163_v10 = vpop.permute.xlu0 %4786 }
 0x239   : > { %9732 = vst [vmem:[#allocation174_spill] sm:$0xff] %v7163_v10  ;;  %v7165_v56 = vpop.permute.xlu1 %4951  ;;  %v5230_v10 = vpack.i.bf16 %v1510_v21, %v1508_v49 }
 0x23a   : > { %9733 = vst [vmem:[#allocation175_spill] sm:$0xff] %v7165_v56  ;;  %5026 = vrot.lane.b32.xlu0 %v5015_v2, %s5914_s18  ;;  %v1655_v56 = vsel %vm1583_vm1, %v1652_v61, %v1654_v53  ;;  %v9745_v53 = vld [vmem:[#allocation77_spill] sm:$0xff] }
 0x23b   : > { %5226 = vrot.lane.b32.xlu1 %v5220_v41, %s5915_s19  ;;  %v5235_v41 = vpack.i.bf16 %v1655_v56, %v1653_v52  ;;  %v1511_v56 = vrot.slane %v6803_v18, 1  ;;  %v1512_v52 = vrot.slane %v6812_v37, 1 }
 0x23c   : > { %v7175_v26 = vpop.permute.xlu0 %4791 }
 0x23d   : > { %v7177_v0 = vpop.permute.xlu1 %4956 }
 0x23e   : > { %9735 = vst [vmem:[#allocation176_spill] sm:$0xff] %v7177_v0  ;;  %5031 = vrot.lane.b32.xlu0 %v5010_v19, %s5916_s20  ;;  %v9778_v0 = vld [vmem:[#allocation97_spill] sm:$0xff] }
 0x23f   : > { %5231 = vrot.lane.b32.xlu1 %v5230_v10, %s5911_s15 }
 0x240   : > { %v7185_v39 = vpop.permute.xlu0 %4796 }
 0x241   : > { %9737 = vst [vmem:[#allocation177_spill] sm:$0xff] %v7185_v39  ;;  %v7187_v5 = vpop.permute.xlu1 %4961 }
 0x242   : > { %9738 = vst [vmem:[#allocation178_spill] sm:$0xff] %v7187_v5  ;;  %5036 = vrot.lane.b32.xlu0 %v5015_v2, %s5917_s21  ;;  %v9781_v5 = vld [vmem:[#allocation6_spill] sm:$0xff] }
 0x243   : > { %5236 = vrot.lane.b32.xlu1 %v5235_v41, %s5912_s16 }
 0x244   : > { %v7191_v21 = vpop.permute.xlu0 %4801 }
 0x245   : > { %9739 = vst [vmem:[#allocation179_spill] sm:$0xff] %v7191_v21  ;;  %v7193_v49 = vpop.permute.xlu1 %4976  ;;  %v9776_v21 = vld [vmem:[#allocation96_spill] sm:$0xff] }
 0x246   : > { %9740 = vst [vmem:[#allocation180_spill] sm:$0xff] %v7193_v49  ;;  %5046 = vrot.lane.b32.xlu0 %v6927_v35, %s5915_s19 }
 0x247   : > { %5241 = vrot.lane.b32.xlu1 %v5230_v10, %s5913_s17 }
 0x248   : > { %v7198_v24 = vpop.permute.xlu0 %4806 }
 0x249   : > { %9741 = vst [vmem:[#allocation181_spill] sm:$0xff] %v7198_v24  ;;  %v7200_v19 = vpop.permute.xlu1 %4981 }
 0x24a   : > { %9742 = vst [vmem:[#allocation182_spill] sm:$0xff] %v7200_v19  ;;  %5051 = vrot.lane.b32.xlu0 %v6597_v28, %s5913_s17  ;;  %v1513_v19 = vsel %vm1438_vm0, %v1511_v56, %v1512_v52  ;;  %v9775_v28 = vld [vmem:[#allocation3_spill] sm:$0xff] }
 0x24b   : > { %5246 = vrot.lane.b32.xlu1 %v5235_v41, %s5914_s18 }
 0x24c   : > { %v7205_v2 = vpop.permute.xlu0 %4836 }
 0x24d   : > { %9743 = vst [vmem:[#allocation183_spill] sm:$0xff] %v7205_v2  ;;  %v7207_v61 = vpop.permute.xlu1 %4986 }
 0x24e   : > { %9744 = vst [vmem:[#allocation184_spill] sm:$0xff] %v7207_v61  ;;  %5056 = vrot.lane.b32.xlu0 %v9745_v53, %s5914_s18  ;;  %v1656_v61 = vrot.slane %v6803_v18, 2  ;;  %v1659_v53 = vrot.slane %v6825_v20, 2 }
 0x24f   : > { %5251 = vrot.lane.b32.xlu1 %v5230_v10, %s5916_s20 }
 0x250   : > { %v7212_v35 = vpop.permute.xlu0 %4841 }
 0x251   : > { %9746 = vst [vmem:[#allocation185_spill] sm:$0xff] %v7212_v35  ;;  %v7214_v46 = vpop.permute.xlu1 %4991  ;;  %v1657_v35 = vrot.slane %v6812_v37, 2 }
 0x252   : > { %9747 = vst [vmem:[#allocation186_spill] sm:$0xff] %v7214_v46  ;;  %5086 = vrot.lane.b32.xlu0 %v6611_v13, %s5916_s20  ;;  %v7229_v46 = vpack.i.bf16 %v6812_v37, %v6803_v18  ;;  %v1515_v13 = vsel %vm1438_vm0, %v1512_v52, %v1514_v1 }
 0x253   : > { %5256 = vrot.lane.b32.xlu1 %v5235_v41, %s5917_s21  ;;  %v7243_v18 = vpack.i.bf16 %v1515_v13, %v1513_v19  ;;  %v1658_v37 = vsel %vm1583_vm1, %v1656_v61, %v1657_v35  ;;  %v1518_v13 = vrot.slane %v6847_v36, 1 }
 0x254   : > { %v7223_v2 = vpop.permute.xlu0 %4866 }
 0x255   : > { %9748 = vst [vmem:[#allocation187_spill] sm:$0xff] %v7223_v2  ;;  %v7225_v10 = vpop.permute.xlu1 %5041  ;;  %v1660_v2 = vsel %vm1583_vm1, %v1657_v35, %v1659_v53  ;;  %v1516_v35 = vrot.slane %v6838_v15, 1 }
 0x256   : > { %9749 = vst [vmem:[#allocation188_spill] sm:$0xff] %v7225_v10  ;;  %5091 = vrot.lane.b32.xlu0 %v6613_v43, %s5917_s21  ;;  %v7255_v52 = vpack.i.bf16 %v1660_v2, %v1658_v37  ;;  %v9756_v37 = vld [vmem:[#allocation98_spill] sm:$0xff] }
 0x257   : > { %5266 = vrot.lane.b32.xlu1 %v7229_v46, %s5915_s19 }
 0x258   : > { %v7239_v41 = vpop.permute.xlu0 %4871 }
 0x259   : > { %9750 = vst [vmem:[#allocation189_spill] sm:$0xff] %v7239_v41  ;;  %v7241_v10 = vpop.permute.xlu1 %5061 }
 0x25a   : > { %9751 = vst [vmem:[#allocation190_spill] sm:$0xff] %v7241_v10  ;;  %5106 = vrot.lane.b32.xlu0 %v7008_v45, %s5910_s14  ;;  %v5300_v45 = vpack.i.bf16 %v6838_v15, %v6825_v20  ;;  %v1517_v10 = vsel %vm1438_vm0, %v1514_v1, %v1516_v35 }
 0x25b   : > { %5291 = vrot.lane.b32.xlu1 %v7243_v18, %s5916_s20 }
 0x25c   : > { %v7251_v43 = vpop.permute.xlu0 %4876 }
 0x25d   : > { %9752 = vst [vmem:[#allocation191_spill] sm:$0xff] %v7251_v43  ;;  %v7253_v56 = vpop.permute.xlu1 %5066  ;;  %v1663_v43 = vrot.slane %v6847_v36, 2 }
 0x25e   : > { %9753 = vst [vmem:[#allocation192_spill] sm:$0xff] %v7253_v56  ;;  %5116 = vrot.lane.b32.xlu0 %v6689_v29, %s5911_s15 }
 0x25f   : > { %5296 = vrot.lane.b32.xlu1 %v7255_v52, %s5917_s21 }
 0x260   : > { %v7261_v19 = vpop.permute.xlu0 %4881 }
 0x261   : > { %9754 = vst [vmem:[#allocation193_spill] sm:$0xff] %v7261_v19  ;;  %v7263_v61 = vpop.permute.xlu1 %5071  ;;  %v1661_v19 = vrot.slane %v6838_v15, 2 }
 0x262   : > { %9755 = vst [vmem:[#allocation194_spill] sm:$0xff] %v7263_v61  ;;  %5121 = vrot.lane.b32.xlu0 %v9756_v37, %s5912_s16  ;;  %v1519_v61 = vsel %vm1438_vm0, %v1516_v35, %v1518_v13  ;;  %v9769_v13 = vld [vmem:[#allocation92_spill] sm:$0xff] }
 0x263   : > { %5301 = vrot.lane.b32.xlu1 %v5300_v45, %s5910_s14  ;;  %v1662_v15 = vsel %vm1583_vm1, %v1659_v53, %v1661_v19  ;;  %v9765_v53 = vld [vmem:[#allocation4_spill] sm:$0xff] }
 0x264   : > { %v7272_v2 = vpop.permute.xlu0 %4886 }
 0x265   : > { %9757 = vst [vmem:[#allocation98_spill] sm:$0xff] %v7272_v2  ;;  %v7274_v56 = vpop.permute.xlu1 %5076  ;;  %v5310_v2 = vpack.i.bf16 %v1519_v61, %v1517_v10 }
 0x266   : > { %9758 = vst [vmem:[#allocation195_spill] sm:$0xff] %v7274_v56  ;;  %5126 = vrot.lane.b32.xlu0 %v6689_v29, %s5913_s17  ;;  %v1664_v56 = vsel %vm1583_vm1, %v1661_v19, %v1663_v43  ;;  %v4448_v19 = vunpack.i.l.bf16 %v9769_v13 }
 0x267   : > { %5306 = vrot.lane.b32.xlu1 %v5300_v45, %s5915_s19  ;;  %v5315_v29 = vpack.i.bf16 %v1664_v56, %v1662_v15 }
 0x268   : > { %v7283_v41 = vpop.permute.xlu0 %4891 }
 0x269   : > { %9759 = vst [vmem:[#allocation196_spill] sm:$0xff] %v7283_v41  ;;  %v7285_v20 = vpop.permute.xlu1 %5081  ;;  %v9774_v41 = vld [vmem:[#allocation5_spill] sm:$0xff] }
 0x26a   : > { %9760 = vst [vmem:[#allocation197_spill] sm:$0xff] %v7285_v20  ;;  %5131 = vrot.lane.b32.xlu0 %v9756_v37, %s5914_s18  ;;  %v9771_v20 = vld [vmem:[#allocation93_spill] sm:$0xff] }
 0x26b   : > { %5311 = vrot.lane.b32.xlu1 %v5310_v2, %s5911_s15 }
 0x26c   : > { %v7292_v36 = vpop.permute.xlu0 %4896 }
 0x26d   : > { %9761 = vst [vmem:[#allocation198_spill] sm:$0xff] %v7292_v36  ;;  %v7294_v1 = vpop.permute.xlu1 %5096 }
 0x26e   : > { %9762 = vst [vmem:[#allocation199_spill] sm:$0xff] %v7294_v1  ;;  %5181 = vrot.lane.b32.xlu0 %v7104_v47, %s5910_s14  ;;  %v9768_v47 = vld [vmem:[#allocation87_spill] sm:$0xff]  ;;  %v9780_v1 = vld [vmem:[#allocation8_spill] sm:$0xff] }
 0x26f   : > { %5316 = vrot.lane.b32.xlu1 %v5315_v29, %s5912_s16  ;;  %v4444_v45 = vunpack.i.h.bf16 %v9768_v47  ;;  %v4443_v35 = vunpack.i.l.bf16 %v9768_v47  ;;  %v4488_v47 = vunpack.i.l.bf16 %v9778_v0 }
 0x270   : > { %v7299_v10 = vpop.permute.xlu0 %4901 }
 0x271   : > { %9763 = vst [vmem:[#allocation200_spill] sm:$0xff] %v7299_v10  ;;  %v7301_v43 = vpop.permute.xlu1 %5101  ;;  %v3312_v24 = vsel %vm3310_vm2, %v9774_v41, %v4444_v45  ;;  %v3311_v49 = vsel %vm3310_vm2, %v9775_v28, %v4443_v35  ;;  %v9779_v28 = vld [vmem:[#allocation94_spill] sm:$0xff] }
 0x272   : > { %9764 = vst [vmem:[#allocation201_spill] sm:$0xff] %v7301_v43  ;;  %5191 = vrot.lane.b32.xlu0 %v6779_v4, %s5911_s15  ;;  %v4449_v43 = vunpack.i.h.bf16 %v9769_v13  ;;  %v4458_v13 = vunpack.i.l.bf16 %v9776_v21  ;;  %v3376_v41 = vsel %vm3375_vm3, %v3311_v49, %v4448_v19  ;;  %v4484_v35 = vunpack.i.h.bf16 %v9779_v28  ;;  %v9784_v19 = vld [vmem:[#allocation12_spill] sm:$0xff] }
 0x273   : > { %5321 = vrot.lane.b32.xlu1 %v5310_v2, %s5913_s17  ;;  %v4483_v61 = vunpack.i.l.bf16 %v9779_v28 }
 0x274   : > { %v7308_v15 = vpop.permute.xlu0 %4906  ;;  %v3377_v45 = vsel %vm3375_vm3, %v3312_v24, %v4449_v43  ;;  %v1520_v24 = vrot.slane %v6857_v25, 1  ;;  %v4479_v43 = vunpack.i.h.bf16 %v6785_v60 }
 0x275   : > { %9766 = vst [vmem:[#allocation4_spill] sm:$0xff] %v7308_v15  ;;  %v7310_v56 = vpop.permute.xlu1 %5111  ;;  %v4454_v15 = vunpack.i.h.bf16 %v9771_v20 }
 0x276   : > { %9767 = vst [vmem:[#allocation202_spill] sm:$0xff] %v7310_v56  ;;  %5196 = vrot.lane.b32.xlu0 %v6781_v63, %s5912_s16  ;;  %v4453_v56 = vunpack.i.l.bf16 %v9771_v20  ;;  %v4459_v20 = vunpack.i.h.bf16 %v9776_v21 }
 0x277   : > { %5326 = vrot.lane.b32.xlu1 %v5315_v29, %s5914_s18  ;;  %v3356_v39 = vsel %vm3310_vm2, %v9780_v1, %v4454_v15  ;;  %v9785_v15 = vld [vmem:[#allocation103_spill] sm:$0xff] }
 0x278   : > { %v7322_v10 = vpop.permute.xlu0 %4916  ;;  %v3355_v21 = vsel %vm3310_vm2, %v9781_v5, %v4453_v56  ;;  %v3421_v1 = vsel %vm3375_vm3, %v3356_v39, %v4459_v20  ;;  %v4494_v56 = vunpack.i.h.bf16 %v9785_v15  ;;  %v4493_v28 = vunpack.i.l.bf16 %v9785_v15 }
 0x279   : > { %9772 = vst [vmem:[#allocation87_spill] sm:$0xff] %v7322_v10  ;;  %v7324_v36 = vpop.permute.xlu1 %5136  ;;  %v4489_v10 = vunpack.i.h.bf16 %v9778_v0  ;;  %v7353_v49 = vsel %vm3375_vm3, %v3355_v21, %v4458_v13  ;;  %v1521_v0 = vrot.slane %v6867_v7, 1  ;;  %v9786_v13 = vld [vmem:[#allocation11_spill] sm:$0xff]  ;;  %v4478_v39 = vunpack.i.l.bf16 %v6785_v60 }
 0x27a   : > { %9773 = vst [vmem:[#allocation92_spill] sm:$0xff] %v7324_v36  ;;  %5201 = vrot.lane.b32.xlu0 %v6779_v4, %s5913_s17  ;;  %v3357_v21 = vsel %vm3310_vm2, %v9786_v13, %v4488_v47  ;;  %v1665_v20 = vrot.slane %v6857_v25, 2  ;;  %v9790_v60 = vrot.slane %v6877_v58, 1  ;;  %v9791_v47 = vld [vmem:[#allocation10_spill] sm:$0xff] }
 0x27b   : > { %5331 = vrot.lane.b32.xlu1 %v5310_v2, %s5916_s20  ;;  %v3358_v5 = vsel %vm3310_vm2, %v9784_v19, %v4489_v10  ;;  %v1522_v13 = vsel %vm1438_vm0, %v1520_v24, %v1521_v0  ;;  %v3422_v10 = vsel %vm3375_vm3, %v3357_v21, %v4493_v28  ;;  %v3314_v24 = vsel %vm3310_vm2, %v9791_v47, %v4479_v43 }
 0x27c   : > { %v7348_v4 = vpop.permute.xlu0 %4921  ;;  %v3423_v36 = vsel %vm3375_vm3, %v3358_v5, %v4494_v56  ;;  %v4509_v28 = vunpack.i.h.bf16 %v6796_v42  ;;  %v4508_v5 = vunpack.i.l.bf16 %v6796_v42  ;;  %v4519_v43 = vunpack.i.h.bf16 %v6798_v12 }
 0x27d   : > { %9782 = vst [vmem:[#allocation93_spill] sm:$0xff] %v7348_v4  ;;  %v7350_v2 = vpop.permute.xlu1 %5141  ;;  %v1524_v4 = vsel %vm1438_vm0, %v1521_v0, %v9790_v60  ;;  %v4518_v47 = vunpack.i.l.bf16 %v6798_v12  ;;  %v4514_v56 = vunpack.i.h.bf16 %v6805_v62  ;;  %v3379_v3 = vsel %vm3375_vm3, %v3314_v24, %v4484_v35 }
 0x27e   : > { %9783 = vst [vmem:[#allocation5_spill] sm:$0xff] %v7350_v2  ;;  %5206 = vrot.lane.b32.xlu0 %v6781_v63, %s5914_s18  ;;  %v7379_v63 = vpack.i.bf16 %v6867_v7, %v6857_v25  ;;  %v9792_v2 = vld [vmem:[#allocation7_spill] sm:$0xff]  ;;  %v3442_v12 = vsel %vm3440_vm4, %v3377_v45, %v4509_v28 }
 0x27f   : > { %5336 = vrot.lane.b32.xlu1 %v5315_v29, %s5917_s21  ;;  %v1666_v29 = vrot.slane %v6867_v7, 2  ;;  %v3313_v0 = vsel %vm3310_vm2, %v9792_v2, %v4478_v39  ;;  %v9794_v39 = vrot.slane %v6877_v58, 2  ;;  %v9798_v28 = vld [vmem:[#allocation15_spill] sm:$0xff] }
 0x280   : > { %v7373_v19 = vpop.permute.xlu0 %4926  ;;  %v3378_v21 = vsel %vm3375_vm3, %v3313_v0, %v4483_v61  ;;  %v9795_v61 = vld [vmem:[#allocation112_spill] sm:$0xff] }
 0x281   : > { %9788 = vst [vmem:[#allocation3_spill] sm:$0xff] %v7373_v19  ;;  %v7375_v15 = vpop.permute.xlu1 %5146  ;;  %v1667_v2 = vsel %vm1583_vm1, %v1665_v20, %v1666_v29  ;;  %v1669_v42 = vsel %vm1583_vm1, %v1666_v29, %v9794_v39  ;;  %v4513_v20 = vunpack.i.l.bf16 %v6805_v62  ;;  %v4539_v29 = vunpack.i.h.bf16 %v6807_v27  ;;  %v9797_v19 = vld [vmem:[#allocation17_spill] sm:$0xff] }
 0x282   : > { %9789 = vst [vmem:[#allocation96_spill] sm:$0xff] %v7375_v15  ;;  %5261 = vrot.lane.b32.xlu0 %v7229_v46, %s5910_s14  ;;  %v7407_v15 = vpack.i.bf16 %v1524_v4, %v1522_v13  ;;  %v3441_v4 = vsel %vm3440_vm4, %v3376_v41, %v4508_v5  ;;  %v4538_v13 = vunpack.i.l.bf16 %v6807_v27  ;;  %v4523_v0 = vunpack.i.l.bf16 %v9795_v61  ;;  %v9799_v5 = vld [vmem:[#allocation113_spill] sm:$0xff] }
 0x283   : > { %5346 = vrot.lane.b32.xlu1 %v7379_v63, %s5915_s19  ;;  %v7433_v39 = vpack.i.bf16 %v1669_v42, %v1667_v2  ;;  %v3316_v45 = vsel %vm3310_vm2, %v9797_v19, %v4519_v43  ;;  %v3315_v41 = vsel %vm3310_vm2, %v9798_v28, %v4518_v47  ;;  %v4524_v62 = vunpack.i.h.bf16 %v9795_v61  ;;  %v9800_v47 = vld [vmem:[#allocation115_spill] sm:$0xff] }
 0x284   : > { %v7403_v60 = vpop.permute.xlu0 %4931  ;;  %v4564_v34 = vunpack.i.h.bf16 %v9799_v5  ;;  %v7442_v27 = vsel %vm3440_vm4, %v3421_v1, %v4514_v56  ;;  %v4528_v2 = vunpack.i.l.bf16 %v6827_v16  ;;  %v3485_v19 = vsel %vm3440_vm4, %v7353_v49, %v4513_v20 }
 0x285   : > { %9793 = vst [vmem:[#allocation97_spill] sm:$0xff] %v7403_v60  ;;  %v7405_v46 = vpop.permute.xlu1 %5151  ;;  %v4563_v60 = vunpack.i.l.bf16 %v9799_v5  ;;  %v3444_v43 = vsel %vm3440_vm4, %v3379_v3, %v4539_v29  ;;  %v4569_v1 = vunpack.i.h.bf16 %v9800_v47  ;;  %v4568_v56 = vunpack.i.l.bf16 %v9800_v47 }
 0x286   : > { %5271 = vrot.lane.b32.xlu0 %v7243_v18, %s5911_s15  ;;  %v3443_v42 = vsel %vm3440_vm4, %v3378_v21, %v4538_v13  ;;  %v7458_v61 = vsel %vm3375_vm3, %v3315_v41, %v4523_v0  ;;  %v5380_v5 = vpack.i.bf16 %v6887_v44, %v6877_v58  ;;  %v7467_v49 = vsel %vm3375_vm3, %v3316_v45, %v4524_v62  ;;  %v9803_v41 = vld [vmem:[#allocation118_spill] sm:$0xff]  ;;  %v9805_v45 = vld [vmem:[#allocation21_spill] sm:$0xff] }
 0x287   : > { %5371 = vrot.lane.b32.xlu1 %v7407_v15, %s5916_s20  ;;  %v7470_v3 = vsel %vm3440_vm4, %v3423_v36, %v4564_v34  ;;  %v1525_v20 = vrot.slane %v6887_v44, 1  ;;  %v1527_v21 = vrot.slane %v6897_v6, 1  ;;  %v7475_v29 = vsel %vm3440_vm4, %v3422_v10, %v4563_v60  ;;  %v9804_v34 = vld [vmem:[#allocation23_spill] sm:$0xff] }
 0x288   : > { %v7429_v35 = vpop.permute.xlu0 %4936  ;;  %v3506_v0 = vsel %vm3505_vm5, %v3441_v4, %v4528_v2  ;;  %v4533_v47 = vunpack.i.l.bf16 %v9803_v41  ;;  %v3318_v36 = vsel %vm3310_vm2, %v9804_v34, %v4569_v1  ;;  %v3317_v62 = vsel %vm3310_vm2, %v9805_v45, %v4568_v56  ;;  %v9806_v60 = vld [vmem:[#allocation119_spill] sm:$0xff] }
 0x289   : > { %9796 = vst [vmem:[#allocation94_spill] sm:$0xff] %v7429_v35  ;;  %v7431_v24 = vpop.permute.xlu1 %5156  ;;  %v4529_v35 = vunpack.i.h.bf16 %v6827_v16  ;;  %v4534_v10 = vunpack.i.h.bf16 %v9803_v41  ;;  %v1528_v25 = vsel %vm1438_vm0, %v1525_v20, %v1527_v21  ;;  %v1672_v1 = vrot.slane %v6897_v6, 2 }
 0x28a   : > { %5276 = vrot.lane.b32.xlu0 %v7255_v52, %s5912_s16  ;;  %v9810_v56 = vrot.slane %v6877_v58, 1  ;;  %v7502_v34 = vsel %vm3570_vm6, %v3506_v0, %v4533_v47  ;;  %v4574_v45 = vunpack.i.h.bf16 %v9806_v60 }
 0x28b   : > { %5376 = vrot.lane.b32.xlu1 %v7433_v39, %s5917_s21  ;;  %v3507_v13 = vsel %vm3505_vm5, %v3442_v12, %v4529_v35  ;;  %v9807_v12 = vld [vmem:[#allocation121_spill] sm:$0xff] }
 0x28c   : > { %v7460_v16 = vpop.permute.xlu0 %4966  ;;  %v4579_v35 = vunpack.i.h.bf16 %v9807_v12  ;;  %v4578_v4 = vunpack.i.l.bf16 %v9807_v12  ;;  %v1526_v41 = vsel %vm1438_vm0, %v9810_v56, %v1525_v20  ;;  %v9811_v12 = vld [vmem:[#allocation124_spill] sm:$0xff]  ;;  %v3572_v6 = vsel %vm3570_vm6, %v3507_v13, %v4534_v10  ;;  %v9812_v20 = vld [vmem:[#allocation126_spill] sm:$0xff] }
 0x28d   : > { %9801 = vst [vmem:[#allocation8_spill] sm:$0xff] %v7460_v16  ;;  %v7462_v28 = vpop.permute.xlu1 %5161  ;;  %v4584_v7 = vunpack.i.h.bf16 %v9811_v12  ;;  %v4554_v56 = vunpack.i.h.bf16 %v9812_v20  ;;  %v4553_v0 = vunpack.i.l.bf16 %v9812_v20  ;;  %v9816_v10 = vrot.slane %v6877_v58, 2  ;;  %v9825_v58 = vld [vmem:[#allocation134_spill] sm:$0xff] }
 0x28e   : > { %9802 = vst [vmem:[#allocation6_spill] sm:$0xff] %v7462_v28  ;;  %5281 = vrot.lane.b32.xlu0 %v7243_v18, %s5913_s17  ;;  %v4573_v28 = vunpack.i.l.bf16 %v9806_v60  ;;  %v1670_v18 = vrot.slane %v6887_v44, 2  ;;  %v3509_v47 = vsel %vm3505_vm5, %v3444_v43, %v4579_v35  ;;  %v3508_v60 = vsel %vm3505_vm5, %v3443_v42, %v4578_v4 }
 0x28f   : > { %5381 = vrot.lane.b32.xlu1 %v5380_v5, %s5910_s14  ;;  %v3383_v43 = vsel %vm3375_vm3, %v3318_v36, %v4574_v45  ;;  %v7535_v35 = vsel %vm3570_vm6, %v3509_v47, %v4584_v7  ;;  %v9819_v45 = vld [vmem:[#allocation132_spill] sm:$0xff]  ;;  %v4604_v44 = vunpack.i.h.bf16 %v9825_v58 }
 0x290   : > { %v7491_v2 = vpop.permute.xlu0 %4971  ;;  %v7512_v21 = vsel %vm3375_vm3, %v3317_v62, %v4573_v28  ;;  %v1673_v62 = vsel %vm1583_vm1, %v1670_v18, %v1672_v1  ;;  %v1671_v20 = vsel %vm1583_vm1, %v9816_v10, %v1670_v18  ;;  %v3551_v1 = vsel %vm3505_vm5, %v7442_v27, %v4554_v56  ;;  %v9821_v10 = vld [vmem:[#allocation25_spill] sm:$0xff]  ;;  %v9822_v27 = vld [vmem:[#allocation24_spill] sm:$0xff] }
 0x291   : > { %9808 = vst [vmem:[#allocation12_spill] sm:$0xff] %v7491_v2  ;;  %v7493_v16 = vpop.permute.xlu1 %5166  ;;  %v4583_v2 = vunpack.i.l.bf16 %v9811_v12  ;;  %v3550_v18 = vsel %vm3505_vm5, %v3485_v19, %v4553_v0  ;;  %v4599_v47 = vunpack.i.h.bf16 %v9819_v45  ;;  %v4598_v56 = vunpack.i.l.bf16 %v9819_v45  ;;  %v9823_v0 = vld [vmem:[#allocation133_spill] sm:$0xff] }
 0x292   : > { %9809 = vst [vmem:[#allocation103_spill] sm:$0xff] %v7493_v16  ;;  %5286 = vrot.lane.b32.xlu0 %v7255_v52, %s5914_s18  ;;  %v7522_v52 = vpack.i.bf16 %v1528_v25, %v1526_v41  ;;  %v9817_v25 = vld [vmem:[#allocation129_spill] sm:$0xff] }
 0x293   : > { %5386 = vrot.lane.b32.xlu1 %v5380_v5, %s5915_s19  ;;  %v9815_v5 = vld [vmem:[#allocation127_spill] sm:$0xff]  ;;  %v7532_v42 = vsel %vm3570_vm6, %v3508_v60, %v4583_v2  ;;  %v4558_v4 = vunpack.i.l.bf16 %v9817_v25  ;;  %v4559_v36 = vunpack.i.h.bf16 %v9817_v25  ;;  %v9818_v2 = vld [vmem:[#allocation130_spill] sm:$0xff]  ;;  %v4609_v25 = vunpack.i.h.bf16 %v9823_v0 }
 0x294   : > { %v7518_v12 = vpop.permute.xlu0 %4996  ;;  %v4589_v13 = vunpack.i.h.bf16 %v9815_v5  ;;  %v4588_v28 = vunpack.i.l.bf16 %v9815_v5  ;;  %v4593_v41 = vunpack.i.l.bf16 %v9818_v2  ;;  %v4594_v7 = vunpack.i.h.bf16 %v9818_v2 }
 0x295   : > { %9813 = vst [vmem:[#allocation11_spill] sm:$0xff] %v7518_v12  ;;  %v7520_v16 = vpop.permute.xlu1 %5171  ;;  %v7562_v2 = vsel %vm3570_vm6, %v3550_v18, %v4558_v4  ;;  %v4608_v12 = vunpack.i.l.bf16 %v9823_v0 }
 0x296   : > { %9814 = vst [vmem:[#allocation10_spill] sm:$0xff] %v7520_v16  ;;  %5341 = vrot.lane.b32.xlu0 %v7379_v63, %s5910_s14  ;;  %v7553_v63 = vpack.i.bf16 %v1673_v62, %v1671_v20  ;;  %v3362_v16 = vsel %vm3310_vm2, %v9821_v10, %v4589_v13  ;;  %v3361_v19 = vsel %vm3310_vm2, %v9822_v27, %v4588_v28  ;;  %9824 = vst [vmem:[#allocation112_spill] sm:$0xff] %v7562_v2  ;;  %v9828_v20 = vld [vmem:[#allocation135_spill] sm:$0xff] }
 0x297   : > { %5391 = vrot.lane.b32.xlu1 %v7522_v52, %s5911_s15  ;;  %v4603_v62 = vunpack.i.l.bf16 %v9825_v58  ;;  %v7572_v13 = vsel %vm3570_vm6, %v3551_v1, %v4559_v36  ;;  %v7575_v28 = vsel %vm3375_vm3, %v3361_v19, %v4593_v41  ;;  %v4614_v4 = vunpack.i.h.bf16 %v9828_v20  ;;  %v9831_v41 = vld [vmem:[#allocation138_spill] sm:$0xff] }
 0x298   : > { %v7549_v60 = vpop.permute.xlu0 %5001  ;;  %9826 = vst [vmem:[#allocation17_spill] sm:$0xff] %v7572_v13  ;;  %9827 = vst [vmem:[#allocation15_spill] sm:$0xff] %v7575_v28  ;;  %v4613_v18 = vunpack.i.l.bf16 %v9828_v20  ;;  %v7580_v45 = vsel %vm3375_vm3, %v3362_v16, %v4594_v7  ;;  %v3553_v58 = vsel %vm3505_vm5, %v7470_v3, %v4599_v47  ;;  %v3552_v1 = vsel %vm3505_vm5, %v7475_v29, %v4598_v56  ;;  %v9834_v56 = vld [vmem:[#allocation140_spill] sm:$0xff] }
 0x299   : > { %v7551_v5 = vpop.permute.xlu1 %5176  ;;  %9829 = vst [vmem:[#allocation113_spill] sm:$0xff] %v7580_v45  ;;  %v3446_v36 = vsel %vm3440_vm4, %v7467_v49, %v4609_v25  ;;  %v4654_v19 = vunpack.i.h.bf16 %v9831_v41  ;;  %v4653_v0 = vunpack.i.l.bf16 %v9831_v41  ;;  %v3445_v7 = vsel %vm3440_vm4, %v7458_v61, %v4608_v12  ;;  %v9835_v12 = vld [vmem:[#allocation136_spill] sm:$0xff] }
 0x29a   : > { %9820 = vst [vmem:[#allocation7_spill] sm:$0xff] %v7551_v5  ;;  %5351 = vrot.lane.b32.xlu0 %v7407_v15, %s5911_s15  ;;  %v7598_v3 = vsel %vm3570_vm6, %v3552_v1, %v4603_v62  ;;  %v7601_v47 = vsel %vm3570_vm6, %v3553_v58, %v4604_v44  ;;  %v3637_v49 = vsel %vm3635_vm7, %v3572_v6, %v4614_v4  ;;  %v4624_v25 = vunpack.i.h.bf16 %v9834_v56  ;;  %v9839_v28 = vld [vmem:[#allocation144_spill] sm:$0xff]  ;;  %v9842_v4 = vld [vmem:[#allocation142_spill] sm:$0xff] }
 0x29b   : > { %5396 = vrot.lane.b32.xlu1 %v7553_v63, %s5912_s16  ;;  %9832 = vst [vmem:[#allocation118_spill] sm:$0xff] %v7598_v3  ;;  %9833 = vst [vmem:[#allocation23_spill] sm:$0xff] %v7601_v47  ;;  %v3636_v29 = vsel %vm3635_vm7, %v7502_v34, %v4613_v18  ;;  %v4623_v61 = vunpack.i.l.bf16 %v9834_v56  ;;  %v7619_v1 = vsel %vm3440_vm4, %v3383_v43, %v4654_v19  ;;  %v9836_v34 = vld [vmem:[#allocation139_spill] sm:$0xff]  ;;  %v4689_v45 = vunpack.i.h.bf16 %v9839_v28  ;;  %v9847_v5 = vld [vmem:[#allocation62_spill] sm:$0xff] }
 0x29c   : > { %v7584_v10 = vpop.permute.xlu0 %5006  ;;  %v7623_v6 = vsel %vm3440_vm4, %v7512_v21, %v4653_v0  ;;  %v9837_v18 = vld [vmem:[#allocation143_spill] sm:$0xff]  ;;  %v9840_v21 = vld [vmem:[#allocation29_spill] sm:$0xff]  ;;  %v4688_v44 = vunpack.i.l.bf16 %v9839_v28  ;;  %v4694_v16 = vunpack.i.h.bf16 %v6947_v14 }
 0x29d   : > { %9830 = vst [vmem:[#allocation115_spill] sm:$0xff] %v7584_v10  ;;  %v7586_v27 = vpop.permute.xlu1 %5186  ;;  %v4628_v41 = vunpack.i.l.bf16 %v9837_v18  ;;  %v4629_v62 = vunpack.i.h.bf16 %v9837_v18  ;;  %v3320_v43 = vsel %vm3310_vm2, %v9840_v21, %v4624_v25  ;;  %v9841_v19 = vld [vmem:[#allocation27_spill] sm:$0xff]  ;;  %v4634_v25 = vunpack.i.h.bf16 %v6945_v33  ;;  %v9843_v28 = vld [vmem:[#allocation37_spill] sm:$0xff] }
 0x29e   : > { %5356 = vrot.lane.b32.xlu0 %v7433_v39, %s5912_s16  ;;  %v3319_v0 = vsel %vm3310_vm2, %v9841_v19, %v4623_v61  ;;  %v4633_v21 = vunpack.i.l.bf16 %v6945_v33  ;;  %v4693_v61 = vunpack.i.l.bf16 %v6947_v14  ;;  %v3322_v56 = vsel %vm3310_vm2, %v9843_v28, %v4689_v45 }
 0x29f   : > { %5401 = vrot.lane.b32.xlu1 %v7522_v52, %s5913_s17  ;;  %v7648_v13 = vsel %vm3375_vm3, %v3319_v0, %v4628_v41  ;;  %v7654_v19 = vsel %vm3375_vm3, %v3320_v43, %v4629_v62  ;;  %v1534_v18 = vrot.slane %v9844_v59, 1  ;;  %v9845_v41 = vld [vmem:[#allocation34_spill] sm:$0xff]  ;;  %v4638_v0 = vunpack.i.l.bf16 %v6963_v38 }
 0x2a0   : > { %v7614_v20 = vpop.permute.xlu0 %5011  ;;  %v3321_v33 = vsel %vm3310_vm2, %v9845_v41, %v4688_v44  ;;  %v4644_v62 = vunpack.i.h.bf16 %v6974_v40  ;;  %v4643_v43 = vunpack.i.l.bf16 %v6974_v40  ;;  %v1679_v45 = vrot.slane %v9844_v59, 2 }
 0x2a1   : > { %v7616_v58 = vpop.permute.xlu1 %5211  ;;  %v4649_v28 = vunpack.i.h.bf16 %v6981_v50  ;;  %v4648_v14 = vunpack.i.l.bf16 %v6981_v50  ;;  %v3510_v44 = vsel %vm3505_vm5, %v3445_v7, %v4633_v21  ;;  %v7679_v41 = vsel %vm3375_vm3, %v3321_v33, %v4693_v61 }
 0x2a2   : > { %5361 = vrot.lane.b32.xlu0 %v7407_v15, %s5913_s17  ;;  %v4639_v40 = vunpack.i.h.bf16 %v6963_v38  ;;  %v7683_v47 = vsel %vm3375_vm3, %v3322_v56, %v4694_v16  ;;  %v4699_v10 = vunpack.i.h.bf16 %v6965_v51  ;;  %v4698_v50 = vunpack.i.l.bf16 %v6965_v51 }
 0x2a3   : > { %5406 = vrot.lane.b32.xlu1 %v7553_v63, %s5914_s18  ;;  %v3702_v38 = vsel %vm3700_vm8, %v3637_v49, %v4644_v62  ;;  %v3701_v16 = vsel %vm3700_vm8, %v3636_v29, %v4643_v43  ;;  %v9849_v56 = vrot.slane %v9765_v53, 1  ;;  %v9853_v33 = vrot.slane %v9765_v53, 2 }
 0x2a4   : > { %v7643_v2 = vpop.permute.xlu0 %5016  ;;  %v3766_v49 = vsel %vm3765_vm9, %v3701_v16, %v4648_v14  ;;  %v3767_v29 = vsel %vm3765_vm9, %v3702_v38, %v4649_v28  ;;  %v4703_v43 = vunpack.i.l.bf16 %v6976_v32  ;;  %v3512_v53 = vsel %vm3505_vm5, %v7623_v6, %v4698_v50  ;;  %v9854_v14 = vld [vmem:[#allocation45_spill] sm:$0xff]  ;;  %v9856_v16 = vld [vmem:[#allocation38_spill] sm:$0xff] }
 0x2a5   : > { %v7645_v15 = vpop.permute.xlu1 %5216  ;;  %v1537_v51 = vsel %vm1438_vm0, %v1534_v18, %v9849_v56 }
 0x2a6   : > { %5366 = vrot.lane.b32.xlu0 %v7433_v39, %s5914_s18  ;;  %v7742_v50 = vsel %vm3570_vm6, %v3512_v53, %v4703_v43  ;;  %v9860_v43 = vld [vmem:[#allocation147_spill] sm:$0xff] }
 0x2a7   : > { %5411 = vrot.lane.b32.xlu1 %v7522_v52, %s5916_s20  ;;  %v3511_v52 = vsel %vm3505_vm5, %v3446_v36, %v4634_v25  ;;  %v9848_v36 = vrot.slane %v9842_v4, 1  ;;  %v7695_v25 = vsel %vm3570_vm6, %v3510_v44, %v4638_v0  ;;  %v1682_v0 = vsel %vm1583_vm1, %v1679_v45, %v9853_v33 }
 0x2a8   : > { %v7672_v3 = vpop.permute.xlu0 %5021  ;;  %v7715_v62 = vsel %vm3570_vm6, %v3511_v52, %v4639_v40  ;;  %v4719_v44 = vunpack.i.h.bf16 %v6983_v48  ;;  %v4659_v40 = vunpack.i.h.bf16 %v6988_v30  ;;  %v4714_v33 = vunpack.i.h.bf16 %v7045_v55 }
 0x2a9   : > { %9846 = vst [vmem:[#allocation21_spill] sm:$0xff] %v7672_v3  ;;  %v7674_v39 = vpop.permute.xlu1 %5221  ;;  %v1535_v7 = vsel %vm1438_vm0, %v9848_v36, %v1534_v18  ;;  %v4704_v18 = vunpack.i.h.bf16 %v6976_v32  ;;  %v3513_v36 = vsel %vm3505_vm5, %v7619_v1, %v4699_v10  ;;  %v3830_v32 = vpack.c.bf16 %v3767_v29, %v3766_v49 }
 0x2aa   : > { %5426 = vrot.lane.b32.xlu0 %v9847_v5, %s5915_s19  ;;  %v7729_v28 = vpack.i.bf16 %v1537_v51, %v1535_v7  ;;  %v4658_v10 = vunpack.i.l.bf16 %v6988_v30  ;;  %v5430_v1 = vpack.i.bf16 %v7083_v8, %v6670_v54  ;;  %v9855_v7 = vld [vmem:[#allocation39_spill] sm:$0xff]  ;;  %v4724_v30 = vunpack.i.h.bf16 %v6990_v9 }
 0x2ab   : > { %5416 = vrot.lane.b32.xlu1 %v7553_v63, %s5917_s21  ;;  %v9852_v63 = vrot.slane %v9842_v4, 2  ;;  %v3366_v38 = vsel %vm3310_vm2, %v9855_v7, %v4719_v44  ;;  %v9857_v51 = vld [vmem:[#allocation155_spill] sm:$0xff]  ;;  %v7761_v49 = vsel %vm3863_vm10, %v3830_v32, 0  ;;  %v3639_v29 = vsel %vm3635_vm7, %v7535_v35, %v4659_v40  ;;  %v9863_v32 = vld [vmem:[#allocation152_spill] sm:$0xff]  ;;  %v9864_v35 = vld [vmem:[#allocation154_spill] sm:$0xff] }
 0x2ac   : > { %v7702_v21 = vpop.permute.xlu0 %5026  ;;  %v4709_v8 = vunpack.i.h.bf16 %v9857_v51  ;;  %v4708_v54 = vunpack.i.l.bf16 %v9857_v51  ;;  %9859 = vst [vmem:[#allocation124_spill] sm:$0xff] %v7761_v49  ;;  %v4664_v44 = vunpack.i.h.bf16 %v9860_v43  ;;  %v4783_v7 = vunpack.i.l.bf16 %v9863_v32  ;;  %v9865_v51 = vld [vmem:[#allocation57_spill] sm:$0xff] }
 0x2ad   : > { %9850 = vst [vmem:[#allocation119_spill] sm:$0xff] %v7702_v21  ;;  %v7704_v5 = vpop.permute.xlu1 %5226  ;;  %v1680_v61 = vsel %vm1583_vm1, %v9852_v63, %v1679_v45  ;;  %v4718_v45 = vunpack.i.l.bf16 %v6983_v48  ;;  %v9858_v63 = vld [vmem:[#allocation46_spill] sm:$0xff]  ;;  %v4814_v40 = vunpack.i.h.bf16 %v9864_v35  ;;  %v9868_v21 = vld [vmem:[#allocation35_spill] sm:$0xff] }
 0x2ae   : > { %9851 = vst [vmem:[#allocation121_spill] sm:$0xff] %v7704_v5  ;;  %5436 = vrot.lane.b32.xlu0 %v9854_v14, %s5916_s20  ;;  %v7731_v52 = vpack.i.bf16 %v1682_v0, %v1680_v61  ;;  %v4723_v61 = vunpack.i.l.bf16 %v6990_v9  ;;  %v4713_v0 = vunpack.i.l.bf16 %v7045_v55  ;;  %v9913_v5 = vld [vmem:[#allocation170_spill] sm:$0xff] }
 0x2af   : > { %5421 = vrot.lane.b32.xlu1 %v9756_v37, %s5917_s21  ;;  %v7745_v37 = vsel %vm3570_vm6, %v3513_v36, %v4704_v18  ;;  %v3365_v56 = vsel %vm3310_vm2, %v9856_v16, %v4718_v45  ;;  %v3638_v18 = vsel %vm3635_vm7, %v7532_v42, %v4658_v10  ;;  %v4663_v36 = vunpack.i.l.bf16 %v9860_v43  ;;  %v9862_v45 = vld [vmem:[#allocation149_spill] sm:$0xff]  ;;  %v9867_v43 = vld [vmem:[#allocation156_spill] sm:$0xff] }
 0x2b0   : > { %v7737_v6 = vpop.permute.xlu0 %5031  ;;  %v4669_v14 = vunpack.i.h.bf16 %v9862_v45  ;;  %v4668_v55 = vunpack.i.l.bf16 %v9862_v45  ;;  %v4813_v42 = vunpack.i.l.bf16 %v9864_v35  ;;  %v3704_v10 = vsel %vm3700_vm8, %v3639_v29, %v4709_v8 }
 0x2b1   : > { %v7739_v48 = vpop.permute.xlu1 %5231  ;;  %v3703_v16 = vsel %vm3700_vm8, %v3638_v18, %v4708_v54  ;;  %v4819_v45 = vunpack.i.h.bf16 %v9867_v43  ;;  %v3769_v35 = vsel %vm3765_vm9, %v3704_v10, %v4714_v33  ;;  %v3364_v8 = vsel %vm3310_vm2, %v9868_v21, %v4664_v44  ;;  %v9869_v54 = vld [vmem:[#allocation30_spill] sm:$0xff] }
 0x2b2   : > { %5446 = vrot.lane.b32.xlu0 %v9858_v63, %s5917_s21  ;;  %v9866_v63 = vpack.i.bf16 %v7131_v23, %v7122_v57  ;;  %v3768_v49 = vsel %vm3765_vm9, %v3703_v16, %v4713_v0  ;;  %v3363_v29 = vsel %vm3310_vm2, %v9869_v54, %v4663_v36  ;;  %v4824_v18 = vunpack.i.h.bf16 %v7047_v17  ;;  %v9871_v36 = vld [vmem:[#allocation157_spill] sm:$0xff] }
 0x2b3   : > { %5431 = vrot.lane.b32.xlu1 %v5430_v1, %s5915_s19  ;;  %v4784_v1 = vunpack.i.h.bf16 %v9863_v32  ;;  %v4818_v32 = vunpack.i.l.bf16 %v9867_v43  ;;  %v3431_v0 = vsel %vm3375_vm3, %v3366_v38, %v4724_v30  ;;  %v3428_v33 = vsel %vm3375_vm3, %v3363_v29, %v4668_v55  ;;  %v9872_v16 = vld [vmem:[#allocation41_spill] sm:$0xff] }
 0x2b4   : > { %v7769_v53 = vpop.permute.xlu0 %5036  ;;  %v3429_v10 = vsel %vm3375_vm3, %v3364_v8, %v4669_v14  ;;  %v3451_v44 = vsel %vm3440_vm4, %v7679_v41, %v4783_v7  ;;  %v3831_v38 = vpack.c.bf16 %v3769_v35, %v3768_v49  ;;  %v7817_v30 = vsel %vm3440_vm4, %v3431_v0, %v4814_v40  ;;  %v9875_v14 = vld [vmem:[#allocation47_spill] sm:$0xff]  ;;  %v9880_v8 = vld [vmem:[#allocation160_spill] sm:$0xff]  ;;  %v9882_v0 = vld [vmem:[#allocation42_spill] sm:$0xff] }
 0x2b5   : > { %9861 = vst [vmem:[#allocation126_spill] sm:$0xff] %v7769_v53  ;;  %v7771_v9 = vpop.permute.xlu1 %5236  ;;  %v3452_v21 = vsel %vm3440_vm4, %v7683_v47, %v4784_v1  ;;  %v9874_v47 = vld [vmem:[#allocation49_spill] sm:$0xff]  ;;  %v3325_v55 = vsel %vm3310_vm2, %v9875_v14, %v4818_v32  ;;  %v4833_v54 = vunpack.i.l.bf16 %v9880_v8  ;;  %v9887_v14 = vld [vmem:[#allocation162_spill] sm:$0xff]  ;;  %v5188_v53 = vunpack.i.l.bf16 %v7586_v27 }
 0x2b6   : > { %5456 = vrot.lane.b32.xlu0 %v9865_v51, %s5915_s19  ;;  %v4823_v51 = vunpack.i.l.bf16 %v7047_v17  ;;  %v4739_v17 = vunpack.i.h.bf16 %v9871_v36  ;;  %v3326_v41 = vsel %vm3310_vm2, %v9874_v47, %v4819_v45  ;;  %v9879_v45 = vld [vmem:[#allocation159_spill] sm:$0xff]  ;;  %v7855_v47 = vsel %vm3863_vm10, %v3831_v38, 0 }
 0x2b7   : > { %5441 = vrot.lane.b32.xlu1 %v9866_v63, %s5916_s20  ;;  %v3430_v63 = vsel %vm3375_vm3, %v3365_v56, %v4723_v61  ;;  %v9873_v56 = vpack.i.bf16 %v7112_v22, %v7109_v11  ;;  %v7830_v7 = vsel %vm3375_vm3, %v3326_v41, %v4824_v18  ;;  %v4738_v22 = vunpack.i.l.bf16 %v9871_v36  ;;  %v9876_v11 = vld [vmem:[#allocation158_spill] sm:$0xff]  ;;  %9886 = vst [vmem:[#allocation132_spill] sm:$0xff] %v7855_v47 }
 0x2b8   : > { %v7797_v57 = vpop.permute.xlu0 %5046  ;;  %v7820_v61 = vsel %vm3440_vm4, %v3430_v63, %v4813_v42  ;;  %v7827_v1 = vsel %vm3375_vm3, %v3325_v55, %v4823_v51  ;;  %v4828_v49 = vunpack.i.l.bf16 %v9876_v11  ;;  %v4829_v43 = vunpack.i.h.bf16 %v9876_v11  ;;  %v9881_v51 = vld [vmem:[#allocation161_spill] sm:$0xff]  ;;  %v9883_v36 = vld [vmem:[#allocation86_spill] sm:$0xff]  ;;  %v9888_v55 = vld [vmem:[#allocation163_spill] sm:$0xff] }
 0x2b9   : > { %v7799_v23 = vpop.permute.xlu1 %5241  ;;  %v4744_v35 = vunpack.i.h.bf16 %v9879_v45  ;;  %v4743_v32 = vunpack.i.l.bf16 %v9879_v45  ;;  %v7844_v29 = vsel %vm3440_vm4, %v7654_v19, %v4739_v17  ;;  %v4834_v18 = vunpack.i.h.bf16 %v9880_v8 }
 0x2ba   : > { %9870 = vst [vmem:[#allocation127_spill] sm:$0xff] %v7799_v23  ;;  %5466 = vrot.lane.b32.xlu0 %v9872_v16, %s5916_s20  ;;  %v4749_v63 = vunpack.i.h.bf16 %v9881_v51  ;;  %v9884_v16 = vld [vmem:[#allocation82_spill] sm:$0xff]  ;;  %v4748_v41 = vunpack.i.l.bf16 %v9881_v51  ;;  %v4849_v19 = vunpack.i.h.bf16 %v9887_v14  ;;  %v4848_v17 = vunpack.i.l.bf16 %v9887_v14 }
 0x2bb   : > { %5451 = vrot.lane.b32.xlu1 %v9873_v56, %s5917_s21  ;;  %v9885_v56 = vpack.i.bf16 %v9883_v36, %v9884_v16  ;;  %v4754_v11 = vunpack.i.h.bf16 %v9888_v55  ;;  %v3449_v45 = vsel %vm3440_vm4, %v7648_v13, %v4738_v22  ;;  %v3516_v8 = vsel %vm3505_vm5, %v3451_v44, %v4828_v49  ;;  %v9889_v36 = vld [vmem:[#allocation164_spill] sm:$0xff] }
 0x2bc   : > { %v7834_v40 = vpop.permute.xlu0 %5051  ;;  %v4853_v16 = vunpack.i.l.bf16 %v9889_v36  ;;  %v3517_v51 = vsel %vm3505_vm5, %v3452_v21, %v4829_v43  ;;  %v3641_v14 = vsel %vm3635_vm7, %v7715_v62, %v4744_v35  ;;  %v3640_v47 = vsel %vm3635_vm7, %v7695_v25, %v4743_v32  ;;  %v9895_v21 = vld [vmem:[#allocation36_spill] sm:$0xff]  ;;  %v9897_v43 = vld [vmem:[#allocation89_spill] sm:$0xff]  ;;  %v9899_v32 = vld [vmem:[#allocation51_spill] sm:$0xff] }
 0x2bd   : > { %9877 = vst [vmem:[#allocation129_spill] sm:$0xff] %v7834_v40  ;;  %v7836_v42 = vpop.permute.xlu1 %5246  ;;  %v7876_v13 = vsel %vm3570_vm6, %v3516_v8, %v4833_v54  ;;  %v7879_v44 = vsel %vm3570_vm6, %v3517_v51, %v4834_v18  ;;  %v7882_v22 = vsel %vm3440_vm4, %v3429_v10, %v4749_v63  ;;  %v4854_v49 = vunpack.i.h.bf16 %v9889_v36  ;;  %v9896_v62 = vld [vmem:[#allocation100_spill] sm:$0xff]  ;;  %v9900_v10 = vld [vmem:[#allocation50_spill] sm:$0xff]  ;;  %v9901_v63 = vld [vmem:[#allocation43_spill] sm:$0xff] }
 0x2be   : > { %9878 = vst [vmem:[#allocation130_spill] sm:$0xff] %v7836_v42  ;;  %5476 = vrot.lane.b32.xlu0 %v9882_v0, %s5917_s21  ;;  %v4753_v0 = vunpack.i.l.bf16 %v9888_v55  ;;  %9892 = vst [vmem:[#allocation133_spill] sm:$0xff] %v7876_v13  ;;  %v9894_v55 = vld [vmem:[#allocation165_spill] sm:$0xff]  ;;  %v9898_v25 = vpack.i.bf16 %v9896_v62, %v9897_v43  ;;  %v7893_v35 = vsel %vm3440_vm4, %v3428_v33, %v4748_v41  ;;  %v9902_v36 = vld [vmem:[#allocation40_spill] sm:$0xff]  ;;  %v4914_v13 = vunpack.i.h.bf16 %v9913_v5 }
 0x2bf   : > { %5461 = vrot.lane.b32.xlu1 %v9885_v56, %s5915_s19  ;;  %9893 = vst [vmem:[#allocation134_spill] sm:$0xff] %v7879_v44  ;;  %v3370_v54 = vsel %vm3310_vm2, %v9899_v32, %v4849_v19  ;;  %v3369_v18 = vsel %vm3310_vm2, %v9900_v10, %v4848_v17  ;;  %v3324_v8 = vsel %vm3310_vm2, %v9901_v63, %v4754_v11  ;;  %v4759_v62 = vunpack.i.h.bf16 %v9894_v55  ;;  %v9903_v43 = vld [vmem:[#allocation166_spill] sm:$0xff]  ;;  %v9905_v32 = vld [vmem:[#allocation167_spill] sm:$0xff] }
 0x2c0   : > { %v7866_v56 = vpop.permute.xlu0 %5056  ;;  %v3323_v51 = vsel %vm3310_vm2, %v9902_v36, %v4753_v0  ;;  %v4858_v19 = vunpack.i.l.bf16 %v9903_v43  ;;  %v4763_v17 = vunpack.i.l.bf16 %v9905_v32  ;;  %v4774_v10 = vunpack.i.h.bf16 %v7146_v31  ;;  %v9907_v36 = vld [vmem:[#allocation32_spill] sm:$0xff]  ;;  %v9909_v40 = vld [vmem:[#allocation90_spill] sm:$0xff]  ;;  %v9916_v44 = vld [vmem:[#allocation75_spill] sm:$0xff] }
 0x2c1   : > { %9890 = vst [vmem:[#allocation25_spill] sm:$0xff] %v7866_v56  ;;  %v7868_v38 = vpop.permute.xlu1 %5251  ;;  %v4758_v56 = vunpack.i.l.bf16 %v9894_v55  ;;  %v4773_v11 = vunpack.i.l.bf16 %v7146_v31  ;;  %v3435_v0 = vsel %vm3375_vm3, %v3370_v54, %v4854_v49  ;;  %v9906_v55 = vld [vmem:[#allocation172_spill] sm:$0xff] }
 0x2c2   : > { %9891 = vst [vmem:[#allocation24_spill] sm:$0xff] %v7868_v38  ;;  %5486 = vrot.lane.b32.xlu0 %v9895_v21, %s5915_s19  ;;  %v3434_v21 = vsel %vm3375_vm3, %v3369_v18, %v4853_v16  ;;  %v4779_v18 = vunpack.i.h.bf16 %v9906_v55  ;;  %v4778_v63 = vunpack.i.l.bf16 %v9906_v55  ;;  %v9911_v31 = vld [vmem:[#allocation168_spill] sm:$0xff] }
 0x2c3   : > { %5471 = vrot.lane.b32.xlu1 %v9898_v25, %s5916_s20  ;;  %v4859_v25 = vunpack.i.h.bf16 %v9903_v43  ;;  %v7916_v16 = vsel %vm3375_vm3, %v3323_v51, %v4758_v56  ;;  %v9908_v43 = vld [vmem:[#allocation101_spill] sm:$0xff]  ;;  %v4864_v38 = vunpack.i.h.bf16 %v9911_v31  ;;  %v4863_v49 = vunpack.i.l.bf16 %v9911_v31 }
 0x2c4   : > { %v7906_v33 = vpop.permute.xlu0 %5086  ;;  %v9910_v3 = vpack.i.bf16 %v9908_v43, %v9909_v40  ;;  %v9912_v56 = vld [vmem:[#allocation169_spill] sm:$0xff]  ;;  %v7931_v51 = vsel %vm3375_vm3, %v3324_v8, %v4759_v62  ;;  %v3514_v43 = vsel %vm3505_vm5, %v3449_v45, %v4763_v17  ;;  %v3706_v31 = vsel %vm3700_vm8, %v3641_v14, %v4774_v10 }
 0x2c5   : > { %v7908_v41 = vpop.permute.xlu1 %5256  ;;  %v4768_v54 = vunpack.i.l.bf16 %v9912_v56  ;;  %v3561_v55 = vsel %vm3505_vm5, %v7817_v30, %v4859_v25  ;;  %v3705_v8 = vsel %vm3700_vm8, %v3640_v47, %v4773_v11  ;;  %v4913_v62 = vunpack.i.l.bf16 %v9913_v5  ;;  %v9914_v30 = vld [vmem:[#allocation171_spill] sm:$0xff]  ;;  %v9919_v10 = vld [vmem:[#allocation173_spill] sm:$0xff] }
 0x2c6   : > { %9904 = vst [vmem:[#allocation135_spill] sm:$0xff] %v7908_v41  ;;  %5496 = vrot.lane.b32.xlu0 %v9907_v36, %s5916_s20  ;;  %v4764_v41 = vunpack.i.h.bf16 %v9905_v32  ;;  %v4769_v36 = vunpack.i.h.bf16 %v9912_v56  ;;  %v3560_v32 = vsel %vm3505_vm5, %v7820_v61, %v4858_v19  ;;  %v4944_v25 = vunpack.i.h.bf16 %v9914_v30  ;;  %v9915_v56 = vld [vmem:[#allocation33_spill] sm:$0xff] }
 0x2c7   : > { %5481 = vrot.lane.b32.xlu1 %v9910_v3, %s5917_s21  ;;  %v3770_v42 = vsel %vm3765_vm9, %v3705_v8, %v4778_v63  ;;  %v3771_v61 = vsel %vm3765_vm9, %v3706_v31, %v4779_v18  ;;  %v7957_v14 = vsel %vm3570_vm6, %v3560_v32, %v4863_v49  ;;  %v7960_v5 = vsel %vm3570_vm6, %v3561_v55, %v4864_v38  ;;  %v9920_v18 = vld [vmem:[#allocation174_spill] sm:$0xff]  ;;  %v9923_v31 = vld [vmem:[#allocation81_spill] sm:$0xff] }
 0x2c8   : > { %v7937_v40 = vpop.permute.xlu0 %5091  ;;  %v3515_v45 = vsel %vm3505_vm5, %v7844_v29, %v4764_v41  ;;  %9917 = vst [vmem:[#allocation138_spill] sm:$0xff] %v7957_v14  ;;  %9918 = vst [vmem:[#allocation140_spill] sm:$0xff] %v7960_v5  ;;  %v7963_v47 = vsel %vm3570_vm6, %v3514_v43, %v4768_v54  ;;  %v4943_v17 = vunpack.i.l.bf16 %v9914_v30  ;;  %v4949_v11 = vunpack.i.h.bf16 %v9919_v10  ;;  %v9922_v43 = vld [vmem:[#allocation31_spill] sm:$0xff]  ;;  %v9924_v30 = vld [vmem:[#allocation176_spill] sm:$0xff] }
 0x2c9   : > { %v7939_v3 = vpop.permute.xlu1 %5266  ;;  %v7966_v19 = vsel %vm3570_vm6, %v3515_v45, %v4769_v36  ;;  %v4948_v38 = vunpack.i.l.bf16 %v9919_v10  ;;  %v4789_v63 = vunpack.i.h.bf16 %v9920_v18  ;;  %v4788_v49 = vunpack.i.l.bf16 %v9920_v18  ;;  %v9941_v5 = vld [vmem:[#allocation73_spill] sm:$0xff] }
 0x2ca   : > { %5506 = vrot.lane.b32.xlu0 %v9915_v56, %s5917_s21  ;;  %v3832_v54 = vpack.c.bf16 %v3771_v61, %v3770_v42  ;;  %v3455_v55 = vsel %vm3440_vm4, %v7827_v1, %v4913_v62  ;;  %v4794_v8 = vunpack.i.h.bf16 %v7175_v26  ;;  %v4793_v42 = vunpack.i.l.bf16 %v7175_v26  ;;  %v9925_v62 = vld [vmem:[#allocation63_spill] sm:$0xff]  ;;  %v9926_v61 = vld [vmem:[#allocation177_spill] sm:$0xff] }
 0x2cb   : > { %5491 = vrot.lane.b32.xlu1 %v9916_v44, %s5915_s19  ;;  %v3456_v44 = vsel %vm3440_vm4, %v7830_v7, %v4914_v13  ;;  %v7982_v7 = vsel %vm3440_vm4, %v3435_v0, %v4944_v25  ;;  %v9921_v13 = vld [vmem:[#allocation175_spill] sm:$0xff]  ;;  %v4959_v56 = vunpack.i.h.bf16 %v9924_v30  ;;  %v4958_v1 = vunpack.i.l.bf16 %v9924_v30 }
 0x2cc   : > { %v7972_v29 = vpop.permute.xlu0 %5106  ;;  %v4954_v36 = vunpack.i.h.bf16 %v9921_v13  ;;  %v4953_v32 = vunpack.i.l.bf16 %v9921_v13  ;;  %v7995_v0 = vsel %vm3440_vm4, %v3434_v21, %v4943_v17  ;;  %v3330_v25 = vsel %vm3310_vm2, %v9925_v62, %v4949_v11 }
 0x2cd   : > { %v7974_v41 = vpop.permute.xlu1 %5291  ;;  %v4799_v45 = vunpack.i.h.bf16 %v9926_v61  ;;  %v4798_v10 = vunpack.i.l.bf16 %v9926_v61  ;;  %v8011_v21 = vsel %vm3635_vm7, %v7742_v50, %v4788_v49  ;;  %v8014_v17 = vsel %vm3863_vm10, %v3832_v54, 0  ;;  %v9932_v49 = vld [vmem:[#allocation44_spill] sm:$0xff] }
 0x2ce   : > { %5516 = vrot.lane.b32.xlu0 %v9922_v43, %s5915_s19  ;;  %v9927_v43 = vld [vmem:[#allocation60_spill] sm:$0xff]  ;;  %9928 = vst [vmem:[#allocation143_spill] sm:$0xff] %v8014_v17  ;;  %v8020_v30 = vsel %vm3375_vm3, %v3330_v25, %v4954_v36  ;;  %v3367_v54 = vsel %vm3310_vm2, %v9932_v49, %v4793_v42  ;;  %v9938_v49 = vld [vmem:[#allocation79_spill] sm:$0xff] }
 0x2cf   : > { %5501 = vrot.lane.b32.xlu1 %v9923_v31, %s5916_s20  ;;  %v3329_v26 = vsel %vm3310_vm2, %v9927_v43, %v4948_v38  ;;  %v8007_v31 = vsel %vm3635_vm7, %v7745_v37, %v4789_v63  ;;  %v9929_v38 = vld [vmem:[#allocation26_spill] sm:$0xff]  ;;  %v9930_v37 = vld [vmem:[#allocation80_spill] sm:$0xff]  ;;  %v3520_v43 = vsel %vm3505_vm5, %v3455_v55, %v4958_v1  ;;  %v8033_v36 = vsel %vm3375_vm3, %v3367_v54, %v4798_v10 }
 0x2d0   : > { %v5117_v18 = vpop.permute.xlu0 %5116  ;;  %v8017_v11 = vsel %vm3375_vm3, %v3329_v26, %v4953_v32  ;;  %v9931_v63 = vld [vmem:[#allocation48_spill] sm:$0xff]  ;;  %v3521_v32 = vsel %vm3505_vm5, %v3456_v44, %v4959_v56  ;;  %9933 = vst [vmem:[#allocation144_spill] sm:$0xff] %v8033_v36  ;;  %v5014_v10 = vunpack.i.h.bf16 %v7614_v20 }
 0x2d1   : > { %v8001_v13 = vpop.permute.xlu1 %5296  ;;  %v5119_v62 = vunpack.i.h.bf16 %v5117_v18  ;;  %v5118_v61 = vunpack.i.l.bf16 %v5117_v18  ;;  %v3368_v50 = vsel %vm3310_vm2, %v9931_v63, %v4794_v8  ;;  %v9934_v18 = vld [vmem:[#allocation178_spill] sm:$0xff]  ;;  %v9936_v8 = vld [vmem:[#allocation179_spill] sm:$0xff]  ;;  %v9937_v55 = vld [vmem:[#allocation180_spill] sm:$0xff] }
 0x2d2   : > { %5526 = vrot.lane.b32.xlu0 %v9929_v38, %s5916_s20  ;;  %v8036_v25 = vsel %vm3375_vm3, %v3368_v50, %v4799_v45  ;;  %v4964_v26 = vunpack.i.h.bf16 %v9934_v18  ;;  %v4963_v38 = vunpack.i.l.bf16 %v9934_v18  ;;  %v4804_v63 = vunpack.i.h.bf16 %v9936_v8  ;;  %v9939_v50 = vld [vmem:[#allocation78_spill] sm:$0xff]  ;;  %v9940_v18 = vld [vmem:[#allocation28_spill] sm:$0xff] }
 0x2d3   : > { %5511 = vrot.lane.b32.xlu1 %v9930_v37, %s5917_s21  ;;  %v4803_v42 = vunpack.i.l.bf16 %v9936_v8  ;;  %v4979_v1 = vunpack.i.h.bf16 %v9937_v55  ;;  %v3336_v45 = vsel %vm3310_vm2, %v9938_v49, %v5119_v62  ;;  %v3335_v54 = vsel %vm3310_vm2, %v9939_v50, %v5118_v61 }
 0x2d4   : > { %v5122_v37 = vpop.permute.xlu0 %5121  ;;  %v5013_v8 = vunpack.i.l.bf16 %v7614_v20  ;;  %v8063_v62 = vsel %vm3570_vm6, %v3520_v43, %v4963_v38  ;;  %v8066_v61 = vsel %vm3570_vm6, %v3521_v32, %v4964_v26  ;;  %v5018_v49 = vunpack.i.l.bf16 %v7643_v2  ;;  %v9945_v26 = vld [vmem:[#allocation65_spill] sm:$0xff]  ;;  %v9946_v38 = vld [vmem:[#allocation67_spill] sm:$0xff] }
 0x2d5   : > { %v8040_v14 = vpop.permute.xlu1 %5301  ;;  %v5124_v44 = vunpack.i.h.bf16 %v5122_v37  ;;  %v5123_v56 = vunpack.i.l.bf16 %v5122_v37  ;;  %v5019_v37 = vunpack.i.h.bf16 %v7643_v2  ;;  %9942 = vst [vmem:[#allocation27_spill] sm:$0xff] %v8063_v62  ;;  %9943 = vst [vmem:[#allocation37_spill] sm:$0xff] %v8066_v61  ;;  %v4978_v43 = vunpack.i.l.bf16 %v9937_v55 }
 0x2d6   : > { %9935 = vst [vmem:[#allocation29_spill] sm:$0xff] %v8040_v14  ;;  %5536 = vrot.lane.b32.xlu0 %v9940_v18, %s5917_s21  ;;  %v5108_v32 = vunpack.i.l.bf16 %v7972_v29  ;;  %v8084_v2 = vsel %vm3310_vm2, %v9945_v26, %v4979_v1  ;;  %v9951_v26 = vld [vmem:[#allocation182_spill] sm:$0xff] }
 0x2d7   : > { %5521 = vrot.lane.b32.xlu1 %v9941_v5, %s5915_s19  ;;  %v8057_v17 = vsel %vm3375_vm3, %v3335_v54, %v5123_v56  ;;  %v8060_v36 = vsel %vm3375_vm3, %v3336_v45, %v5124_v44  ;;  %v5109_v5 = vunpack.i.h.bf16 %v7972_v29  ;;  %v8074_v56 = vsel %vm3505_vm5, %v7882_v22, %v4804_v63  ;;  %v9947_v22 = vld [vmem:[#allocation13_spill] sm:$0xff]  ;;  %v9948_v63 = vld [vmem:[#allocation76_spill] sm:$0xff]  ;;  %v9950_v29 = vld [vmem:[#allocation66_spill] sm:$0xff] }
 0x2d8   : > { %v5127_v50 = vpop.permute.xlu0 %5126  ;;  %v8078_v44 = vsel %vm3505_vm5, %v7893_v35, %v4803_v42  ;;  %v3332_v45 = vsel %vm3310_vm2, %v9946_v38, %v5014_v10  ;;  %v9949_v35 = vld [vmem:[#allocation181_spill] sm:$0xff]  ;;  %v5189_v10 = vunpack.i.h.bf16 %v7586_v27  ;;  %v5214_v27 = vunpack.i.h.bf16 %v7616_v58 }
 0x2d9   : > { %v8070_v20 = vpop.permute.xlu1 %5306  ;;  %v5129_v54 = vunpack.i.h.bf16 %v5127_v50  ;;  %v5128_v18 = vunpack.i.l.bf16 %v5127_v50  ;;  %v4808_v55 = vunpack.i.l.bf16 %v9949_v35  ;;  %v3397_v1 = vsel %vm3375_vm3, %v3332_v45, %v5019_v37 }
 0x2da   : > { %9944 = vst [vmem:[#allocation34_spill] sm:$0xff] %v8070_v20  ;;  %5546 = vrot.lane.b32.xlu0 %v9947_v22, %s5915_s19  ;;  %v3331_v20 = vsel %vm3310_vm2, %v9950_v29, %v5013_v8  ;;  %v3462_v38 = vsel %vm3440_vm4, %v3397_v1, %v5109_v5  ;;  %v9952_v29 = vld [vmem:[#allocation18_spill] sm:$0xff]  ;;  %v9954_v5 = vld [vmem:[#allocation183_spill] sm:$0xff] }
 0x2db   : > { %5531 = vrot.lane.b32.xlu1 %v9948_v63, %s5916_s20  ;;  %v3396_v50 = vsel %vm3375_vm3, %v3331_v20, %v5018_v49  ;;  %v3527_v8 = vsel %vm3505_vm5, %v3462_v38, %v5129_v54  ;;  %v9953_v49 = vld [vmem:[#allocation77_spill] sm:$0xff]  ;;  %v4839_v20 = vunpack.i.h.bf16 %v9954_v5  ;;  %v5213_v54 = vunpack.i.l.bf16 %v7616_v58  ;;  %v9957_v58 = vld [vmem:[#allocation20_spill] sm:$0xff] }
 0x2dc   : > { %v5132_v22 = vpop.permute.xlu0 %5131  ;;  %v3461_v63 = vsel %vm3440_vm4, %v3396_v50, %v5108_v32  ;;  %v4838_v32 = vunpack.i.l.bf16 %v9954_v5 }
 0x2dd   : > { %v5312_v14 = vpop.permute.xlu1 %5311  ;;  %v5134_v42 = vunpack.i.h.bf16 %v5132_v22  ;;  %v5133_v62 = vunpack.i.l.bf16 %v5132_v22  ;;  %v3526_v37 = vsel %vm3505_vm5, %v3461_v63, %v5128_v18  ;;  %v5219_v63 = vunpack.i.h.bf16 %v7645_v15 }
 0x2de   : > { %v5314_v61 = vunpack.i.h.bf16 %v5312_v14  ;;  %v5313_v45 = vunpack.i.l.bf16 %v5312_v14  ;;  %5556 = vrot.lane.b32.xlu0 %v9952_v29, %s5916_s20  ;;  %v9955_v29 = vld [vmem:[#allocation117_spill] sm:$0xff] }
 0x2df   : > { %5541 = vrot.lane.b32.xlu1 %v9953_v49, %s5917_s21  ;;  %v3591_v1 = vsel %vm3570_vm6, %v3526_v37, %v5133_v62  ;;  %v3592_v50 = vsel %vm3570_vm6, %v3527_v8, %v5134_v42  ;;  %v5218_v42 = vunpack.i.l.bf16 %v7645_v15  ;;  %v9956_v8 = vld [vmem:[#allocation114_spill] sm:$0xff] }
 0x2e0   : > { %v3656_v14 = vsel %vm3635_vm7, %v3591_v1, %v5188_v53  ;;  %v3657_v18 = vsel %vm3635_vm7, %v3592_v50, %v5189_v10  ;;  %v8117_v38 = vpop.permute.xlu0 %5181  ;;  %v3346_v49 = vsel %vm3310_vm2, %v9955_v29, %v5314_v61  ;;  %v3345_v37 = vsel %vm3310_vm2, %v9956_v8, %v5313_v45  ;;  %v9958_v53 = vld [vmem:[#allocation116_spill] sm:$0xff]  ;;  %v9959_v50 = vld [vmem:[#allocation185_spill] sm:$0xff] }
 0x2e1   : > { %v5317_v22 = vpop.permute.xlu1 %5316  ;;  %v3721_v10 = vsel %vm3700_vm8, %v3656_v14, %v5213_v54  ;;  %v3722_v1 = vsel %vm3700_vm8, %v3657_v18, %v5214_v27  ;;  %v4844_v23 = vunpack.i.h.bf16 %v9959_v50  ;;  %v4843_v61 = vunpack.i.l.bf16 %v9959_v50  ;;  %v9963_v18 = vld [vmem:[#allocation64_spill] sm:$0xff] }
 0x2e2   : > { %v5319_v5 = vunpack.i.h.bf16 %v5317_v22  ;;  %v5318_v62 = vunpack.i.l.bf16 %v5317_v22  ;;  %5566 = vrot.lane.b32.xlu0 %v9957_v58, %s5917_s21  ;;  %v4983_v45 = vunpack.i.l.bf16 %v9951_v26  ;;  %v8146_v54 = vpack.i.bf16 %v9836_v34, %v9835_v12 }
 0x2e3   : > { %5551 = vrot.lane.b32.xlu1 %v9958_v53, %s5915_s19  ;;  %v8149_v27 = vsel %vm3765_vm9, %v3721_v10, %v5218_v42  ;;  %v8152_v14 = vsel %vm3765_vm9, %v3722_v1, %v5219_v63  ;;  %v9966_v58 = vrot.slane %v9835_v12, 1  ;;  %v9967_v50 = vrot.slane %v9842_v4, 1  ;;  %v9969_v1 = vld [vmem:[#allocation68_spill] sm:$0xff] }
 0x2e4   : > { %v8134_v22 = vsel %vm3375_vm3, %v3345_v37, %v5318_v62  ;;  %v8137_v15 = vsel %vm3375_vm3, %v3346_v49, %v5319_v5  ;;  %v8140_v29 = vpop.permute.xlu0 %5191  ;;  %9961 = vst [vmem:[#allocation45_spill] sm:$0xff] %v8149_v27  ;;  %9962 = vst [vmem:[#allocation39_spill] sm:$0xff] %v8152_v14  ;;  %v3373_v49 = vsel %vm3310_vm2, %v9963_v18, %v4978_v43  ;;  %v9964_v5 = vld [vmem:[#allocation184_spill] sm:$0xff]  ;;  %v9965_v37 = vrot.slane %v9836_v34, 1  ;;  %v9999_v27 = vld [vmem:[#allocation14_spill] sm:$0xff] }
 0x2e5   : > { %v8142_v8 = vpop.permute.xlu1 %5321  ;;  %v4989_v62 = vunpack.i.h.bf16 %v9964_v5  ;;  %v3708_v63 = vsel %vm3700_vm8, %v8007_v31, %v4839_v20  ;;  %v3707_v43 = vsel %vm3700_vm8, %v8011_v21, %v4838_v32  ;;  %v4988_v10 = vunpack.i.l.bf16 %v9964_v5 }
 0x2e6   : > { %9960 = vst [vmem:[#allocation62_spill] sm:$0xff] %v8142_v8  ;;  %v1531_v53 = vsel %vm1438_vm0, %v9966_v58, %v9965_v37  ;;  %v9968_v8 = vmov %v9965_v37  ;;  %5571 = vrot.lane.b32.xlu0 %v8146_v54, %s5910_s14  ;;  %v8183_v31 = vsel %vm3570_vm6, %v8078_v44, %v4808_v55  ;;  %v9971_v21 = vunpack.i.h.bf16 %v9949_v35 }
 0x2e7   : > { %v1533_v42 = vsel %vm1438_vm0, %v9968_v8, %v9967_v50  ;;  %5561 = vrot.lane.b32.xlu1 %v9969_v1, %s5916_s20  ;;  %v3862_v8 = vld [vmem:[%s9289_s2] sm:$0xf]  ;;  %9970 = vst [vmem:[#allocation38_spill] sm:$0xff] %v8183_v31  ;;  %v3772_v32 = vsel %vm3765_vm9, %v3707_v43, %v4843_v61  ;;  %v3773_v5 = vsel %vm3765_vm9, %v3708_v63, %v4844_v23  ;;  %v9973_v58 = vunpack.i.h.bf16 %v9951_v26  ;;  %v9974_v23 = vld [vmem:[#allocation186_spill] sm:$0xff] }
 0x2e8   : > { %v8189_v20 = vsel %vm3570_vm6, %v8074_v56, %v9971_v21  ;;  %4317 = vmatprep.mubr.msk.bf16.mxu1 %vm3863_vm10, %v3862_v8  ;;  %v3438_v37 = vsel %vm3375_vm3, %v3373_v49, %v4983_v45  ;;  %v8199_v55 = vpop.permute.xlu0 %5196  ;;  %v8203_v50 = vpack.i.bf16 %v1533_v42, %v1531_v53  ;;  %v8207_v56 = vpack.i.bf16 %v9844_v59, %v9842_v4  ;;  %v9979_v8 = vld [vmem:[#allocation187_spill] sm:$0xff] }
 0x2e9   : > { %9972 = vst [vmem:[#allocation155_spill] sm:$0xff] %v8189_v20  ;;  %v3439_v44 = vsel %vm3375_vm3, %v8084_v2, %v9973_v58  ;;  %v8201_v35 = vpop.permute.xlu1 %5326  ;;  %v4994_v61 = vunpack.i.h.bf16 %v9974_v23  ;;  %v4993_v63 = vunpack.i.l.bf16 %v9974_v23  ;;  %v9975_v45 = vrot.slane %v9836_v34, 2  ;;  %v9996_v34 = vld [vmem:[#allocation84_spill] sm:$0xff] }
 0x2ea   : > { %v9976_v26 = vrot.slane %v9835_v12, 2  ;;  %v9977_v49 = vrot.slane %v9842_v4, 2  ;;  %v3565_v42 = vsel %vm3505_vm5, %v7982_v7, %v4989_v62  ;;  %v3564_v1 = vsel %vm3505_vm5, %v7995_v0, %v4988_v10  ;;  %5576 = vrot.lane.b32.xlu0 %v8203_v50, %s5911_s15  ;;  %v9982_v0 = vld [vmem:[#allocation190_spill] sm:$0xff] }
 0x2eb   : > { %v9978_v43 = vmov %v9975_v45  ;;  %v4869_v21 = vunpack.i.h.bf16 %v9979_v8  ;;  %5596 = vrot.lane.b32.xlu1 %v8207_v56, %s5910_s14  ;;  %v3833_v58 = vpack.c.bf16 %v3773_v5, %v3772_v32  ;;  %v4868_v23 = vunpack.i.l.bf16 %v9979_v8  ;;  %s4188_s14 = sshll.u32 %s10149_s24, 3 }
 0x2ec   : > { %v1676_v2 = vsel %vm1583_vm1, %v9976_v26, %v9975_v45  ;;  %v1678_v53 = vsel %vm1583_vm1, %v9978_v43, %v9977_v49  ;;  %v9980_v45 = vld [vmem:[#allocation188_spill] sm:$0xff]  ;;  %v9981_v43 = vld [vmem:[#allocation189_spill] sm:$0xff]  ;;  %v5064_v10 = vunpack.i.h.bf16 %v9982_v0  ;;  %v5063_v18 = vunpack.i.l.bf16 %v9982_v0  ;;  %v5202_v31 = vpop.permute.xlu0 %5201 }
 0x2ed   : > { %v5044_v26 = vunpack.i.h.bf16 %v9980_v45  ;;  %v5043_v49 = vunpack.i.l.bf16 %v9980_v45  ;;  %v4874_v7 = vunpack.i.h.bf16 %v9981_v43  ;;  %v4873_v62 = vunpack.i.l.bf16 %v9981_v43  ;;  %v8237_v20 = vpop.permute.xlu1 %5331 }
 0x2ee   : > { %v8239_v4 = vpack.i.bf16 %v1678_v53, %v1676_v2  ;;  %v8242_v32 = vsel %vm3570_vm6, %v3564_v1, %v4993_v63  ;;  %v8245_v5 = vsel %vm3570_vm6, %v3565_v42, %v4994_v61  ;;  %v5184_v8 = vunpack.i.h.bf16 %v8117_v38 }
 0x2ef   : > { %9983 = vst [vmem:[#allocation46_spill] sm:$0xff] %v8242_v32  ;;  %9984 = vst [vmem:[#allocation147_spill] sm:$0xff] %v8245_v5  ;;  %v5183_v45 = vunpack.i.l.bf16 %v8117_v38  ;;  %v3454_v43 = vsel %vm3440_vm4, %v7931_v51, %v4869_v21  ;;  %v5204_v59 = vunpack.i.h.bf16 %v5202_v31  ;;  %v5203_v0 = vunpack.i.l.bf16 %v5202_v31  ;;  %5601 = vrot.lane.b32.xlu1 %v7729_v28, %s5911_s15  ;;  %v9998_v32 = vld [vmem:[#allocation110_spill] sm:$0xff]  ;;  %s292_s15 = sadd.s32 %s4188_s14, %s10151_s12 }
 0x2f0   : > { %5581 = vrot.lane.b32.xlu0 %v8239_v4, %s5912_s16  ;;  %v8256_v63 = vsel %vm3863_vm10, %v3833_v58, 0  ;;  %v3453_v61 = vsel %vm3440_vm4, %v7916_v16, %v4868_v23  ;;  %v8262_v38 = vsel %vm3440_vm4, %v8020_v30, %v5044_v26  ;;  %v8266_v51 = vsel %vm3440_vm4, %v8017_v11, %v5043_v49  ;;  %v5207_v30 = vpop.permute.xlu0 %5206 }
 0x2f1   : > { %9985 = vst [vmem:[#allocation149_spill] sm:$0xff] %v8256_v63  ;;  %v8270_v31 = vsel %vm3635_vm7, %v7966_v19, %v4874_v7  ;;  %v8274_v2 = vsel %vm3635_vm7, %v7963_v47, %v4873_v62  ;;  %v8277_v53 = vsel %vm3440_vm4, %v3439_v44, %v5064_v10  ;;  %v8280_v16 = vsel %vm3440_vm4, %v3438_v37, %v5063_v18  ;;  %v8282_v42 = vpop.permute.xlu1 %5336 }
 0x2f2   : > { %v3466_v11 = vsel %vm3440_vm4, %v8060_v36, %v5184_v8  ;;  %v3465_v19 = vsel %vm3440_vm4, %v8057_v17, %v5183_v45  ;;  %v5209_v1 = vunpack.i.h.bf16 %v5207_v30  ;;  %v5208_v21 = vunpack.i.l.bf16 %v5207_v30  ;;  %v9986_v36 = vld [vmem:[#allocation191_spill] sm:$0xff]  ;;  %v9987_v8 = vld [vmem:[#allocation192_spill] sm:$0xff] }
 0x2f3   : > { %v5269_v47 = vunpack.i.h.bf16 %v7939_v3  ;;  %v5268_v58 = vunpack.i.l.bf16 %v7939_v3  ;;  %v3531_v44 = vsel %vm3505_vm5, %v3466_v11, %v5204_v59  ;;  %v3530_v18 = vsel %vm3505_vm5, %v3465_v19, %v5203_v0  ;;  %5606 = vrot.lane.b32.xlu1 %v7731_v52, %s5912_s16  ;;  %v9988_v19 = vld [vmem:[#allocation196_spill] sm:$0xff]  ;;  %v9992_v11 = vld [vmem:[#allocation198_spill] sm:$0xff]  ;;  %s4189_s16 = sshll.u32 %s292_s15, 3 }
 0x2f4   : > { %5586 = vrot.lane.b32.xlu0 %v8203_v50, %s5913_s17  ;;  %v4879_v37 = vunpack.i.h.bf16 %v9986_v36  ;;  %v3595_v17 = vsel %vm3570_vm6, %v3530_v18, %v5208_v21  ;;  %v3596_v23 = vsel %vm3570_vm6, %v3531_v44, %v5209_v1  ;;  %v5294_v26 = vunpack.i.h.bf16 %v7974_v41  ;;  %v8303_v7 = vpop.permute.xlu0 %5261  ;;  %v9989_v1 = vld [vmem:[#allocation69_spill] sm:$0xff] }
 0x2f5   : > { %v5293_v3 = vunpack.i.l.bf16 %v7974_v41  ;;  %v3660_v59 = vsel %vm3635_vm7, %v3595_v17, %v5268_v58  ;;  %v3661_v49 = vsel %vm3635_vm7, %v3596_v23, %v5269_v47  ;;  %v8305_v62 = vpop.permute.xlu1 %5346  ;;  %v5299_v0 = vunpack.i.h.bf16 %v8001_v13  ;;  %v9991_v17 = vld [vmem:[#allocation193_spill] sm:$0xff] }
 0x2f6   : > { %v5298_v30 = vunpack.i.l.bf16 %v8001_v13  ;;  %v4894_v41 = vunpack.i.h.bf16 %v9988_v19  ;;  %v3726_v47 = vsel %vm3700_vm8, %v3661_v49, %v5294_v26  ;;  %v8321_v58 = vsel %vm3440_vm4, %v8036_v25, %v4879_v37 }
 0x2f7   : > { %5611 = vrot.lane.b32.xlu1 %v9989_v1, %s5917_s21  ;;  %v3725_v21 = vsel %vm3700_vm8, %v3660_v59, %v5293_v3  ;;  %9990 = vst [vmem:[#allocation152_spill] sm:$0xff] %v8321_v58  ;;  %v4893_v13 = vunpack.i.l.bf16 %v9988_v19  ;;  %v8328_v18 = vsel %vm3765_vm9, %v3726_v47, %v5299_v0  ;;  %v4898_v1 = vunpack.i.l.bf16 %v9992_v11  ;;  %v9993_v19 = vld [vmem:[#allocation9_spill] sm:$0xff] }
 0x2f8   : > { %5591 = vrot.lane.b32.xlu0 %v8239_v4, %s5914_s18  ;;  %v8325_v44 = vsel %vm3765_vm9, %v3725_v21, %v5298_v30  ;;  %v5272_v45 = vpop.permute.xlu0 %5271  ;;  %v4899_v25 = vunpack.i.h.bf16 %v9992_v11  ;;  %v5154_v37 = vunpack.i.h.bf16 %v7405_v46  ;;  %v3519_v59 = vsel %vm3505_vm5, %v3454_v43, %v4894_v41  ;;  %v9994_v21 = vld [vmem:[#allocation146_spill] sm:$0xff] }
 0x2f9   : > { %v8332_v3 = vpop.permute.xlu1 %5371  ;;  %v5153_v49 = vunpack.i.l.bf16 %v7405_v46  ;;  %v5274_v0 = vunpack.i.h.bf16 %v5272_v45  ;;  %v5273_v30 = vunpack.i.l.bf16 %v5272_v45  ;;  %v3518_v47 = vsel %vm3505_vm5, %v3453_v61, %v4893_v13 }
 0x2fa   : > { %v5159_v26 = vunpack.i.h.bf16 %v7431_v24  ;;  %v5158_v11 = vunpack.i.l.bf16 %v7431_v24  ;;  %v3583_v23 = vsel %vm3570_vm6, %v3518_v47, %v4898_v1  ;;  %v5004_v43 = vunpack.i.h.bf16 %v7549_v60  ;;  %v9997_v47 = vld [vmem:[#allocation111_spill] sm:$0xff] }
 0x2fb   : > { %5621 = vrot.lane.b32.xlu1 %v9994_v21, %s5915_s19  ;;  %v5003_v46 = vunpack.i.l.bf16 %v7549_v60  ;;  %v5224_v45 = vunpack.i.h.bf16 %v7674_v39  ;;  %v9995_v21 = vld [vmem:[#allocation88_spill] sm:$0xff]  ;;  %v3337_v24 = vsel %vm3310_vm2, %v9996_v34, %v5153_v49  ;;  %v5223_v1 = vunpack.i.l.bf16 %v7674_v39 }
 0x2fc   : > { %5616 = vrot.lane.b32.xlu0 %v9993_v19, %s5915_s19  ;;  %v5277_v41 = vpop.permute.xlu0 %5276  ;;  %v3584_v19 = vsel %vm3570_vm6, %v3519_v59, %v4899_v25  ;;  %v3338_v61 = vsel %vm3310_vm2, %v9995_v21, %v5154_v37  ;;  %v3344_v60 = vsel %vm3310_vm2, %v9997_v47, %v5274_v0  ;;  %v3343_v5 = vsel %vm3310_vm2, %v9998_v32, %v5273_v30  ;;  %v10000_v25 = vld [vmem:[#allocation70_spill] sm:$0xff] }
 0x2fd   : > { %v8351_v10 = vpop.permute.xlu1 %5376  ;;  %v5279_v13 = vunpack.i.h.bf16 %v5277_v41  ;;  %v5278_v12 = vunpack.i.l.bf16 %v5277_v41  ;;  %v3402_v37 = vsel %vm3375_vm3, %v3337_v24, %v5158_v11  ;;  %v3403_v59 = vsel %vm3375_vm3, %v3338_v61, %v5159_v26 }
 0x2fe   : > { %v3649_v49 = vsel %vm3635_vm7, %v3584_v19, %v5004_v43  ;;  %v8373_v0 = vsel %vm3635_vm7, %v3583_v23, %v5003_v46  ;;  %v8376_v32 = vsel %vm3440_vm4, %v3403_v59, %v5224_v45  ;;  %v5234_v11 = vunpack.i.h.bf16 %v7739_v48  ;;  %v10001_v45 = vld [vmem:[#allocation16_spill] sm:$0xff] }
 0x2ff   : > { %5631 = vrot.lane.b32.xlu1 %v10000_v25, %s5916_s20  ;;  %v3408_v34 = vsel %vm3375_vm3, %v3343_v5, %v5278_v12  ;;  %v3409_v39 = vsel %vm3375_vm3, %v3344_v60, %v5279_v13  ;;  %v5233_v26 = vunpack.i.l.bf16 %v7739_v48  ;;  %v8384_v21 = vsel %vm3440_vm4, %v3402_v37, %v5223_v1 }
 0x300   : > { %5626 = vrot.lane.b32.xlu0 %v9999_v27, %s5916_s20  ;;  %v5034_v27 = vunpack.i.h.bf16 %v7737_v6  ;;  %v8379_v30 = vpop.permute.xlu0 %5281  ;;  %v5238_v23 = vunpack.i.l.bf16 %v7771_v9  ;;  %v5049_v43 = vunpack.i.h.bf16 %v7797_v57  ;;  %v5048_v46 = vunpack.i.l.bf16 %v7797_v57  ;;  %v10007_v57 = vld [vmem:[#allocation29_spill] sm:$0xff] }
 0x301   : > { %v5382_v41 = vpop.permute.xlu1 %5381  ;;  %v5089_v19 = vunpack.i.h.bf16 %v7906_v33  ;;  %v5088_v48 = vunpack.i.l.bf16 %v7906_v33  ;;  %v5239_v24 = vunpack.i.h.bf16 %v7771_v9  ;;  %v5094_v1 = vunpack.i.h.bf16 %v7937_v40  ;;  %v10005_v9 = vld [vmem:[#allocation37_spill] sm:$0xff] }
 0x302   : > { %v5384_v12 = vunpack.i.h.bf16 %v5382_v41  ;;  %v5383_v5 = vunpack.i.l.bf16 %v5382_v41  ;;  %v5093_v47 = vunpack.i.l.bf16 %v7937_v40  ;;  %v8412_v33 = vsel %vm3700_vm8, %v3649_v49, %v5034_v27  ;;  %v10004_v41 = vld [vmem:[#allocation126_spill] sm:$0xff] }
 0x303   : > { %5641 = vrot.lane.b32.xlu1 %v7729_v28, %s5913_s17  ;;  %v5304_v14 = vunpack.i.h.bf16 %v10007_v57  ;;  %v5303_v58 = vunpack.i.l.bf16 %v10007_v57 }
 0x304   : > { %5636 = vrot.lane.b32.xlu0 %v10001_v45, %s5917_s21  ;;  %v8397_v61 = vsel %vm3440_vm4, %v8137_v15, %v5384_v12  ;;  %v8401_v13 = vsel %vm3440_vm4, %v8134_v22, %v5383_v5  ;;  %v8407_v60 = vpop.permute.xlu0 %5286  ;;  %v10002_v15 = vld [vmem:[#allocation108_spill] sm:$0xff]  ;;  %v3651_v5 = vsel %vm3635_vm7, %v10005_v9, %v5049_v43  ;;  %v10006_v45 = vld [vmem:[#allocation27_spill] sm:$0xff] }
 0x305   : > { %v8409_v25 = vpop.permute.xlu1 %5386  ;;  %v3342_v37 = vsel %vm3310_vm2, %v10002_v15, %v5234_v11  ;;  %v10003_v22 = vld [vmem:[#allocation104_spill] sm:$0xff]  ;;  %v3650_v40 = vsel %vm3635_vm7, %v10006_v45, %v5048_v46  ;;  %v3716_v11 = vsel %vm3700_vm8, %v3651_v5, %v5089_v19  ;;  %v10008_v46 = vld [vmem:[#allocation127_spill] sm:$0xff]  ;;  %v5194_v45 = vunpack.i.h.bf16 %v8140_v29 }
 0x306   : > { %v3341_v59 = vsel %vm3310_vm2, %v10003_v22, %v5233_v26  ;;  %v3715_v26 = vsel %vm3700_vm8, %v3650_v40, %v5088_v48  ;;  %v3407_v43 = vsel %vm3375_vm3, %v3342_v37, %v5239_v24  ;;  %v10012_v15 = vld [vmem:[#allocation95_spill] sm:$0xff] }
 0x307   : > { %5646 = vrot.lane.b32.xlu1 %v7731_v52, %s5914_s18  ;;  %v3406_v27 = vsel %vm3375_vm3, %v3341_v59, %v5238_v23  ;;  %v8436_v9 = vsel %vm3765_vm9, %v3715_v26, %v5093_v47  ;;  %v5193_v23 = vunpack.i.l.bf16 %v8140_v29  ;;  %v8444_v48 = vsel %vm3440_vm4, %v3407_v43, %v5304_v14 }
 0x308   : > { %5656 = vrot.lane.b32.xlu0 %v8207_v56, %s5915_s19  ;;  %v5342_v22 = vpop.permute.xlu0 %5341  ;;  %v8439_v56 = vsel %vm3765_vm9, %v3716_v11, %v5094_v1  ;;  %v8447_v24 = vsel %vm3440_vm4, %v3406_v27, %v5303_v58  ;;  %v10009_v1 = vld [vmem:[#allocation72_spill] sm:$0xff]  ;;  %v5199_v47 = vunpack.i.h.bf16 %v8199_v55  ;;  %v5198_v29 = vunpack.i.l.bf16 %v8199_v55  ;;  %v10010_v11 = vld [vmem:[#allocation62_spill] sm:$0xff] }
 0x309   : > { %v5392_v57 = vpop.permute.xlu1 %5391  ;;  %v5344_v59 = vunpack.i.h.bf16 %v5342_v22  ;;  %v5343_v19 = vunpack.i.l.bf16 %v5342_v22  ;;  %v5324_v26 = vunpack.i.h.bf16 %v10010_v11  ;;  %v5323_v58 = vunpack.i.l.bf16 %v10010_v11 }
 0x30a   : > { %v5394_v37 = vunpack.i.h.bf16 %v5392_v57  ;;  %v5393_v5 = vunpack.i.l.bf16 %v5392_v57  ;;  %v5264_v27 = vunpack.i.h.bf16 %v8303_v7  ;;  %v5263_v43 = vunpack.i.l.bf16 %v8303_v7  ;;  %v10011_v57 = vld [vmem:[#allocation99_spill] sm:$0xff]  ;;  %v10015_v7 = vld [vmem:[#allocation85_spill] sm:$0xff] }
 0x30b   : > { %5651 = vrot.lane.b32.xlu1 %v10009_v1, %s5917_s21  ;;  %v3474_v40 = vsel %vm3440_vm4, %v3409_v39, %v5344_v59  ;;  %v3473_v14 = vsel %vm3440_vm4, %v3408_v34, %v5343_v19  ;;  %v3340_v1 = vsel %vm3310_vm2, %v10011_v57, %v5194_v45  ;;  %v3339_v55 = vsel %vm3310_vm2, %v10012_v15, %v5193_v23  ;;  %v10013_v59 = vld [vmem:[#allocation131_spill] sm:$0xff]  ;;  %v10014_v19 = vld [vmem:[#allocation128_spill] sm:$0xff] }
 0x30c   : > { %5666 = vrot.lane.b32.xlu0 %v7729_v28, %s5916_s20  ;;  %v5352_v28 = vpop.permute.xlu0 %5351  ;;  %v3350_v34 = vsel %vm3310_vm2, %v10013_v59, %v5394_v37  ;;  %v3349_v11 = vsel %vm3310_vm2, %v10014_v19, %v5393_v5  ;;  %v3404_v45 = vsel %vm3375_vm3, %v3339_v55, %v5198_v29  ;;  %v3405_v15 = vsel %vm3375_vm3, %v3340_v1, %v5199_v47 }
 0x30d   : > { %v5397_v22 = vpop.permute.xlu1 %5396  ;;  %v5354_v49 = vunpack.i.h.bf16 %v5352_v28  ;;  %v5353_v63 = vunpack.i.l.bf16 %v5352_v28  ;;  %v3470_v5 = vsel %vm3440_vm4, %v3405_v15, %v5264_v27  ;;  %v3469_v28 = vsel %vm3440_vm4, %v3404_v45, %v5263_v43  ;;  %v10017_v27 = vld [vmem:[#allocation122_spill] sm:$0xff] }
 0x30e   : > { %v5399_v12 = vunpack.i.h.bf16 %v5397_v22  ;;  %v5398_v39 = vunpack.i.l.bf16 %v5397_v22  ;;  %v5284_v22 = vunpack.i.h.bf16 %v8379_v30  ;;  %v5289_v1 = vunpack.i.h.bf16 %v8407_v60 }
 0x30f   : > { %5661 = vrot.lane.b32.xlu1 %v10015_v7, %s5915_s19  ;;  %v3347_v43 = vsel %vm3310_vm2, %v10017_v27, %v5353_v63  ;;  %v5329_v63 = vunpack.i.h.bf16 %v8201_v35  ;;  %v5328_v45 = vunpack.i.l.bf16 %v8201_v35  ;;  %v5349_v27 = vunpack.i.h.bf16 %v8305_v62  ;;  %v10019_v35 = vld [vmem:[#allocation59_spill] sm:$0xff] }
 0x310   : > { %5676 = vrot.lane.b32.xlu0 %v7731_v52, %s5917_s21  ;;  %v8476_v23 = vsel %vm3375_vm3, %v3349_v11, %v5398_v39  ;;  %v8479_v37 = vsel %vm3375_vm3, %v3350_v34, %v5399_v12  ;;  %v5283_v52 = vunpack.i.l.bf16 %v8379_v30  ;;  %v5357_v57 = vpop.permute.xlu0 %5356  ;;  %v5288_v39 = vunpack.i.l.bf16 %v8407_v60  ;;  %v10016_v12 = vld [vmem:[#allocation125_spill] sm:$0xff]  ;;  %v10018_v30 = vld [vmem:[#allocation58_spill] sm:$0xff] }
 0x311   : > { %v5402_v59 = vpop.permute.xlu1 %5401  ;;  %v5359_v19 = vunpack.i.h.bf16 %v5357_v57  ;;  %v5358_v29 = vunpack.i.l.bf16 %v5357_v57  ;;  %v3348_v34 = vsel %vm3310_vm2, %v10016_v12, %v5354_v49 }
 0x312   : > { %v5404_v55 = vunpack.i.h.bf16 %v5402_v59  ;;  %v5403_v47 = vunpack.i.l.bf16 %v5402_v59  ;;  %v3534_v15 = vsel %vm3505_vm5, %v3469_v28, %v5283_v52 }
 0x313   : > { %5671 = vrot.lane.b32.xlu1 %v10018_v30, %s5916_s20  ;;  %v8496_v11 = vsel %vm3375_vm3, %v3347_v43, %v5358_v29  ;;  %v8499_v7 = vsel %vm3375_vm3, %v3348_v34, %v5359_v19 }
 0x314   : > { %5686 = vrot.lane.b32.xlu0 %v8146_v54, %s5915_s19  ;;  %v3541_v60 = vsel %vm3505_vm5, %v8397_v61, %v5404_v55  ;;  %v3540_v49 = vsel %vm3505_vm5, %v8401_v13, %v5403_v47  ;;  %v3535_v54 = vsel %vm3505_vm5, %v3470_v5, %v5284_v22  ;;  %v5362_v57 = vpop.permute.xlu0 %5361  ;;  %v5348_v61 = vunpack.i.l.bf16 %v8305_v62 }
 0x315   : > { %v5407_v59 = vpop.permute.xlu1 %5406  ;;  %v5364_v29 = vunpack.i.h.bf16 %v5362_v57  ;;  %v5363_v12 = vunpack.i.l.bf16 %v5362_v57  ;;  %v3599_v13 = vsel %vm3570_vm6, %v3534_v15, %v5288_v39  ;;  %v3600_v55 = vsel %vm3570_vm6, %v3535_v54, %v5289_v1 }
 0x316   : > { %v5409_v19 = vunpack.i.h.bf16 %v5407_v59  ;;  %v5408_v34 = vunpack.i.l.bf16 %v5407_v59  ;;  %v3537_v62 = vsel %vm3505_vm5, %v8444_v48, %v5324_v26  ;;  %v3536_v47 = vsel %vm3505_vm5, %v8447_v24, %v5323_v58  ;;  %v10020_v24 = vld [vmem:[#allocation105_spill] sm:$0xff] }
 0x317   : > { %5681 = vrot.lane.b32.xlu1 %v10019_v35, %s5917_s21  ;;  %v3539_v5 = vsel %vm3505_vm5, %v3474_v40, %v5364_v29  ;;  %v3538_v28 = vsel %vm3505_vm5, %v3473_v14, %v5363_v12  ;;  %v5388_v1 = vunpack.i.l.bf16 %v8409_v25  ;;  %v3664_v14 = vsel %vm3635_vm7, %v3599_v13, %v5348_v61 }
 0x318   : > { %5696 = vrot.lane.b32.xlu0 %v8203_v50, %s5916_s20  ;;  %v8520_v22 = vsel %vm3570_vm6, %v3540_v49, %v5408_v34  ;;  %v8523_v52 = vsel %vm3570_vm6, %v3541_v60, %v5409_v19  ;;  %v5389_v50 = vunpack.i.h.bf16 %v8409_v25  ;;  %v5367_v39 = vpop.permute.xlu0 %5366  ;;  %v3665_v43 = vsel %vm3635_vm7, %v3600_v55, %v5349_v27 }
 0x319   : > { %v5412_v40 = vpop.permute.xlu1 %5411  ;;  %v5369_v30 = vunpack.i.h.bf16 %v5367_v39  ;;  %v5368_v49 = vunpack.i.l.bf16 %v5367_v39  ;;  %v5374_v60 = vunpack.i.h.bf16 %v8332_v3  ;;  %v5373_v54 = vunpack.i.l.bf16 %v8332_v3  ;;  %v10024_v39 = vld [vmem:[#allocation130_spill] sm:$0xff] }
 0x31a   : > { %v5414_v48 = vunpack.i.h.bf16 %v5412_v40  ;;  %v5413_v26 = vunpack.i.l.bf16 %v5412_v40  ;;  %v3601_v25 = vsel %vm3570_vm6, %v3536_v47, %v5328_v45  ;;  %v3602_v58 = vsel %vm3570_vm6, %v3537_v62, %v5329_v63 }
 0x31b   : > { %5691 = vrot.lane.b32.xlu1 %v10020_v24, %s5915_s19  ;;  %v8542_v15 = vsel %vm3570_vm6, %v3538_v28, %v5368_v49  ;;  %v8545_v57 = vsel %vm3570_vm6, %v3539_v5, %v5369_v30  ;;  %v5379_v3 = vunpack.i.h.bf16 %v8351_v10  ;;  %v5378_v59 = vunpack.i.l.bf16 %v8351_v10  ;;  %v10022_v10 = vld [vmem:[#allocation53_spill] sm:$0xff]  ;;  %s294_s19 = scalar_lea.vmem %s9293_s6, %s4189_s16 }
 0x31c   : > { %5706 = vrot.lane.b32.xlu0 %v8239_v4, %s5917_s21  ;;  %10021 = vst [vmem:[#allocation154_spill] sm:$0xff] %v8542_v15  ;;  %v8549_v29 = vpop.permute.xlu0 %5426  ;;  %v3729_v12 = vsel %vm3700_vm8, %v3664_v14, %v5373_v54  ;;  %v3730_v19 = vsel %vm3700_vm8, %v3665_v43, %v5374_v60  ;;  %v3667_v45 = vsel %vm3635_vm7, %v3602_v58, %v5389_v50  ;;  %v5243_v61 = vunpack.i.l.bf16 %v10008_v46  ;;  %v10073_v15 = vld [vmem:[#allocation115_spill] sm:$0xff] }
 0x31d   : > { %v5417_v4 = vpop.permute.xlu1 %5416  ;;  %v3666_v63 = vsel %vm3635_vm7, %v3601_v25, %v5388_v1  ;;  %v3732_v13 = vsel %vm3700_vm8, %v3667_v45, %v5414_v48  ;;  %v3837_v35 = vpack.c.bf16 %v8439_v56, %v8436_v9  ;;  %v3794_v62 = vsel %vm3765_vm9, %v3729_v12, %v5378_v59  ;;  %v10025_v56 = vld [vmem:[#allocation34_spill] sm:$0xff] }
 0x31e   : > { %v5419_v34 = vunpack.i.h.bf16 %v5417_v4  ;;  %v5418_v27 = vunpack.i.l.bf16 %v5417_v4  ;;  %v3731_v55 = vsel %vm3700_vm8, %v3666_v63, %v5413_v26  ;;  %v3795_v47 = vsel %vm3765_vm9, %v3730_v19, %v5379_v3  ;;  %v10028_v25 = vld [vmem:[#allocation54_spill] sm:$0xff]  ;;  %v10030_v19 = vld [vmem:[#allocation87_spill] sm:$0xff] }
 0x31f   : > { %5701 = vrot.lane.b32.xlu1 %v10022_v10, %s5916_s20  ;;  %v10023_v50 = vunpack.i.l.bf16 %v7737_v6  ;;  %v5249_v40 = vunpack.i.h.bf16 %v10024_v39  ;;  %v5248_v14 = vunpack.i.l.bf16 %v10024_v39  ;;  %v5309_v49 = vunpack.i.h.bf16 %v10025_v56 }
 0x320   : > { %v3796_v5 = vsel %vm3765_vm9, %v3731_v55, %v5418_v27  ;;  %v3797_v28 = vsel %vm3765_vm9, %v3732_v13, %v5419_v34  ;;  %v8572_v30 = vpop.permute.xlu0 %5436  ;;  %v5308_v60 = vunpack.i.l.bf16 %v10025_v56  ;;  %v10026_v54 = vunpack.i.l.bf16 %v10004_v41 }
 0x321   : > { %v3713_v1 = vsel %vm3700_vm8, %v8373_v0, %v10023_v50  ;;  %v3845_v43 = vpack.c.bf16 %v3797_v28, %v3796_v5  ;;  %v8574_v9 = vpop.permute.xlu1 %5421  ;;  %v10027_v48 = vunpack.i.h.bf16 %v10004_v41  ;;  %v5334_v26 = vunpack.i.h.bf16 %v8237_v20 }
 0x322   : > { %v3778_v6 = vsel %vm3765_vm9, %v3713_v1, %v10026_v54  ;;  %v5333_v24 = vunpack.i.l.bf16 %v8237_v20  ;;  %v3889_v58 = vsel %vm3863_vm10, %v3837_v35, 0  ;;  %v3844_v3 = vpack.c.bf16 %v3795_v47, %v3794_v62  ;;  %v10032_v47 = vld [vmem:[#allocation12_spill] sm:$0xff] }
 0x323   : > { %v3779_v0 = vsel %vm3765_vm9, %v8412_v33, %v10027_v48  ;;  %4369 = vmatprep.subr.msk.bf16.mxu1 %vm3863_vm10, %v3845_v43  ;;  %5711 = vrot.lane.b32.xlu1 %v10028_v25, %s5917_s21  ;;  %v10029_v59 = vunpack.i.h.bf16 %v10008_v46  ;;  %v3532_v33 = vsel %vm3505_vm5, %v8384_v21, %v5243_v61  ;;  %v5339_v4 = vunpack.i.h.bf16 %v8282_v42  ;;  %v10031_v61 = vld [vmem:[#allocation8_spill] sm:$0xff] }
 0x324   : > { %v5338_v20 = vunpack.i.l.bf16 %v8282_v42  ;;  %4302 = vmatpush3.bf16.xpose.msra.mxu1 %v3889_v58  ;;  %v4883_v12 = vunpack.i.l.bf16 %v9991_v17  ;;  %v4919_v45 = vunpack.i.h.bf16 %v10030_v19  ;;  %v3597_v63 = vsel %vm3570_vm6, %v3532_v33, %v5248_v14  ;;  %v8603_v46 = vpop.permute.xlu0 %5446  ;;  %v4055_v42 = vld [vmem:[%s9291_s4] sm:$0xff]  ;;  %v10034_v43 = vld [vmem:[#allocation144_spill] sm:$0xff]  ;;  %v10042_v33 = vld [vmem:[#allocation134_spill] sm:$0xff] }
 0x325   : > { %v3533_v41 = vsel %vm3505_vm5, %v8376_v32, %v10029_v59  ;;  %v8605_v27 = vpop.permute.xlu1 %5431  ;;  %4370 = vmatprep.subr.msk.bf16.mxu1 %vm3863_vm10, %v3844_v3  ;;  %v4045_v32 = vld [vmem:[%s9290_s3] sm:$0xff]  ;;  %v4918_v21 = vunpack.i.l.bf16 %v10030_v19  ;;  %v4969_v13 = vunpack.i.h.bf16 %v10031_v61  ;;  %v3662_v10 = vsel %vm3635_vm7, %v3597_v63, %v5308_v60  ;;  %v10036_v60 = vld [vmem:[#allocation74_spill] sm:$0xff] }
 0x326   : > { %v3598_v34 = vsel %vm3570_vm6, %v3533_v41, %v5249_v40  ;;  %4048 = vperm.xlu0 %5715, %v4045_v32   ;;  %v4968_v35 = vunpack.i.l.bf16 %v10031_v61  ;;  %v3727_v28 = vsel %vm3700_vm8, %v3662_v10, %v5333_v24  ;;  %v3836_v62 = vpack.c.bf16 %v3779_v0, %v3778_v6  ;;  %v10037_v6 = vld [vmem:[#allocation194_spill] sm:$0xff]  ;;  %v10041_v59 = vld [vmem:[#allocation55_spill] sm:$0xff]  ;;  %v10045_v61 = vld [vmem:[#allocation200_spill] sm:$0xff] }
 0x327   : > { %v3663_v55 = vsel %vm3635_vm7, %v3598_v34, %v5309_v49  ;;  %4058 = vperm.xlu1 %5716, %v4055_v42   ;;  %v4974_v50 = vunpack.i.h.bf16 %v10032_v47  ;;  %v4973_v1 = vunpack.i.l.bf16 %v10032_v47  ;;  %v3792_v39 = vsel %vm3765_vm9, %v3727_v28, %v5338_v20  ;;  %v10043_v20 = vld [vmem:[#allocation133_spill] sm:$0xff]  ;;  %v10044_v42 = vld [vmem:[#allocation52_spill] sm:$0xff] }
 0x328   : > { %v3728_v5 = vsel %vm3700_vm8, %v3663_v55, %v5334_v26  ;;  %v10033_v14 = vunpack.i.l.bf16 %v9986_v36  ;;  %v10035_v49 = vunpack.i.h.bf16 %v9987_v8  ;;  %v5074_v48 = vunpack.i.h.bf16 %v10037_v6  ;;  %v8637_v26 = vpop.permute.xlu0 %5456  ;;  %v10039_v36 = vld [vmem:[#allocation71_spill] sm:$0xff] }
 0x329   : > { %v3793_v40 = vsel %vm3765_vm9, %v3728_v5, %v5339_v4  ;;  %v5073_v0 = vunpack.i.l.bf16 %v10037_v6  ;;  %v8639_v24 = vpop.permute.xlu1 %5441  ;;  %v10038_v25 = vunpack.i.l.bf16 %v9987_v8  ;;  %v10040_v3 = vunpack.i.h.bf16 %v9991_v17 }
 0x32a   : > { %v8629_v56 = vsel %vm3440_vm4, %v10034_v43, %v10033_v14  ;;  %v3334_v54 = vsel %vm3310_vm2, %v10036_v60, %v10035_v49  ;;  %v3647_v4 = vsel %vm3635_vm7, %v10042_v33, %v4919_v45  ;;  %v3646_v19 = vsel %vm3635_vm7, %v10043_v20, %v4918_v21  ;;  %v10049_v43 = vld [vmem:[#allocation195_spill] sm:$0xff] }
 0x32b   : > { %v3333_v58 = vsel %vm3310_vm2, %v10039_v36, %v10038_v25  ;;  %v8649_v41 = vsel %vm3310_vm2, %v10041_v59, %v10040_v3  ;;  %v3712_v63 = vsel %vm3700_vm8, %v3647_v4, %v4969_v13  ;;  %v3711_v34 = vsel %vm3700_vm8, %v3646_v19, %v4968_v35  ;;  %v10046_v35 = vld [vmem:[#allocation4_spill] sm:$0xff]  ;;  %v10051_v36 = vld [vmem:[#allocation6_spill] sm:$0xff]  ;;  %v10052_v33 = vld [vmem:[#allocation103_spill] sm:$0xff] }
 0x32c   : > { %v3843_v8 = vpack.c.bf16 %v3793_v40, %v3792_v39  ;;  %v3886_v32 = vsel %vm3863_vm10, %v3836_v62, 0  ;;  %v3327_v17 = vsel %vm3310_vm2, %v10044_v42, %v4883_v12  ;;  %v4903_v55 = vunpack.i.l.bf16 %v10045_v61  ;;  %v8667_v47 = vpop.permute.xlu0 %5466  ;;  %v10047_v12 = vld [vmem:[#allocation98_spill] sm:$0xff]  ;;  %v10048_v40 = vld [vmem:[#allocation5_spill] sm:$0xff] }
 0x32d   : > { %4304 = vmatpush3.bf16.xpose.msra.mxu1 %v3886_v32  ;;  %v3776_v10 = vsel %vm3765_vm9, %v3711_v34, %v4973_v1  ;;  %v3777_v45 = vsel %vm3765_vm9, %v3712_v63, %v4974_v50  ;;  %v3398_v5 = vsel %vm3375_vm3, %v3333_v58, %v5073_v0  ;;  %v3399_v21 = vsel %vm3375_vm3, %v3334_v54, %v5074_v48  ;;  %v8669_v62 = vpop.permute.xlu1 %5451  ;;  %v10050_v48 = vld [vmem:[#allocation197_spill] sm:$0xff] }
 0x32e   : > { %v4904_v13 = vunpack.i.h.bf16 %v10045_v61  ;;  %v4908_v28 = vunpack.i.l.bf16 %v10046_v35  ;;  %4371 = vmatprep.subr.msk.bf16.mxu1 %vm3863_vm10, %v3843_v8  ;;  %v4889_v39 = vunpack.i.h.bf16 %v10047_v12  ;;  %v4888_v1 = vunpack.i.l.bf16 %v10047_v12  ;;  %v10055_v12 = vld [vmem:[#allocation135_spill] sm:$0xff] }
 0x32f   : > { %v4909_v50 = vunpack.i.h.bf16 %v10046_v35  ;;  %v5144_v14 = vunpack.i.h.bf16 %v10048_v40  ;;  %v5079_v49 = vunpack.i.h.bf16 %v10049_v43  ;;  %v5078_v60 = vunpack.i.l.bf16 %v10049_v43 }
 0x330   : > { %v5143_v54 = vunpack.i.l.bf16 %v10048_v40  ;;  %v3835_v6 = vpack.c.bf16 %v3777_v45, %v3776_v10  ;;  %v5084_v0 = vunpack.i.h.bf16 %v10050_v48  ;;  %v3709_v25 = vsel %vm3700_vm8, %v8274_v2, %v4903_v55  ;;  %v8688_v19 = vpop.permute.xlu0 %5476  ;;  %v10053_v2 = vld [vmem:[#allocation121_spill] sm:$0xff]  ;;  %v10054_v55 = vld [vmem:[#allocation24_spill] sm:$0xff] }
 0x331   : > { %v5164_v58 = vunpack.i.h.bf16 %v10051_v36  ;;  %v5163_v3 = vunpack.i.l.bf16 %v10051_v36  ;;  %v3710_v59 = vsel %vm3700_vm8, %v8270_v31, %v4904_v13  ;;  %v5169_v4 = vunpack.i.h.bf16 %v10052_v33  ;;  %v8690_v63 = vpop.permute.xlu1 %5461 }
 0x332   : > { %v5168_v20 = vunpack.i.l.bf16 %v10052_v33  ;;  %v3774_v34 = vsel %vm3765_vm9, %v3709_v25, %v4908_v28  ;;  %v3464_v8 = vsel %vm3440_vm4, %v3399_v21, %v5144_v14  ;;  %v5229_v32 = vunpack.i.h.bf16 %v10053_v2 }
 0x333   : > { %v5228_v42 = vunpack.i.l.bf16 %v10053_v2  ;;  %v3775_v61 = vsel %vm3765_vm9, %v3710_v59, %v4909_v50  ;;  %v3463_v31 = vsel %vm3440_vm4, %v3398_v5, %v5143_v54  ;;  %v5254_v10 = vunpack.i.h.bf16 %v10054_v55  ;;  %v10056_v50 = vld [vmem:[#allocation199_spill] sm:$0xff] }
 0x334   : > { %v5253_v45 = vunpack.i.l.bf16 %v10054_v55  ;;  %v3883_v13 = vsel %vm3863_vm10, %v3835_v6, 0  ;;  %v3529_v35 = vsel %vm3505_vm5, %v3464_v8, %v5164_v58  ;;  %v3528_v28 = vsel %vm3505_vm5, %v3463_v31, %v5163_v3  ;;  %v8709_v25 = vpop.permute.xlu0 %5486  ;;  %v10058_v3 = vld [vmem:[#allocation201_spill] sm:$0xff] }
 0x335   : > { %v5259_v21 = vunpack.i.h.bf16 %v10055_v12  ;;  %v5258_v40 = vunpack.i.l.bf16 %v10055_v12  ;;  %4306 = vmatpush3.bf16.xpose.msra.mxu1 %v3883_v13  ;;  %v5083_v14 = vunpack.i.l.bf16 %v10050_v48  ;;  %v5099_v43 = vunpack.i.h.bf16 %v10056_v50  ;;  %v8711_v6 = vpop.permute.xlu1 %5471  ;;  %v10059_v13 = vld [vmem:[#allocation93_spill] sm:$0xff]  ;;  %v10061_v12 = vld [vmem:[#allocation92_spill] sm:$0xff] }
 0x336   : > { %v3593_v5 = vsel %vm3570_vm6, %v3528_v28, %v5168_v20  ;;  %v3594_v54 = vsel %vm3570_vm6, %v3529_v35, %v5169_v4  ;;  %v10057_v36 = vpack.c.bf16 %v8328_v18, %v8325_v44  ;;  %v5098_v58 = vunpack.i.l.bf16 %v10056_v50  ;;  %v10060_v35 = vld [vmem:[#allocation202_spill] sm:$0xff] }
 0x337   : > { %v5104_v59 = vunpack.i.h.bf16 %v10058_v3  ;;  %v3659_v48 = vsel %vm3635_vm7, %v3594_v54, %v5229_v32  ;;  %v3658_v33 = vsel %vm3635_vm7, %v3593_v5, %v5228_v42  ;;  %v5103_v20 = vunpack.i.l.bf16 %v10058_v3  ;;  %v10065_v3 = vld [vmem:[#allocation56_spill] sm:$0xff] }
 0x338   : > { %4372 = vmatprep.subr.msk.bf16.mxu1 %vm3863_vm10, %v10057_v36  ;;  %v3724_v4 = vsel %vm3700_vm8, %v3659_v48, %v5254_v10  ;;  %v3723_v8 = vsel %vm3700_vm8, %v3658_v33, %v5253_v45  ;;  %v3834_v2 = vpack.c.bf16 %v3775_v61, %v3774_v34  ;;  %v3392_v31 = vsel %vm3375_vm3, %v3327_v17, %v4888_v1  ;;  %v8735_v34 = vpop.permute.xlu0 %5496  ;;  %v10066_v48 = vld [vmem:[#allocation96_spill] sm:$0xff] }
 0x339   : > { %v3524_v44 = vsel %vm3505_vm5, %v8266_v51, %v5078_v60  ;;  %v3788_v18 = vsel %vm3765_vm9, %v3723_v8, %v5258_v40  ;;  %v3789_v55 = vsel %vm3765_vm9, %v3724_v4, %v5259_v21  ;;  %v3393_v32 = vsel %vm3375_vm3, %v8649_v41, %v4889_v39  ;;  %v8737_v17 = vpop.permute.xlu1 %5481  ;;  %v10062_v21 = vld [vmem:[#allocation3_spill] sm:$0xff] }
 0x33a   : > { %v3525_v42 = vsel %vm3505_vm5, %v8262_v38, %v5079_v49  ;;  %v3589_v10 = vsel %vm3570_vm6, %v3524_v44, %v5083_v14  ;;  %v4924_v45 = vunpack.i.h.bf16 %v10059_v13  ;;  %v3569_v1 = vsel %vm3505_vm5, %v8277_v53, %v5099_v43  ;;  %v10063_v14 = vld [vmem:[#allocation61_spill] sm:$0xff]  ;;  %v10064_v43 = vld [vmem:[#allocation11_spill] sm:$0xff] }
 0x33b   : > { %v3590_v51 = vsel %vm3570_vm6, %v3525_v42, %v5084_v0  ;;  %v3568_v60 = vsel %vm3505_vm5, %v8280_v16, %v5098_v58  ;;  %v4923_v41 = vunpack.i.l.bf16 %v10059_v13  ;;  %v8749_v39 = vsel %vm3570_vm6, %v3569_v1, %v5104_v59 }
 0x33c   : > { %v8746_v38 = vsel %vm3570_vm6, %v3568_v60, %v5103_v20  ;;  %v3880_v49 = vsel %vm3863_vm10, %v3834_v2, 0  ;;  %v3841_v61 = vpack.c.bf16 %v3789_v55, %v3788_v18  ;;  %v5114_v28 = vunpack.i.h.bf16 %v10060_v35  ;;  %v8761_v36 = vpop.permute.xlu0 %5506  ;;  %v10067_v20 = vld [vmem:[#allocation21_spill] sm:$0xff]  ;;  %v10068_v18 = vld [vmem:[#allocation119_spill] sm:$0xff]  ;;  %v10070_v60 = vld [vmem:[#allocation10_spill] sm:$0xff] }
 0x33d   : > { %v5113_v0 = vunpack.i.l.bf16 %v10060_v35  ;;  %v4928_v40 = vunpack.i.l.bf16 %v10062_v21  ;;  %4308 = vmatpush3.bf16.xpose.msra.mxu1 %v3880_v49  ;;  %v5138_v16 = vunpack.i.l.bf16 %v10061_v12  ;;  %v3372_v50 = vsel %vm3310_vm2, %v10063_v14, %v4924_v45  ;;  %v8763_v58 = vpop.permute.xlu1 %5491  ;;  %v10069_v45 = vld [vmem:[#allocation97_spill] sm:$0xff]  ;;  %v10071_v14 = vld [vmem:[#allocation7_spill] sm:$0xff] }
 0x33e   : > { %v4999_v5 = vunpack.i.h.bf16 %v10064_v43  ;;  %v4998_v54 = vunpack.i.l.bf16 %v10064_v43  ;;  %4373 = vmatprep.subr.msk.bf16.mxu1 %vm3863_vm10, %v3841_v61  ;;  %v3371_v59 = vsel %vm3310_vm2, %v10065_v3, %v4923_v41  ;;  %v5149_v33 = vunpack.i.h.bf16 %v10066_v48 }
 0x33f   : > { %v5024_v4 = vunpack.i.h.bf16 %v10067_v20  ;;  %v5023_v8 = vunpack.i.l.bf16 %v10067_v20  ;;  %v4929_v2 = vunpack.i.h.bf16 %v10062_v21  ;;  %v5148_v44 = vunpack.i.l.bf16 %v10066_v48 }
 0x340   : > { %v5029_v55 = vunpack.i.h.bf16 %v10068_v18  ;;  %v5028_v42 = vunpack.i.l.bf16 %v10068_v18  ;;  %v3436_v13 = vsel %vm3375_vm3, %v3371_v59, %v4928_v40  ;;  %v4934_v1 = vunpack.i.h.bf16 %v10069_v45  ;;  %v8783_v3 = vpop.permute.xlu0 %5516 }
 0x341   : > { %v5174_v41 = vunpack.i.h.bf16 %v10070_v60  ;;  %v5173_v49 = vunpack.i.l.bf16 %v10070_v60  ;;  %v3458_v61 = vsel %vm3440_vm4, %v3393_v32, %v4999_v5  ;;  %v3457_v35 = vsel %vm3440_vm4, %v3392_v31, %v4998_v54  ;;  %v8785_v48 = vpop.permute.xlu1 %5501  ;;  %v10072_v5 = vld [vmem:[#allocation94_spill] sm:$0xff] }
 0x342   : > { %v5179_v21 = vunpack.i.h.bf16 %v10071_v14  ;;  %v5178_v43 = vunpack.i.l.bf16 %v10071_v14  ;;  %v3655_v40 = vsel %vm3635_vm7, %v3590_v51, %v5149_v33  ;;  %v4933_v59 = vunpack.i.l.bf16 %v10069_v45  ;;  %v10074_v45 = vld [vmem:[#allocation149_spill] sm:$0xff] }
 0x343   : > { %v3523_v20 = vsel %vm3505_vm5, %v3458_v61, %v5024_v4  ;;  %v3522_v18 = vsel %vm3505_vm5, %v3457_v35, %v5023_v8  ;;  %v3654_v32 = vsel %vm3635_vm7, %v3589_v10, %v5148_v44  ;;  %v4938_v31 = vunpack.i.l.bf16 %v10072_v5  ;;  %v10075_v8 = vld [vmem:[#allocation152_spill] sm:$0xff]  ;;  %v10077_v61 = vld [vmem:[#allocation45_spill] sm:$0xff] }
 0x344   : > { %v3587_v54 = vsel %vm3570_vm6, %v3522_v18, %v5028_v42  ;;  %v3588_v60 = vsel %vm3570_vm6, %v3523_v20, %v5029_v55  ;;  %v3720_v14 = vsel %vm3700_vm8, %v3655_v40, %v5174_v41  ;;  %v3719_v53 = vsel %vm3700_vm8, %v3654_v32, %v5173_v49  ;;  %v8807_v42 = vpop.permute.xlu0 %5526  ;;  %v10076_v49 = vld [vmem:[#allocation39_spill] sm:$0xff] }
 0x345   : > { %v5009_v51 = vunpack.i.h.bf16 %v10073_v15  ;;  %v5008_v33 = vunpack.i.l.bf16 %v10073_v15  ;;  %4310 = vmatpush3.bf16.xpose.msra.mxu1 %v10074_v45  ;;  %v3437_v4 = vsel %vm3375_vm3, %v3372_v50, %v4929_v2  ;;  %v8803_v10 = vsel %vm3505_vm5, %v10075_v8, %v4934_v1  ;;  %v8809_v41 = vpop.permute.xlu1 %5511  ;;  %v10079_v1 = vld [vmem:[#allocation129_spill] sm:$0xff] }
 0x346   : > { %v3784_v44 = vsel %vm3765_vm9, %v3719_v53, %v5178_v43  ;;  %v3785_v55 = vsel %vm3765_vm9, %v3720_v14, %v5179_v21  ;;  %v10078_v35 = vpack.c.bf16 %v10076_v49, %v10077_v61  ;;  %v3562_v15 = vsel %vm3505_vm5, %v8629_v56, %v4933_v59 }
 0x347   : > { %v3652_v50 = vsel %vm3635_vm7, %v3587_v54, %v5113_v0  ;;  %v3653_v2 = vsel %vm3635_vm7, %v3588_v60, %v5114_v28  ;;  %v5054_v53 = vunpack.i.h.bf16 %v10079_v1  ;;  %v4939_v21 = vunpack.i.h.bf16 %v10072_v5 }
 0x348   : > { %4374 = vmatprep.subr.msk.bf16.mxu1 %vm3863_vm10, %v10078_v35  ;;  %v8822_v43 = vsel %vm3570_vm6, %v3562_v15, %v4938_v31  ;;  %v5424_v40 = vunpack.i.h.bf16 %v8574_v9  ;;  %v5423_v20 = vunpack.i.l.bf16 %v8574_v9  ;;  %v3502_v18 = vsel %vm3440_vm4, %v3437_v4, %v5009_v51  ;;  %v8835_v14 = vpop.permute.xlu0 %5536  ;;  %v10082_v35 = vld [vmem:[#allocation143_spill] sm:$0xff] }
 0x349   : > { %v3501_v32 = vsel %vm3440_vm4, %v3436_v13, %v5008_v33  ;;  %v5053_v56 = vunpack.i.l.bf16 %v10079_v1  ;;  %v3839_v0 = vpack.c.bf16 %v3785_v55, %v3784_v44  ;;  %v5429_v28 = vunpack.i.h.bf16 %v8549_v29  ;;  %v8837_v9 = vpop.permute.xlu1 %5521  ;;  %v10081_v13 = vld [vmem:[#allocation25_spill] sm:$0xff]  ;;  %v10083_v15 = vld [vmem:[#allocation23_spill] sm:$0xff] }
 0x34a   : > { %v5428_v59 = vunpack.i.l.bf16 %v8549_v29  ;;  %v3717_v54 = vsel %vm3700_vm8, %v3652_v50, %v5138_v16  ;;  %v10080_v31 = vunpack.i.h.bf16 %v10061_v12  ;;  %v3567_v51 = vsel %vm3505_vm5, %v3502_v18, %v5054_v53  ;;  %v10084_v50 = vld [vmem:[#allocation118_spill] sm:$0xff] }
 0x34b   : > { %v5058_v33 = vunpack.i.l.bf16 %v10081_v13  ;;  %v5439_v45 = vunpack.i.h.bf16 %v8572_v30  ;;  %v5438_v4 = vunpack.i.l.bf16 %v8572_v30  ;;  %v3782_v16 = vsel %vm3765_vm9, %v3717_v54, %v5423_v20 }
 0x34c   : > { %v3718_v60 = vsel %vm3700_vm8, %v3653_v2, %v10080_v31  ;;  %v5449_v12 = vunpack.i.h.bf16 %v8603_v46  ;;  %v5448_v8 = vunpack.i.l.bf16 %v8603_v46  ;;  %v3566_v44 = vsel %vm3505_vm5, %v3501_v32, %v5053_v56  ;;  %v8858_v53 = vpop.permute.xlu0 %5546 }
 0x34d   : > { %v3783_v29 = vsel %vm3765_vm9, %v3718_v60, %v5424_v40  ;;  %v5059_v55 = vunpack.i.h.bf16 %v10081_v13  ;;  %v5434_v49 = vunpack.i.h.bf16 %v8605_v27  ;;  %v5433_v61 = vunpack.i.l.bf16 %v8605_v27  ;;  %4312 = vmatpush3.bf16.xpose.msra.mxu1 %v10082_v35  ;;  %v8860_v40 = vpop.permute.xlu1 %5531  ;;  %v10085_v13 = vld [vmem:[#allocation17_spill] sm:$0xff] }
 0x34e   : > { %v3683_v30 = vsel %vm3635_vm7, %v10083_v15, %v5429_v28  ;;  %v3682_v2 = vsel %vm3635_vm7, %v10084_v50, %v5428_v59  ;;  %v5459_v1 = vunpack.i.h.bf16 %v8637_v26  ;;  %v5458_v46 = vunpack.i.l.bf16 %v8637_v26  ;;  %4375 = vmatprep.subr.msk.bf16.mxu1 %vm3863_vm10, %v3839_v0  ;;  %v10087_v50 = vld [vmem:[#allocation132_spill] sm:$0xff] }
 0x34f   : > { %v3631_v27 = vsel %vm3570_vm6, %v3566_v44, %v5058_v33  ;;  %v3747_v20 = vsel %vm3700_vm8, %v3682_v2, %v5438_v4  ;;  %v3748_v18 = vsel %vm3700_vm8, %v3683_v30, %v5439_v45  ;;  %v3838_v32 = vpack.c.bf16 %v3783_v29, %v3782_v16  ;;  %v10086_v45 = vld [vmem:[#allocation112_spill] sm:$0xff] }
 0x350   : > { %v3812_v56 = vsel %vm3765_vm9, %v3747_v20, %v5448_v8  ;;  %v3813_v28 = vsel %vm3765_vm9, %v3748_v18, %v5449_v12  ;;  %v5469_v59 = vunpack.i.h.bf16 %v8667_v47  ;;  %v5468_v26 = vunpack.i.l.bf16 %v8667_v47  ;;  %v8882_v16 = vpop.permute.xlu0 %5556 }
 0x351   : > { %v3699_v54 = vsel %vm3635_vm7, %v8749_v39, %v5434_v49  ;;  %v3698_v0 = vsel %vm3635_vm7, %v8746_v38, %v5433_v61  ;;  %v5479_v31 = vunpack.i.h.bf16 %v8688_v19  ;;  %v5478_v60 = vunpack.i.l.bf16 %v8688_v19  ;;  %v8884_v39 = vpop.permute.xlu1 %5541 }
 0x352   : > { %v3681_v33 = vsel %vm3635_vm7, %v10085_v13, %v5459_v1  ;;  %v3680_v4 = vsel %vm3635_vm7, %v10086_v45, %v5458_v46  ;;  %v5444_v29 = vunpack.i.h.bf16 %v8639_v24  ;;  %v5443_v47 = vunpack.i.l.bf16 %v8639_v24 }
 0x353   : > { %v5454_v38 = vunpack.i.h.bf16 %v8669_v62  ;;  %v5453_v12 = vunpack.i.l.bf16 %v8669_v62  ;;  %v5464_v19 = vunpack.i.h.bf16 %v8690_v63  ;;  %v5463_v8 = vunpack.i.l.bf16 %v8690_v63 }
 0x354   : > { %v3745_v44 = vsel %vm3700_vm8, %v3680_v4, %v5468_v26  ;;  %v3746_v49 = vsel %vm3700_vm8, %v3681_v33, %v5469_v59  ;;  %v5474_v61 = vunpack.i.h.bf16 %v8711_v6  ;;  %v5473_v24 = vunpack.i.l.bf16 %v8711_v6  ;;  %v8902_v46 = vpop.permute.xlu0 %5566 }
 0x355   : > { %v3810_v35 = vsel %vm3765_vm9, %v3745_v44, %v5478_v60  ;;  %v3811_v15 = vsel %vm3765_vm9, %v3746_v49, %v5479_v31  ;;  %v5484_v30 = vunpack.i.h.bf16 %v8737_v17  ;;  %v5483_v62 = vunpack.i.l.bf16 %v8737_v17  ;;  %4314 = vmatpush3.bf16.xpose.msra.mxu1 %v10087_v50  ;;  %v8904_v20 = vpop.permute.xlu1 %5551  ;;  %v10089_v49 = vld [vmem:[#allocation46_spill] sm:$0xff] }
 0x356   : > { %v3632_v63 = vsel %vm3570_vm6, %v3567_v51, %v5059_v55  ;;  %v3763_v2 = vsel %vm3700_vm8, %v3698_v0, %v5443_v47  ;;  %v3764_v1 = vsel %vm3700_vm8, %v3699_v54, %v5444_v29  ;;  %4376 = vmatprep.subr.msk.bf16.mxu1 %vm3863_vm10, %v3838_v32  ;;  %v3853_v6 = vpack.c.bf16 %v3813_v28, %v3812_v56 }
 0x357   : > { %v3828_v18 = vsel %vm3765_vm9, %v3763_v2, %v5453_v12  ;;  %v3829_v59 = vsel %vm3765_vm9, %v3764_v1, %v5454_v38  ;;  %v3697_v17 = vsel %vm3635_vm7, %v3632_v63, %v5464_v19  ;;  %v3696_v26 = vsel %vm3635_vm7, %v3631_v27, %v5463_v8  ;;  %v10088_v8 = vld [vmem:[#allocation147_spill] sm:$0xff] }
 0x358   : > { %v3628_v51 = vsel %vm3570_vm6, %v8803_v10, %v4939_v21  ;;  %v3761_v55 = vsel %vm3700_vm8, %v3696_v26, %v5473_v24  ;;  %v3762_v54 = vsel %vm3700_vm8, %v3697_v17, %v5474_v61  ;;  %v3852_v0 = vpack.c.bf16 %v3811_v15, %v3810_v35  ;;  %v8929_v60 = vpop.permute.xlu0 %5571  ;;  %v10090_v61 = vld [vmem:[#allocation124_spill] sm:$0xff] }
 0x359   : > { %v8918_v32 = vsel %vm3765_vm9, %v3761_v55, %v5483_v62  ;;  %v8921_v56 = vsel %vm3765_vm9, %v3762_v54, %v5484_v30  ;;  %v5494_v28 = vunpack.i.h.bf16 %v8763_v58  ;;  %v5493_v27 = vunpack.i.l.bf16 %v8763_v58  ;;  %v8927_v21 = vpop.permute.xlu1 %5561 }
 0x35a   : > { %v3861_v31 = vpack.c.bf16 %v3829_v59, %v3828_v18  ;;  %v5504_v5 = vunpack.i.h.bf16 %v8785_v48  ;;  %v5503_v10 = vunpack.i.l.bf16 %v8785_v48  ;;  %v3937_v13 = vsel %vm3863_vm10, %v3853_v6, 0 }
 0x35b   : > { %v5489_v33 = vunpack.i.h.bf16 %v8709_v25  ;;  %v5488_v45 = vunpack.i.l.bf16 %v8709_v25  ;;  %v5514_v4 = vunpack.i.h.bf16 %v8809_v41  ;;  %v5513_v29 = vunpack.i.l.bf16 %v8809_v41 }
 0x35c   : > { %v5499_v58 = vunpack.i.h.bf16 %v8735_v34  ;;  %v5498_v47 = vunpack.i.l.bf16 %v8735_v34  ;;  %v3860_v48 = vpack.c.bf16 %v8921_v56, %v8918_v32  ;;  %v8941_v38 = vsel %vm3863_vm10, %v3852_v0, 0  ;;  %v5577_v62 = vpop.permute.xlu0 %5576 }
 0x35d   : > { %v5509_v12 = vunpack.i.h.bf16 %v8761_v36  ;;  %v5508_v19 = vunpack.i.l.bf16 %v8761_v36  ;;  %v3695_v44 = vsel %vm3635_vm7, %v10088_v8, %v5494_v28  ;;  %v3694_v41 = vsel %vm3635_vm7, %v10089_v49, %v5493_v27  ;;  %4316 = vmatpush3.bf16.xpose.msra.mxu1 %v10090_v61  ;;  %v8955_v50 = vpop.permute.xlu1 %5596  ;;  %v10092_v49 = vld [vmem:[#allocation136_spill] sm:$0xff] }
 0x35e   : > { %v3759_v24 = vsel %vm3700_vm8, %v3694_v41, %v5503_v10  ;;  %v3760_v35 = vsel %vm3700_vm8, %v3695_v44, %v5504_v5  ;;  %v5524_v15 = vunpack.i.h.bf16 %v8837_v9  ;;  %v5523_v30 = vunpack.i.l.bf16 %v8837_v9  ;;  %4377 = vmatprep.subr.msk.bf16.mxu1 %vm3863_vm10, %v3861_v31  ;;  %v10091_v44 = vld [vmem:[#allocation139_spill] sm:$0xff] }
 0x35f   : > { %v8958_v63 = vsel %vm3765_vm9, %v3759_v24, %v5513_v29  ;;  %v8961_v2 = vsel %vm3765_vm9, %v3760_v35, %v5514_v4  ;;  %v5534_v1 = vunpack.i.h.bf16 %v8860_v40  ;;  %v5533_v6 = vunpack.i.l.bf16 %v8860_v40  ;;  %v8992_v41 = vld [vmem:[%s9289_s2] sm:$0xf] }
 0x360   : > { %v5544_v18 = vunpack.i.h.bf16 %v8884_v39  ;;  %v5543_v59 = vunpack.i.l.bf16 %v8884_v39  ;;  %v5579_v9 = vunpack.i.h.bf16 %v5577_v62  ;;  %v5578_v17 = vunpack.i.l.bf16 %v5577_v62 }
 0x361   : > { %v5519_v26 = vunpack.i.h.bf16 %v8783_v3  ;;  %v5518_v55 = vunpack.i.l.bf16 %v8783_v3  ;;  %v5529_v54 = vunpack.i.h.bf16 %v8807_v42  ;;  %v5528_v0 = vunpack.i.l.bf16 %v8807_v42  ;;  %v5602_v27 = vpop.permute.xlu1 %5601 }
 0x362   : > { %v3859_v32 = vpack.c.bf16 %v8961_v2, %v8958_v63  ;;  %v5539_v56 = vunpack.i.h.bf16 %v8835_v14  ;;  %v3693_v40 = vsel %vm3635_vm7, %v3628_v51, %v5524_v15  ;;  %v3692_v39 = vsel %vm3635_vm7, %v8822_v43, %v5523_v30  ;;  %v5582_v28 = vpop.permute.xlu0 %5581 }
 0x363   : > { %v3757_v31 = vsel %vm3700_vm8, %v3692_v39, %v5533_v6  ;;  %v3758_v5 = vsel %vm3700_vm8, %v3693_v40, %v5534_v1  ;;  %v5584_v10 = vunpack.i.h.bf16 %v5582_v28  ;;  %v5583_v4 = vunpack.i.l.bf16 %v5582_v28  ;;  %v10093_v40 = vld [vmem:[#allocation83_spill] sm:$0xff] }
 0x364   : > { %v8980_v29 = vsel %vm3765_vm9, %v3757_v31, %v5543_v59  ;;  %v8983_v8 = vsel %vm3765_vm9, %v3758_v5, %v5544_v18  ;;  %v3352_v51 = vsel %vm3310_vm2, %v10091_v44, %v5579_v9  ;;  %v3351_v43 = vsel %vm3310_vm2, %v10092_v49, %v5578_v17  ;;  %4318 = vmatmul.mubr.msk.bf16.vlgmr.msra.gmra.mxu1 %vm3863_vm10, %v8992_v41 }
 0x365   : > { %v3416_v61 = vsel %vm3375_vm3, %v3351_v43, %v5583_v4  ;;  %v3417_v24 = vsel %vm3375_vm3, %v3352_v51, %v5584_v10  ;;  %v5604_v35 = vunpack.i.h.bf16 %v5602_v27  ;;  %v5603_v15 = vunpack.i.l.bf16 %v5602_v27  ;;  %4320 = vmatpush3.bf16.xpose.msra.mxu1 %v3937_v13  ;;  %v5607_v59 = vpop.permute.xlu1 %5606  ;;  %4335 = vmatprep.mubr.msk.bf16.mxu1 %vm3863_vm10, %v8992_v41  ;;  %v10096_v51 = vld [vmem:[#allocation145_spill] sm:$0xff]  ;;  %v10097_v43 = vld [vmem:[#allocation142_spill] sm:$0xff] }
 0x366   : > { %v5538_v30 = vunpack.i.l.bf16 %v8835_v14  ;;  %4378 = vmatprep.subr.msk.bf16.mxu1 %vm3863_vm10, %v3860_v48  ;;  %v5587_v18 = vpop.permute.xlu0 %5586  ;;  %v10094_v39 = vunpack.i.l.bf16 %v10093_v40  ;;  %v5554_v27 = vunpack.i.h.bf16 %v8904_v20  ;;  %v10095_v48 = vunpack.i.h.bf16 %v10093_v40 }
 0x367   : > { %v5609_v5 = vunpack.i.h.bf16 %v5607_v59  ;;  %v5608_v10 = vunpack.i.l.bf16 %v5607_v59  ;;  %v5553_v4 = vunpack.i.l.bf16 %v8904_v20  ;;  %v5564_v44 = vunpack.i.h.bf16 %v8927_v21 }
 0x368   : > { %v3481_v28 = vsel %vm3440_vm4, %v3416_v61, %v10094_v39  ;;  %v3482_v31 = vsel %vm3440_vm4, %v3417_v24, %v10095_v48  ;;  %v3354_v49 = vsel %vm3310_vm2, %v10096_v51, %v5604_v35  ;;  %v3353_v17 = vsel %vm3310_vm2, %v10097_v43, %v5603_v15  ;;  %v10098_v39 = vld [vmem:[#allocation102_spill] sm:$0xff]  ;;  %v10101_v15 = vld [vmem:[#allocation91_spill] sm:$0xff] }
 0x369   : > { %v5563_v61 = vunpack.i.l.bf16 %v8927_v21  ;;  %v10099_v6 = vunpack.i.l.bf16 %v10098_v39  ;;  %v3418_v24 = vsel %vm3375_vm3, %v3353_v17, %v5608_v10  ;;  %v3419_v59 = vsel %vm3375_vm3, %v3354_v49, %v5609_v5  ;;  %v9028_v20 = vpop.permute.xlu1 %5611  ;;  %v10104_v17 = vld [vmem:[#allocation140_spill] sm:$0xff]  ;;  %v10105_v10 = vld [vmem:[#allocation107_spill] sm:$0xff] }
 0x36a   : > { %v5592_v48 = vpop.permute.xlu0 %5591  ;;  %v5574_v9 = vunpack.i.h.bf16 %v8929_v60  ;;  %v10100_v35 = vunpack.i.h.bf16 %v10098_v39  ;;  %v10102_v43 = vunpack.i.l.bf16 %v10101_v15  ;;  %v10103_v62 = vunpack.i.h.bf16 %v10101_v15 }
 0x36b   : > { %v3546_v40 = vsel %vm3505_vm5, %v3481_v28, %v10099_v6  ;;  %v3691_v28 = vsel %vm3635_vm7, %v10104_v17, %v5554_v27  ;;  %v5573_v5 = vunpack.i.l.bf16 %v8929_v60  ;;  %v10106_v49 = vunpack.i.l.bf16 %v10105_v10 }
 0x36c   : > { %v3547_v51 = vsel %vm3505_vm5, %v3482_v31, %v10100_v35  ;;  %v3483_v21 = vsel %vm3440_vm4, %v3418_v24, %v10102_v43  ;;  %v3484_v6 = vsel %vm3440_vm4, %v3419_v59, %v10103_v62  ;;  %v10107_v39 = vunpack.i.h.bf16 %v10105_v10  ;;  %v10108_v35 = vld [vmem:[#allocation138_spill] sm:$0xff]  ;;  %v10111_v59 = vld [vmem:[#allocation109_spill] sm:$0xff] }
 0x36d   : > { %v3548_v1 = vsel %vm3505_vm5, %v3483_v21, %v10106_v49  ;;  %v3690_v24 = vsel %vm3635_vm7, %v10108_v35, %v5553_v4  ;;  %v10109_v43 = vld [vmem:[#allocation106_spill] sm:$0xff]  ;;  %v10112_v13 = vunpack.i.l.bf16 %v10111_v59  ;;  %v10113_v60 = vunpack.i.h.bf16 %v10111_v59  ;;  %4322 = vmatpush3.bf16.xpose.msra.mxu1 %v8941_v38  ;;  %v9069_v10 = vpop.permute.xlu1 %5621 }
 0x36e   : > { %v3549_v31 = vsel %vm3505_vm5, %v3484_v6, %v10107_v39  ;;  %v10110_v15 = vunpack.i.l.bf16 %v10109_v43  ;;  %v3755_v21 = vsel %vm3700_vm8, %v3690_v24, %v5563_v61  ;;  %v10114_v6 = vunpack.i.h.bf16 %v10109_v43  ;;  %4379 = vmatprep.subr.msk.bf16.mxu1 %vm3863_vm10, %v3859_v32 }
 0x36f   : > { %v3613_v27 = vsel %vm3570_vm6, %v3548_v1, %v10112_v13  ;;  %v3614_v17 = vsel %vm3570_vm6, %v3549_v31, %v10113_v60  ;;  %v3756_v13 = vsel %vm3700_vm8, %v3691_v28, %v5564_v44  ;;  %v3478_v61 = vsel %vm3440_vm4, %v8499_v7, %v5574_v9 }
 0x370   : > { %v3611_v62 = vsel %vm3570_vm6, %v3546_v40, %v10110_v15  ;;  %v3612_v4 = vsel %vm3570_vm6, %v3547_v51, %v10114_v6  ;;  %v5617_v40 = vpop.permute.xlu0 %5616  ;;  %v3678_v1 = vsel %vm3635_vm7, %v3613_v27, %v5488_v45  ;;  %v3679_v38 = vsel %vm3635_vm7, %v3614_v17, %v5489_v33 }
 0x371   : > { %v5589_v51 = vunpack.i.h.bf16 %v5587_v18  ;;  %v5588_v63 = vunpack.i.l.bf16 %v5587_v18  ;;  %v3477_v2 = vsel %vm3440_vm4, %v8496_v11, %v5573_v5  ;;  %v3743_v32 = vsel %vm3700_vm8, %v3678_v1, %v5498_v47  ;;  %v9099_v9 = vpop.permute.xlu1 %5631 }
 0x372   : > { %v3744_v25 = vsel %vm3700_vm8, %v3679_v38, %v5499_v58  ;;  %v3676_v33 = vsel %vm3635_vm7, %v3611_v62, %v5518_v55  ;;  %v5594_v45 = vunpack.i.h.bf16 %v5592_v48  ;;  %v5593_v44 = vunpack.i.l.bf16 %v5592_v48 }
 0x373   : > { %v3808_v7 = vsel %vm3765_vm9, %v3743_v32, %v5508_v19  ;;  %v3677_v11 = vsel %vm3635_vm7, %v3612_v4, %v5519_v26  ;;  %v5599_v47 = vunpack.i.h.bf16 %v8955_v50  ;;  %v5598_v34 = vunpack.i.l.bf16 %v8955_v50 }
 0x374   : > { %v5618_v18 = vunpack.i.l.bf16 %v5617_v40  ;;  %v5627_v58 = vpop.permute.xlu0 %5626  ;;  %v3809_v55 = vsel %vm3765_vm9, %v3744_v25, %v5509_v12  ;;  %v3543_v48 = vsel %vm3505_vm5, %v3478_v61, %v5589_v51  ;;  %v3542_v19 = vsel %vm3505_vm5, %v3477_v2, %v5588_v63  ;;  %v10116_v25 = vld [vmem:[#allocation155_spill] sm:$0xff] }
 0x375   : > { %v5619_v28 = vunpack.i.h.bf16 %v5617_v40  ;;  %v3741_v3 = vsel %vm3700_vm8, %v3676_v33, %v5528_v0  ;;  %v5629_v26 = vunpack.i.h.bf16 %v5627_v58  ;;  %v5628_v5 = vunpack.i.l.bf16 %v5627_v58  ;;  %v5642_v15 = vpop.permute.xlu1 %5641 }
 0x376   : > { %v3851_v50 = vpack.c.bf16 %v3809_v55, %v3808_v7  ;;  %v3742_v49 = vsel %vm3700_vm8, %v3677_v11, %v5529_v54  ;;  %v3607_v36 = vsel %vm3570_vm6, %v3542_v19, %v5593_v44  ;;  %v3608_v12 = vsel %vm3570_vm6, %v3543_v48, %v5594_v45 }
 0x377   : > { %v5614_v39 = vunpack.i.h.bf16 %v9028_v20  ;;  %v5613_v31 = vunpack.i.l.bf16 %v9028_v20  ;;  %v3672_v35 = vsel %vm3635_vm7, %v3607_v36, %v5618_v18  ;;  %v5624_v24 = vunpack.i.h.bf16 %v9069_v10 }
 0x378   : > { %v3931_v0 = vsel %vm3863_vm10, %v3851_v50, 0  ;;  %v5637_v43 = vpop.permute.xlu0 %5636  ;;  %v3806_v42 = vsel %vm3765_vm9, %v3741_v3, %v5538_v30  ;;  %v3673_v54 = vsel %vm3635_vm7, %v3608_v12, %v5619_v28  ;;  %v3807_v20 = vsel %vm3765_vm9, %v3742_v49, %v5539_v56 }
 0x379   : > { %4324 = vmatpush3.bf16.xpose.msra.mxu1 %v3931_v0  ;;  %v5639_v62 = vunpack.i.h.bf16 %v5637_v43  ;;  %v5638_v59 = vunpack.i.l.bf16 %v5637_v43  ;;  %v3737_v27 = vsel %vm3700_vm8, %v3672_v35, %v5628_v5  ;;  %v3738_v60 = vsel %vm3700_vm8, %v3673_v54, %v5629_v26  ;;  %v5647_v51 = vpop.permute.xlu1 %5646 }
 0x37a   : > { %v5644_v17 = vunpack.i.h.bf16 %v5642_v15  ;;  %v5643_v6 = vunpack.i.l.bf16 %v5642_v15  ;;  %v10115_v4 = vpack.c.bf16 %v8983_v8, %v8980_v29  ;;  %v3821_v30 = vsel %vm3765_vm9, %v3756_v13, %v5614_v39 }
 0x37b   : > { %v3820_v40 = vsel %vm3765_vm9, %v3755_v21, %v5613_v31  ;;  %v9135_v1 = vsel %vm3765_vm9, %v3737_v27, %v5638_v59  ;;  %v9138_v14 = vsel %vm3765_vm9, %v3738_v60, %v5639_v62  ;;  %v5568_v56 = vunpack.i.l.bf16 %v8902_v46  ;;  %v10122_v31 = vld [vmem:[#allocation148_spill] sm:$0xff] }
 0x37c   : > { %4380 = vmatprep.subr.msk.bf16.mxu1 %vm3863_vm10, %v10115_v4  ;;  %v5623_v38 = vunpack.i.l.bf16 %v9069_v10  ;;  %v5657_v61 = vpop.permute.xlu0 %5656  ;;  %v3850_v63 = vpack.c.bf16 %v3807_v20, %v3806_v42  ;;  %v3848_v29 = vpack.c.bf16 %v9138_v14, %v9135_v1  ;;  %v3480_v8 = vsel %vm3440_vm4, %v8479_v37, %v5599_v47  ;;  %v10117_v47 = vld [vmem:[#allocation38_spill] sm:$0xff]  ;;  %v10135_v14 = vld [vmem:[#allocation151_spill] sm:$0xff] }
 0x37d   : > { %v3479_v21 = vsel %vm3440_vm4, %v8476_v23, %v5598_v34  ;;  %v5649_v13 = vunpack.i.h.bf16 %v5647_v51  ;;  %v5648_v2 = vunpack.i.l.bf16 %v5647_v51  ;;  %v3857_v32 = vpack.c.bf16 %v3821_v30, %v3820_v40  ;;  %v5652_v28 = vpop.permute.xlu1 %5651  ;;  %v10124_v4 = vld [vmem:[#allocation150_spill] sm:$0xff] }
 0x37e   : > { %v3689_v33 = vsel %vm3635_vm7, %v10116_v25, %v5624_v24  ;;  %v3545_v10 = vsel %vm3505_vm5, %v3480_v8, %v5644_v17  ;;  %v3544_v45 = vsel %vm3505_vm5, %v3479_v21, %v5643_v6  ;;  %v5634_v44 = vunpack.i.h.bf16 %v9099_v9 }
 0x37f   : > { %v5633_v7 = vunpack.i.l.bf16 %v9099_v9  ;;  %v3609_v11 = vsel %vm3570_vm6, %v3544_v45, %v5648_v2  ;;  %v3610_v37 = vsel %vm3570_vm6, %v3545_v10, %v5649_v13  ;;  %v3688_v23 = vsel %vm3635_vm7, %v10117_v47, %v5623_v38 }
 0x380   : > { %v10118_v34 = vunpack.i.l.bf16 %v8858_v53  ;;  %v10119_v58 = vunpack.i.h.bf16 %v8858_v53  ;;  %v3928_v48 = vsel %vm3863_vm10, %v3850_v63, 0  ;;  %v5667_v19 = vpop.permute.xlu0 %5666  ;;  %v5659_v9 = vunpack.i.h.bf16 %v5657_v61 }
 0x381   : > { %v5658_v3 = vunpack.i.l.bf16 %v5657_v61  ;;  %4326 = vmatpush3.bf16.xpose.msra.mxu1 %v3928_v48  ;;  %v5654_v26 = vunpack.i.h.bf16 %v5652_v28  ;;  %v5653_v5 = vunpack.i.l.bf16 %v5652_v28  ;;  %v5669_v50 = vunpack.i.h.bf16 %v5667_v19  ;;  %v5662_v62 = vpop.permute.xlu1 %5661 }
 0x382   : > { %v3674_v18 = vsel %vm3635_vm7, %v3609_v11, %v10118_v34  ;;  %v3675_v55 = vsel %vm3635_vm7, %v3610_v37, %v10119_v58  ;;  %v5668_v49 = vunpack.i.l.bf16 %v5667_v19  ;;  %4381 = vmatprep.subr.msk.bf16.mxu1 %vm3863_vm10, %v3857_v32  ;;  %v10120_v36 = vunpack.i.l.bf16 %v8882_v16  ;;  %v10125_v32 = vld [vmem:[#allocation141_spill] sm:$0xff]  ;;  %v10130_v34 = vld [vmem:[#allocation120_spill] sm:$0xff] }
 0x383   : > { %v10121_v53 = vunpack.i.h.bf16 %v8882_v16  ;;  %v4729_v35 = vunpack.i.h.bf16 %v10122_v31  ;;  %v4728_v24 = vunpack.i.l.bf16 %v10122_v31  ;;  %v3753_v0 = vsel %vm3700_vm8, %v3688_v23, %v5633_v7 }
 0x384   : > { %v3739_v12 = vsel %vm3700_vm8, %v3674_v18, %v10120_v36  ;;  %v3754_v43 = vsel %vm3700_vm8, %v3689_v33, %v5634_v44  ;;  %v3818_v15 = vsel %vm3765_vm9, %v3753_v0, %v5653_v5  ;;  %v5677_v54 = vpop.permute.xlu0 %5676  ;;  %v10123_v16 = vunpack.i.h.bf16 %v8902_v46  ;;  %v10127_v33 = vld [vmem:[#allocation113_spill] sm:$0xff]  ;;  %v10129_v44 = vld [vmem:[#allocation15_spill] sm:$0xff] }
 0x385   : > { %v3740_v39 = vsel %vm3700_vm8, %v3675_v55, %v10121_v53  ;;  %v3819_v42 = vsel %vm3765_vm9, %v3754_v43, %v5654_v26  ;;  %v3804_v59 = vsel %vm3765_vm9, %v3739_v12, %v5568_v56  ;;  %v3671_v27 = vsel %vm3635_vm7, %v8523_v52, %v5659_v9  ;;  %v5672_v13 = vpop.permute.xlu1 %5671  ;;  %v10132_v43 = vld [vmem:[#allocation123_spill] sm:$0xff] }
 0x386   : > { %v3805_v20 = vsel %vm3765_vm9, %v3740_v39, %v10123_v16  ;;  %v3670_v60 = vsel %vm3635_vm7, %v8520_v22, %v5658_v3  ;;  %v5679_v17 = vunpack.i.h.bf16 %v5677_v54  ;;  %v5678_v6 = vunpack.i.l.bf16 %v5677_v54  ;;  %v10131_v39 = vld [vmem:[#allocation22_spill] sm:$0xff] }
 0x387   : > { %v4734_v30 = vunpack.i.h.bf16 %v10124_v4  ;;  %v3736_v40 = vsel %vm3700_vm8, %v3671_v27, %v5669_v50  ;;  %v3735_v38 = vsel %vm3700_vm8, %v3670_v60, %v5668_v49  ;;  %v3849_v61 = vpack.c.bf16 %v3805_v20, %v3804_v59  ;;  %v10133_v27 = vld [vmem:[#allocation154_spill] sm:$0xff] }
 0x388   : > { %v4733_v56 = vunpack.i.l.bf16 %v10124_v4  ;;  %v3856_v46 = vpack.c.bf16 %v3819_v42, %v3818_v15  ;;  %v9191_v51 = vsel %vm3765_vm9, %v3735_v38, %v5678_v6  ;;  %v9194_v52 = vsel %vm3765_vm9, %v3736_v40, %v5679_v17  ;;  %v5687_v21 = vpop.permute.xlu0 %5686  ;;  %v10134_v4 = vld [vmem:[#allocation137_spill] sm:$0xff] }
 0x389   : > { %v5664_v63 = vunpack.i.h.bf16 %v5662_v62  ;;  %v5663_v22 = vunpack.i.l.bf16 %v5662_v62  ;;  %v3925_v8 = vsel %vm3863_vm10, %v3849_v61, 0  ;;  %v3847_v2 = vpack.c.bf16 %v9194_v52, %v9191_v51  ;;  %v5682_v9 = vpop.permute.xlu1 %5681 }
 0x38a   : > { %v10126_v25 = vunpack.i.h.bf16 %v10125_v32  ;;  %v10128_v45 = vunpack.i.l.bf16 %v10125_v32  ;;  %4328 = vmatpush3.bf16.xpose.msra.mxu1 %v3925_v8  ;;  %v5674_v47 = vunpack.i.h.bf16 %v5672_v13  ;;  %v5673_v23 = vunpack.i.l.bf16 %v5672_v13 }
 0x38b   : > { %4382 = vmatprep.subr.msk.bf16.mxu1 %vm3863_vm10, %v3856_v46  ;;  %v4544_v18 = vunpack.i.h.bf16 %v10130_v34  ;;  %v5689_v3 = vunpack.i.h.bf16 %v5687_v21  ;;  %v5688_v26 = vunpack.i.l.bf16 %v5687_v21  ;;  %v5684_v5 = vunpack.i.h.bf16 %v5682_v9  ;;  %v10136_v46 = vld [vmem:[#allocation19_spill] sm:$0xff] }
 0x38c   : > { %v3492_v10 = vsel %vm3440_vm4, %v10127_v33, %v10126_v25  ;;  %v3491_v7 = vsel %vm3440_vm4, %v10129_v44, %v10128_v45  ;;  %v5697_v28 = vpop.permute.xlu0 %5696  ;;  %v5683_v50 = vunpack.i.l.bf16 %v5682_v9  ;;  %v4549_v15 = vunpack.i.h.bf16 %v10132_v43 }
 0x38d   : > { %v3557_v11 = vsel %vm3505_vm5, %v3492_v10, %v4729_v35  ;;  %v3556_v37 = vsel %vm3505_vm5, %v3491_v7, %v4728_v24  ;;  %v5699_v12 = vunpack.i.h.bf16 %v5697_v28  ;;  %v5698_v53 = vunpack.i.l.bf16 %v5697_v28  ;;  %v5692_v16 = vpop.permute.xlu1 %5691 }
 0x38e   : > { %v3621_v58 = vsel %vm3570_vm6, %v3556_v37, %v4733_v56  ;;  %v3622_v55 = vsel %vm3570_vm6, %v3557_v11, %v4734_v30  ;;  %v3360_v31 = vsel %vm3310_vm2, %v10131_v39, %v4544_v18  ;;  %v4543_v35 = vunpack.i.l.bf16 %v10130_v34 }
 0x38f   : > { %v3687_v48 = vsel %vm3635_vm7, %v3622_v55, %v5664_v63  ;;  %v3686_v19 = vsel %vm3635_vm7, %v3621_v58, %v5663_v22  ;;  %v4548_v42 = vunpack.i.l.bf16 %v10132_v43  ;;  %v3922_v62 = vsel %vm3863_vm10, %v3848_v29, 0  ;;  %v10137_v22 = vld [vmem:[#allocation153_spill] sm:$0xff] }
 0x390   : > { %v3751_v49 = vsel %vm3700_vm8, %v3686_v19, %v5673_v23  ;;  %v3752_v36 = vsel %vm3700_vm8, %v3687_v48, %v5674_v47  ;;  %v5707_v59 = vpop.permute.xlu0 %5706  ;;  %v3669_v20 = vsel %vm3635_vm7, %v8545_v57, %v5689_v3  ;;  %v3668_v60 = vsel %vm3635_vm7, %v10133_v27, %v5688_v26 }
 0x391   : > { %v3816_v24 = vsel %vm3765_vm9, %v3751_v49, %v5683_v50  ;;  %v3817_v0 = vsel %vm3765_vm9, %v3752_v36, %v5684_v5  ;;  %v5709_v17 = vunpack.i.h.bf16 %v5707_v59  ;;  %v5708_v6 = vunpack.i.l.bf16 %v5707_v59  ;;  %v5702_v13 = vpop.permute.xlu1 %5701 }
 0x392   : > { %v3855_v54 = vpack.c.bf16 %v3817_v0, %v3816_v24  ;;  %4330 = vmatpush3.bf16.xpose.msra.mxu1 %v3922_v62  ;;  %v4619_v30 = vunpack.i.h.bf16 %v10134_v4  ;;  %v4618_v40 = vunpack.i.l.bf16 %v10134_v4  ;;  %v3733_v38 = vsel %vm3700_vm8, %v3668_v60, %v5698_v53 }
 0x393   : > { %v3734_v1 = vsel %vm3700_vm8, %v3669_v20, %v5699_v12  ;;  %v4674_v29 = vunpack.i.h.bf16 %v10135_v14  ;;  %v4673_v57 = vunpack.i.l.bf16 %v10135_v14  ;;  %v3798_v61 = vsel %vm3765_vm9, %v3733_v38, %v5708_v6 }
 0x394   : > { %4383 = vmatprep.subr.msk.bf16.mxu1 %vm3863_vm10, %v3855_v54  ;;  %v3799_v56 = vsel %vm3765_vm9, %v3734_v1, %v5709_v17  ;;  %v3359_v63 = vsel %vm3310_vm2, %v10136_v46, %v4543_v35  ;;  %v4679_v8 = vunpack.i.h.bf16 %v10137_v22  ;;  %v4678_v21 = vunpack.i.l.bf16 %v10137_v22 }
 0x395   : > { %v3846_v32 = vpack.c.bf16 %v3799_v56, %v3798_v61  ;;  %v3424_v25 = vsel %vm3375_vm3, %v3359_v63, %v4548_v42  ;;  %v3425_v33 = vsel %vm3375_vm3, %v3360_v31, %v4549_v15  ;;  %v5694_v10 = vunpack.i.h.bf16 %v5692_v16  ;;  %v5712_v55 = vpop.permute.xlu1 %5711 }
 0x396   : > { %v5693_v45 = vunpack.i.l.bf16 %v5692_v16  ;;  %v3490_v44 = vsel %vm3440_vm4, %v3425_v33, %v4619_v30  ;;  %v3489_v7 = vsel %vm3440_vm4, %v3424_v25, %v4618_v40  ;;  %v5704_v11 = vunpack.i.h.bf16 %v5702_v13 }
 0x397   : > { %v5703_v37 = vunpack.i.l.bf16 %v5702_v13  ;;  %v3555_v47 = vsel %vm3505_vm5, %v3490_v44, %v4674_v29  ;;  %v3554_v23 = vsel %vm3505_vm5, %v3489_v7, %v4673_v57  ;;  %v3919_v58 = vsel %vm3863_vm10, %v3847_v2, 0 }
 0x398   : > { %v3619_v34 = vsel %vm3570_vm6, %v3554_v23, %v4678_v21  ;;  %v3620_v18 = vsel %vm3570_vm6, %v3555_v47, %v4679_v8  ;;  %v5714_v28 = vunpack.i.h.bf16 %v5712_v55  ;;  %v5713_v9 = vunpack.i.l.bf16 %v5712_v55 }
 0x399   : > { %v3685_v48 = vsel %vm3635_vm7, %v3620_v18, %v5694_v10  ;;  %v3684_v19 = vsel %vm3635_vm7, %v3619_v34, %v5693_v45  ;;  %v3916_v2 = vsel %vm3863_vm10, %v3846_v32, 0  ;;  %v4070_v39 = vstv %s4065_s13 }
 0x39a   : > { %4332 = vmatpush3.bf16.xpose.msra.mxu1 %v3919_v58  ;;  %v3749_v3 = vsel %vm3700_vm8, %v3684_v19, %v5703_v37  ;;  %v3750_v26 = vsel %vm3700_vm8, %v3685_v48, %v5704_v11 }
 0x39b   : > { %v3814_v5 = vsel %vm3765_vm9, %v3749_v3, %v5713_v9  ;;  %v3815_v51 = vsel %vm3765_vm9, %v3750_v26, %v5714_v28 }
 0x39c   : > { %v3854_v52 = vpack.c.bf16 %v3815_v51, %v3814_v5 }
 0x39e   : > { %4384 = vmatprep.subr.msk.bf16.mxu1 %vm3863_vm10, %v3854_v52 }
 0x3a1   : > { %v4049_v50 = vpop.permute.xlu0 %4048 }
 0x3a2   : > { %4334 = vmatpush3.bf16.xpose.msra.mxu1 %v3916_v2  ;;  %v4059_v36 = vpop.permute.xlu1 %4058 }
 0x3a9   : > { %4336 = vmatmul.mubr.msk.bf16.vlgmr.msra.gmra.mxu1 %vm3863_vm10, %v8992_v41 }
 0x424   : > { %v3997_v49 = vpop.f32.mrf.mxu1 }
 0x425   : > { %v4051_v12 = vmul.f32 %v4049_v50, %v3997_v49 }
 0x426   : > { %v3999_v53 = vpop.f32.mrf.mxu1 }
 0x427   : > { %v4052_v31 = vmul.f32 %v4049_v50, %v3999_v53  ;;  %v4061_v35 = vadd.f32 %v4059_v36, %v4051_v12 }
 0x428   : > { %v4001_v24 = vpop.f32.mrf.mxu1 }
 0x429   : > { %v4062_v41 = vadd.f32 %v4059_v36, %v4052_v31  ;;  %vm4066_vm11 = vcmp.gt.f32.partialorder %v4061_v35, 0.0  ;;  %v4071_v0 = vmul.f32 %v4070_v39, %v4061_v35 }
 0x42a   : > { %v4002_v43 = vpop.f32.mrf.mxu1 }
 0x42b   : > { %vm4067_vm12 = vcmp.gt.f32.partialorder %v4062_v41, 0.0  ;;  %v4072_v15 = vmul.f32 %v4070_v39, %v4062_v41  ;;  %v4075_v42 = vsel %vm4066_vm11, %v4061_v35, %v4071_v0 }
 0x42c   : > { %4079 = vst [vmem:[%s294_s19] sm:$0xff] %v4075_v42 }
 0x42d   : > { %v4076_v54 = vsel %vm4067_vm12, %v4062_v41, %v4072_v15 }
 0x42e   : > { %4080 = vst [vmem:[%s294_s19 + $0x8] sm:$0xff] %v4076_v54 }
 0x469   : > { %v4038_v62 = vpop.f32.mrf.mxu1 }
 0x46a   : > { %v4053_v59 = vmul.f32 %v4049_v50, %v4038_v62 }
 0x46b   : > { %v4040_v16 = vpop.f32.mrf.mxu1 }
 0x46c   : > { %v4063_v20 = vadd.f32 %v4059_v36, %v4053_v59  ;;  %v4054_v27 = vmul.f32 %v4049_v50, %v4040_v16 }
 0x46d   : > { %v4042_v60 = vpop.f32.mrf.mxu1 }
 0x46e   : > { %vm4068_vm13 = vcmp.gt.f32.partialorder %v4063_v20, 0.0  ;;  %v4073_v17 = vmul.f32 %v4070_v39, %v4063_v20  ;;  %v4064_v6 = vadd.f32 %v4059_v36, %v4054_v27 }
 0x46f   : > { %v4043_v4 = vpop.f32.mrf.mxu1 }
 0x470   : > { %v4077_v30 = vsel %vm4068_vm13, %v4063_v20, %v4073_v17  ;;  %vm4069_vm14 = vcmp.gt.f32.partialorder %v4064_v6, 0.0  ;;  %v4074_v40 = vmul.f32 %v4070_v39, %v4064_v6 }
 0x471   : > { %4081 = vst [vmem:[%s294_s19 + $0x10] sm:$0xff] %v4077_v30 }
 0x472   : > { %v4078_v38 = vsel %vm4069_vm14, %v4064_v6, %v4074_v40 }
 0x473   : > { %4082 = vst [vmem:[%s294_s19 + $0x18] sm:$0xff] %v4078_v38 }
 0x474 PF: > { %s17_s27 = sadd.s32 1, %s5907_s27   ;;  %s10138_s23 = smov %s5899_s25 }
 0x475   : > { %p14_p8 = scmp.ge.s32.totalorder %s17_s27, 6   ;;  %s10139_s24 = smov %s5903_s26 }
 0x476   : > { %s10140_s25 = smov %s10143_s5  ;;  %s10141_s26 = smov %s10147_s28 }
 0x477   :  { %16 = sbr.rel (!%p14_p8) target bundleno = 3 (0x3), region = 77 }

</bundles_post_ra>
